<compile_context>
chip_gen: v7x
topology: tpu7x:2x2x1
jax: 0.10.0
libtpu: 0.0.40
codegen_flags: <defaults>
</compile_context>

<pallas_src>
import functools

import jax
import jax.numpy as jnp
from jax.experimental import pallas as pl
from jax.experimental.pallas import tpu as pltpu

IN_DIM = 2            # PyTorch input features
IN_PAD = 16           # input features zero-padded for the MXU layer-1 path
H_DIM = 400           # PyTorch h_dim
H_PAD = 512           # hidden dim zero-padded to a multiple of 128
OUT_PAD = 128         # layer-4 output zero-padded to one full lane group (MXU path)
MAX_BATCH_TILE = 2048 # ~10 MiB of activation temporaries per tile
ROW_ALIGN = 16        # multiple of the bf16 sublane tile (covers f32's 8 too)


# --------------------------------------------------------------------------
# chip dispatch helpers
# --------------------------------------------------------------------------
def _device_kind():
    try:
        return jax.devices()[0].device_kind.lower()
    except Exception:  # pragma: no cover
        return ""


def _use_mxu_small_layers():
    """v6e/v7x: VALU is the critical slot -> push small layers onto the MXU and
    use bf16 epilogues.  v5e and older: MXU binds and there is no bf16 VALU, so
    keep the original VPU/f32 path."""
    kind = _device_kind()
    return not any(v in kind for v in ("v2", "v3", "v4", "v5"))


def _has_two_tensorcores():
    # v7x exposes 2 TensorCores per chip; the 'parallel' grid axis shards
    # across them, so we want G >= 2 there.
    return "v7" in _device_kind()


def _round_up(n, m):
    return ((n + m - 1) // m) * m


def _pick_batch_tile(B, *, two_cores):
    """Big tiles for big batches; on dual-TC chips keep >=2 (even) tiles."""
    rows = _round_up(max(B, 1), ROW_ALIGN)
    if two_cores and B > ROW_ALIGN:
        n_tiles = max(2, 2 * ((rows + 2 * MAX_BATCH_TILE - 1) // (2 * MAX_BATCH_TILE)))
        return min(MAX_BATCH_TILE, _round_up(-(-rows // n_tiles), ROW_ALIGN))
    return min(MAX_BATCH_TILE, rows)


# --------------------------------------------------------------------------
# kernels
# --------------------------------------------------------------------------
def _mlp_kernel_mxu(x_ref, w1_ref, b1_ref, w2_ref, b2_ref, w3_ref, b3_ref,
                    w4_ref, b4_ref, o_ref):
    """v6e/v7x variant: all four layers on the MXU, bf16 epilogues."""
    # layer 1: (tb,16)x(16,512) bf16 — x is zero-padded to 16 cols, extra K inert
    h = jnp.dot(x_ref[...], w1_ref[...], preferred_element_type=jnp.float32)
    h = jnp.maximum(h.astype(jnp.bfloat16) + b1_ref[...], 0)          # bf16 epilogue

    # layers 2 & 3: dense 512x512 bf16 matmuls, f32 accumulate, bf16 bias+ReLU
    h = jnp.dot(h, w2_ref[...], preferred_element_type=jnp.float32)
    h = jnp.maximum(h.astype(jnp.bfloat16) + b2_ref[...], 0)
    h = jnp.dot(h, w3_ref[...], preferred_element_type=jnp.float32)
    h = jnp.maximum(h.astype(jnp.bfloat16) + b3_ref[...], 0)

    # layer 4 on the MXU: w4 is (512,128) with only column 0 non-zero, so a
    # lane-sum of the (tb,128) product recovers the single logit per row
    # (cheap XLU reduce; no 256-vreg VPU multiply).
    z = jnp.dot(h, w4_ref[...], preferred_element_type=jnp.float32)    # (tb,128) f32
    z = jnp.sum(z, axis=-1) + b4_ref[0]                                # (tb,)   f32

    # exact sigmoid: the vector is tiny, approx reciprocal buys nothing
    sig = 1.0 / (1.0 + jnp.exp(-z))
    o_ref[...] = sig.reshape(1, 1, -1)                                 # lane-dense store


def _mlp_kernel_vpu(x_ref, w1_ref, b1_ref, w2_ref, b2_ref, w3_ref, b3_ref,
                    w4_ref, b4_ref, o_ref):
    """v5e-and-older variant: MXU is the critical unit there, so layers 1/4 stay
    on the VPU/XLU (hidden filler) and all elementwise math stays f32."""
    x = x_ref[...]                                                     # (tb, 2) f32
    h = (x[:, 0:1] * w1_ref[0:1, :]
         + x[:, 1:2] * w1_ref[1:2, :]
         + b1_ref[...])                                                # (tb, 512) f32
    h = jnp.maximum(h, 0.0)

    h = jnp.dot(h.astype(jnp.bfloat16), w2_ref[...],
                preferred_element_type=jnp.float32)
    h = jnp.maximum(h + b2_ref[...], 0.0)

    h = jnp.dot(h.astype(jnp.bfloat16), w3_ref[...],
                preferred_element_type=jnp.float32)
    h = jnp.maximum(h + b3_ref[...], 0.0)

    z = jnp.sum(h * w4_ref[...], axis=-1) + b4_ref[0]                  # (tb,) f32
    sig = 1.0 / (1.0 + jnp.exp(-z))
    o_ref[...] = sig.reshape(1, 1, -1)


# --------------------------------------------------------------------------
# one-time parameter preparation (hoisted out of the per-call path)
# --------------------------------------------------------------------------
def prepare_params(params, *, mxu_small_layers=None):
    """Zero-pad hidden dim 400 -> 512 and pre-cast dense weights to bf16.
    Call ONCE (persistent buffers), not per forward."""
    if mxu_small_layers is None:
        mxu_small_layers = _use_mxu_small_layers()
    (w1, b1), (w2, b2), (w3, b3), (w4, b4) = params
    hp = H_PAD - H_DIM

    w2p = jnp.pad(w2, ((0, hp), (0, hp))).astype(jnp.bfloat16)         # (512,512) bf16
    w3p = jnp.pad(w3, ((0, hp), (0, hp))).astype(jnp.bfloat16)         # (512,512) bf16
    b4p = jnp.reshape(b4, (-1,)).astype(jnp.float32)                   # (1,) f32 -> SMEM

    if mxu_small_layers:
        w1p = jnp.pad(w1, ((0, IN_PAD - IN_DIM), (0, hp))).astype(jnp.bfloat16)  # (16,512)
        b1p = jnp.pad(b1.reshape(1, -1), ((0, 0), (0, hp))).astype(jnp.bfloat16)
        b2p = jnp.pad(b2.reshape(1, -1), ((0, 0), (0, hp))).astype(jnp.bfloat16)
        b3p = jnp.pad(b3.reshape(1, -1), ((0, 0), (0, hp))).astype(jnp.bfloat16)
        # (512,128) bf16, only column 0 carries the real weights
        w4p = jnp.pad(w4.reshape(H_DIM, 1),
                      ((0, hp), (0, OUT_PAD - 1))).astype(jnp.bfloat16)
    else:
        w1p = jnp.pad(w1, ((0, 0), (0, hp)))                           # (2,512)  f32
        b1p = jnp.pad(b1.reshape(1, -1), ((0, 0), (0, hp)))            # f32
        b2p = jnp.pad(b2.reshape(1, -1), ((0, 0), (0, hp)))            # f32
        b3p = jnp.pad(b3.reshape(1, -1), ((0, 0), (0, hp)))            # f32
        w4p = jnp.pad(w4.reshape(1, H_DIM), ((0, 0), (0, hp)))         # (1,512)  f32 row

    return (w1p, b1p, w2p, b2p, w3p, b3p, w4p, b4p)


# --------------------------------------------------------------------------
# forward wrapper
# --------------------------------------------------------------------------
def _build_specs(batch_tile, mxu, buffered_weights):
    def wspec(shape):
        const = lambda i, _s=shape: (0,) * len(_s)
        if buffered_weights:
            # grid-invariant -> a single resident buffer is enough
            return pl.BlockSpec(shape, const, pipeline_mode=pl.Buffered(1))
        return pl.BlockSpec(shape, const)

    in_dim = IN_PAD if mxu else IN_DIM
    w4_shape = (H_PAD, OUT_PAD) if mxu else (1, H_PAD)
    in_specs = [
        pl.BlockSpec((batch_tile, in_dim), lambda i: (i, 0)),          # x tile
        wspec((in_dim, H_PAD)),                                        # w1
        wspec((1, H_PAD)),                                             # b1
        wspec((H_PAD, H_PAD)),                                         # w2
        wspec((1, H_PAD)),                                             # b2
        wspec((H_PAD, H_PAD)),                                         # w3
        wspec((1, H_PAD)),                                             # b3
        wspec(w4_shape),                                               # w4
        pl.BlockSpec(memory_space=pltpu.MemorySpace.SMEM),             # b4 scalar
    ]
    out_specs = pl.BlockSpec((1, 1, batch_tile), lambda i: (i, 0, 0))
    return in_specs, out_specs


@functools.partial(jax.jit, static_argnames=("batch_tile", "buffered_weights"))
def discriminator_forward(x, padded_params, *, batch_tile=None, buffered_weights=True):
    """Runs the discriminator; returns shape (B,) like PyTorch output.view(-1)."""
    w1p, b1p, w2p, b2p, w3p, b3p, w4p, b4p = padded_params
    mxu = (w1p.shape[0] == IN_PAD)        # which prepared-parameter layout we got
    B = x.shape[0]

    if batch_tile is None:
        batch_tile = _pick_batch_tile(B, two_cores=_has_two_tensorcores())
    B_pad = _round_up(B, batch_tile)
    G = B_pad // batch_tile

    if mxu:
        xp = jnp.pad(x.astype(jnp.bfloat16),
                     ((0, B_pad - B), (0, IN_PAD - IN_DIM)))            # (B_pad,16) bf16
    else:
        xp = jnp.pad(x, ((0, B_pad - B), (0, 0)))                       # (B_pad, 2) f32

    in_specs, out_specs = _build_specs(batch_tile, mxu, buffered_weights)
    kernel = _mlp_kernel_mxu if mxu else _mlp_kernel_vpu

    compiler_kwargs = dict(dimension_semantics=("parallel",))
    if batch_tile > MAX_BATCH_TILE:
        # oversized tiles (explicit user choice) need more than the 32 MiB
        # scoped-VMEM default — relevant mostly on v7x (64 MiB physical).
        compiler_kwargs["vmem_limit_bytes"] = int(batch_tile * H_PAD * 12 + (8 << 20))

    out = pl.pallas_call(
        kernel,
        out_shape=jax.ShapeDtypeStruct((G, 1, batch_tile), jnp.float32),
        grid_spec=pltpu.PrefetchScalarGridSpec(
            num_scalar_prefetch=0,
            grid=(G,),
            in_specs=in_specs,
            out_specs=out_specs,
        ),
        compiler_params=pltpu.CompilerParams(**compiler_kwargs),
    )(xp, w1p, b1p, w2p, b2p, w3p, b3p, w4p, b4p)

    # (G, 1, tb) -> (B_pad,) -> drop batch padding; matches PyTorch .view(-1)
    return out.reshape(-1)[:B]


# --------------------------------------------------------------------------
# init + pure-JAX reference
# --------------------------------------------------------------------------
def init_params(key):
    """Deterministic init mimicking PyTorch nn.Linear default U(-1/sqrt(fan_in), +)."""
    dims = [(IN_DIM, H_DIM), (H_DIM, H_DIM), (H_DIM, H_DIM), (H_DIM, 1)]
    params = []
    for (fan_in, fan_out) in dims:
        key, kw, kb = jax.random.split(key, 3)
        bound = 1.0 / jnp.sqrt(fan_in)
        w = jax.random.uniform(kw, (fan_in, fan_out), jnp.float32, -bound, bound)
        b = jax.random.uniform(kb, (1, fan_out), jnp.float32, -bound, bound)
        params.append((w, b))
    return params


def reference_forward(x, params):
    """Pure-JAX f32 reference (matches the PyTorch module exactly)."""
    h = x
    for i, (w, b) in enumerate(params):
        h = h @ w + b
        if i < len(params) - 1:
            h = jnp.maximum(h, 0.0)
    return jax.nn.sigmoid(h).reshape(-1)


if __name__ == "__main__":
    key = jax.random.PRNGKey(0)
    key, kx = jax.random.split(key)

    B = 16  # small batch of 2-D points, as in the WGAN toy problem
    x = jax.random.normal(kx, (B, IN_DIM), jnp.float32)
    params = init_params(key)

    # One-time parameter prep (hoisted out of the per-call path).
    padded = prepare_params(params)

    buffered = True
    try:
        out = jax.block_until_ready(
            discriminator_forward(x, padded, buffered_weights=buffered))
    except Exception:
        # pl.Buffered(1) on the constant weight specs is only a buffering hint;
        # fall back cleanly if this JAX/Mosaic build does not accept it.
        buffered = False
        out = jax.block_until_ready(
            discriminator_forward(x, padded, buffered_weights=buffered))

    ref = reference_forward(x, params)
    assert out.shape == (B,)
    # bf16 MXU weights/activations (and bf16 epilogues on v6e/v7x) vs. the
    # pure-f32 reference -> slightly relaxed tolerance.
    assert jnp.allclose(out, ref, atol=2e-2, rtol=0.0), (out, ref)

    # Second call: exercises batch padding and a multi-tile grid (G > 1).
    key, kx2 = jax.random.split(key)
    B2 = 200
    x2 = jax.random.normal(kx2, (B2, IN_DIM), jnp.float32)
    out2 = jax.block_until_ready(
        discriminator_forward(x2, padded, batch_tile=64, buffered_weights=buffered))
    ref2 = reference_forward(x2, params)
    assert out2.shape == (B2,)
    assert jnp.allclose(out2, ref2, atol=2e-2, rtol=0.0), (out2, ref2)

    print("KERNEL_OK")
</pallas_src>

<mosaic_0001>
module attributes {stable_mosaic.version = 11 : i64} {
  func.func @_mlp_kernel_mxu(%arg0: i32, %arg1: memref<16x16xbf16, #tpu.memory_space<vmem>>, %arg2: memref<16x512xbf16, #tpu.memory_space<vmem>>, %arg3: memref<1x512xbf16, #tpu.memory_space<vmem>>, %arg4: memref<512x512xbf16, #tpu.memory_space<vmem>>, %arg5: memref<1x512xbf16, #tpu.memory_space<vmem>>, %arg6: memref<512x512xbf16, #tpu.memory_space<vmem>>, %arg7: memref<1x512xbf16, #tpu.memory_space<vmem>>, %arg8: memref<512x128xbf16, #tpu.memory_space<vmem>>, %arg9: memref<1xf32, #tpu.memory_space<smem>>, %arg10: memref<1x1x16xf32, #tpu.memory_space<vmem>>) attributes {dimension_semantics = [#tpu.dimension_semantics<parallel>], iteration_bounds = array<i64: 1>, scalar_prefetch = 0 : i64, scratch_operands = 0 : i64, tpu.core_type = #tpu.core_type<tc>, window_params = [{transform_indices = @transform_0, window_bounds = array<i64: 16, 16>}, {pipeline_mode = #tpu.pipeline_mode<synchronous>, transform_indices = @transform_1, window_bounds = array<i64: 16, 512>}, {pipeline_mode = #tpu.pipeline_mode<synchronous>, transform_indices = @transform_2, window_bounds = array<i64: 1, 512>}, {pipeline_mode = #tpu.pipeline_mode<synchronous>, transform_indices = @transform_3, window_bounds = array<i64: 512, 512>}, {pipeline_mode = #tpu.pipeline_mode<synchronous>, transform_indices = @transform_4, window_bounds = array<i64: 1, 512>}, {pipeline_mode = #tpu.pipeline_mode<synchronous>, transform_indices = @transform_5, window_bounds = array<i64: 512, 512>}, {pipeline_mode = #tpu.pipeline_mode<synchronous>, transform_indices = @transform_6, window_bounds = array<i64: 1, 512>}, {pipeline_mode = #tpu.pipeline_mode<synchronous>, transform_indices = @transform_7, window_bounds = array<i64: 512, 128>}, {transform_indices = @transform_8, window_bounds = array<i64: 1>}, {transform_indices = @transform_9, window_bounds = array<i64: 1, 1, 16>}]} {
    %c0 = arith.constant 0 : index
    %c0_0 = arith.constant 0 : index
    %0 = vector.load %arg1[%c0, %c0_0] : memref<16x16xbf16, #tpu.memory_space<vmem>>, vector<16x16xbf16>
    %c0_1 = arith.constant 0 : index
    %c0_2 = arith.constant 0 : index
    %1 = vector.load %arg2[%c0_1, %c0_2] : memref<16x512xbf16, #tpu.memory_space<vmem>>, vector<16x512xbf16>
    %cst = arith.constant dense<0.000000e+00> : vector<16x512xf32>
    %2 = tpu.matmul %0, %1, %cst {dimension_numbers = #tpu.dot_dimension_numbers<[1], [0], [0], [1], [0, 0, 1, 1], [], []>} : vector<16x16xbf16>, vector<16x512xbf16>, vector<16x512xf32> -> vector<16x512xf32>
    %3 = arith.truncf %2 : vector<16x512xf32> to vector<16x512xbf16>
    %c0_3 = arith.constant 0 : index
    %c0_4 = arith.constant 0 : index
    %4 = vector.load %arg3[%c0_3, %c0_4] : memref<1x512xbf16, #tpu.memory_space<vmem>>, vector<1x512xbf16>
    %5 = vector.broadcast %4 : vector<1x512xbf16> to vector<16x512xbf16>
    %6 = arith.addf %3, %5 : vector<16x512xbf16>
    %cst_5 = arith.constant 0.000000e+00 : bf16
    %7 = vector.broadcast %cst_5 : bf16 to vector<16x512xbf16>
    %8 = arith.maximumf %6, %7 : vector<16x512xbf16>
    %c0_6 = arith.constant 0 : index
    %c0_7 = arith.constant 0 : index
    %9 = vector.load %arg4[%c0_6, %c0_7] : memref<512x512xbf16, #tpu.memory_space<vmem>>, vector<512x512xbf16>
    %cst_8 = arith.constant dense<0.000000e+00> : vector<16x512xf32>
    %10 = tpu.matmul %8, %9, %cst_8 {dimension_numbers = #tpu.dot_dimension_numbers<[1], [0], [0], [1], [0, 0, 1, 1], [], []>} : vector<16x512xbf16>, vector<512x512xbf16>, vector<16x512xf32> -> vector<16x512xf32>
    %11 = arith.truncf %10 : vector<16x512xf32> to vector<16x512xbf16>
    %c0_9 = arith.constant 0 : index
    %c0_10 = arith.constant 0 : index
    %12 = vector.load %arg5[%c0_9, %c0_10] : memref<1x512xbf16, #tpu.memory_space<vmem>>, vector<1x512xbf16>
    %13 = vector.broadcast %12 : vector<1x512xbf16> to vector<16x512xbf16>
    %14 = arith.addf %11, %13 : vector<16x512xbf16>
    %cst_11 = arith.constant 0.000000e+00 : bf16
    %15 = vector.broadcast %cst_11 : bf16 to vector<16x512xbf16>
    %16 = arith.maximumf %14, %15 : vector<16x512xbf16>
    %c0_12 = arith.constant 0 : index
    %c0_13 = arith.constant 0 : index
    %17 = vector.load %arg6[%c0_12, %c0_13] : memref<512x512xbf16, #tpu.memory_space<vmem>>, vector<512x512xbf16>
    %cst_14 = arith.constant dense<0.000000e+00> : vector<16x512xf32>
    %18 = tpu.matmul %16, %17, %cst_14 {dimension_numbers = #tpu.dot_dimension_numbers<[1], [0], [0], [1], [0, 0, 1, 1], [], []>} : vector<16x512xbf16>, vector<512x512xbf16>, vector<16x512xf32> -> vector<16x512xf32>
    %19 = arith.truncf %18 : vector<16x512xf32> to vector<16x512xbf16>
    %c0_15 = arith.constant 0 : index
    %c0_16 = arith.constant 0 : index
    %20 = vector.load %arg7[%c0_15, %c0_16] : memref<1x512xbf16, #tpu.memory_space<vmem>>, vector<1x512xbf16>
    %21 = vector.broadcast %20 : vector<1x512xbf16> to vector<16x512xbf16>
    %22 = arith.addf %19, %21 : vector<16x512xbf16>
    %cst_17 = arith.constant 0.000000e+00 : bf16
    %23 = vector.broadcast %cst_17 : bf16 to vector<16x512xbf16>
    %24 = arith.maximumf %22, %23 : vector<16x512xbf16>
    %c0_18 = arith.constant 0 : index
    %c0_19 = arith.constant 0 : index
    %25 = vector.load %arg8[%c0_18, %c0_19] : memref<512x128xbf16, #tpu.memory_space<vmem>>, vector<512x128xbf16>
    %cst_20 = arith.constant dense<0.000000e+00> : vector<16x128xf32>
    %26 = tpu.matmul %24, %25, %cst_20 {dimension_numbers = #tpu.dot_dimension_numbers<[1], [0], [0], [1], [0, 0, 1, 1], [], []>} : vector<16x512xbf16>, vector<512x128xbf16>, vector<16x128xf32> -> vector<16x128xf32>
    %cst_21 = arith.constant dense<0.000000e+00> : vector<16xf32>
    %27 = vector.multi_reduction <add>, %26, %cst_21 [1] : vector<16x128xf32> to vector<16xf32>
    %c0_22 = arith.constant 0 : index
    %28 = memref.load %arg9[%c0_22] : memref<1xf32, #tpu.memory_space<smem>>
    %29 = vector.broadcast %28 : f32 to vector<16xf32>
    %30 = arith.addf %27, %29 : vector<16xf32>
    %cst_23 = arith.constant 0.000000e+00 : f32
    %31 = vector.broadcast %cst_23 : f32 to vector<16xf32>
    %32 = arith.subf %31, %30 : vector<16xf32>
    %33 = math.exp %32 : vector<16xf32>
    %cst_24 = arith.constant 1.000000e+00 : f32
    %34 = vector.broadcast %cst_24 : f32 to vector<16xf32>
    %35 = arith.addf %34, %33 : vector<16xf32>
    %cst_25 = arith.constant 1.000000e+00 : f32
    %36 = vector.broadcast %cst_25 : f32 to vector<16xf32>
    %37 = arith.divf %36, %35 : vector<16xf32>
    %38 = vector.shape_cast %37 : vector<16xf32> to vector<1x1x16xf32>
    %c0_26 = arith.constant 0 : index
    %c0_27 = arith.constant 0 : index
    %c0_28 = arith.constant 0 : index
    %39 = vector.load %arg10[%c0_26, %c0_27, %c0_28] : memref<1x1x16xf32, #tpu.memory_space<vmem>>, vector<1x1x16xf32>
    tpu.vector_store %arg10[%c0_26, %c0_27, %c0_28], %38 {strides = array<i32>} : memref<1x1x16xf32, #tpu.memory_space<vmem>>, vector<1x1x16xf32>,
    return
  }
  func.func @transform_0(%arg0: i32) -> (i32, i32) {
    %c0_i32 = arith.constant 0 : i32
    %c0_i32_0 = arith.constant 0 : i32
    return %arg0, %c0_i32 : i32, i32
  }
  func.func @transform_1(%arg0: i32) -> (i32, i32) {
    %c0_i32 = arith.constant 0 : i32
    %c0_i32_0 = arith.constant 0 : i32
    %c0_i32_1 = arith.constant 0 : i32
    return %c0_i32, %c0_i32_0 : i32, i32
  }
  func.func @transform_2(%arg0: i32) -> (i32, i32) {
    %c0_i32 = arith.constant 0 : i32
    %c0_i32_0 = arith.constant 0 : i32
    %c0_i32_1 = arith.constant 0 : i32
    return %c0_i32, %c0_i32_0 : i32, i32
  }
  func.func @transform_3(%arg0: i32) -> (i32, i32) {
    %c0_i32 = arith.constant 0 : i32
    %c0_i32_0 = arith.constant 0 : i32
    %c0_i32_1 = arith.constant 0 : i32
    return %c0_i32, %c0_i32_0 : i32, i32
  }
  func.func @transform_4(%arg0: i32) -> (i32, i32) {
    %c0_i32 = arith.constant 0 : i32
    %c0_i32_0 = arith.constant 0 : i32
    %c0_i32_1 = arith.constant 0 : i32
    return %c0_i32, %c0_i32_0 : i32, i32
  }
  func.func @transform_5(%arg0: i32) -> (i32, i32) {
    %c0_i32 = arith.constant 0 : i32
    %c0_i32_0 = arith.constant 0 : i32
    %c0_i32_1 = arith.constant 0 : i32
    return %c0_i32, %c0_i32_0 : i32, i32
  }
  func.func @transform_6(%arg0: i32) -> (i32, i32) {
    %c0_i32 = arith.constant 0 : i32
    %c0_i32_0 = arith.constant 0 : i32
    %c0_i32_1 = arith.constant 0 : i32
    return %c0_i32, %c0_i32_0 : i32, i32
  }
  func.func @transform_7(%arg0: i32) -> (i32, i32) {
    %c0_i32 = arith.constant 0 : i32
    %c0_i32_0 = arith.constant 0 : i32
    %c0_i32_1 = arith.constant 0 : i32
    return %c0_i32, %c0_i32_0 : i32, i32
  }
  func.func @transform_8(%arg0: i32) -> i32 {
    %c0_i32 = arith.constant 0 : i32
    %c0_i32_0 = arith.constant 0 : i32
    return %c0_i32 : i32
  }
  func.func @transform_9(%arg0: i32) -> (i32, i32, i32) {
    %c0_i32 = arith.constant 0 : i32
    %c0_i32_0 = arith.constant 0 : i32
    %c0_i32_1 = arith.constant 0 : i32
    return %arg0, %c0_i32, %c0_i32_0 : i32, i32, i32
  }
}

module attributes {stable_mosaic.version = 11 : i64} {
  func.func @_mlp_kernel_mxu(%arg0: i32, %arg1: memref<16x16xbf16, #tpu.memory_space<vmem>>, %arg2: memref<16x512xbf16, #tpu.memory_space<vmem>>, %arg3: memref<1x512xbf16, #tpu.memory_space<vmem>>, %arg4: memref<512x512xbf16, #tpu.memory_space<vmem>>, %arg5: memref<1x512xbf16, #tpu.memory_space<vmem>>, %arg6: memref<512x512xbf16, #tpu.memory_space<vmem>>, %arg7: memref<1x512xbf16, #tpu.memory_space<vmem>>, %arg8: memref<512x128xbf16, #tpu.memory_space<vmem>>, %arg9: memref<1xf32, #tpu.memory_space<smem>>, %arg10: memref<1x1x16xf32, #tpu.memory_space<vmem>>) attributes {dimension_semantics = [#tpu.dimension_semantics<parallel>], iteration_bounds = array<i64: 1>, scalar_prefetch = 0 : i64, scratch_operands = 0 : i64, tpu.core_type = #tpu.core_type<tc>, window_params = [{transform_indices = @transform_0, window_bounds = array<i64: 16, 16>}, {pipeline_mode = #tpu.pipeline_mode<synchronous>, transform_indices = @transform_1, window_bounds = array<i64: 16, 512>}, {pipeline_mode = #tpu.pipeline_mode<synchronous>, transform_indices = @transform_2, window_bounds = array<i64: 1, 512>}, {pipeline_mode = #tpu.pipeline_mode<synchronous>, transform_indices = @transform_3, window_bounds = array<i64: 512, 512>}, {pipeline_mode = #tpu.pipeline_mode<synchronous>, transform_indices = @transform_4, window_bounds = array<i64: 1, 512>}, {pipeline_mode = #tpu.pipeline_mode<synchronous>, transform_indices = @transform_5, window_bounds = array<i64: 512, 512>}, {pipeline_mode = #tpu.pipeline_mode<synchronous>, transform_indices = @transform_6, window_bounds = array<i64: 1, 512>}, {pipeline_mode = #tpu.pipeline_mode<synchronous>, transform_indices = @transform_7, window_bounds = array<i64: 512, 128>}, {transform_indices = @transform_8, window_bounds = array<i64: 1>}, {transform_indices = @transform_9, window_bounds = array<i64: 1, 1, 16>}]} {
    %c0 = arith.constant 0 : index
    %c0_0 = arith.constant 0 : index
    %0 = vector.load %arg1[%c0, %c0_0] : memref<16x16xbf16, #tpu.memory_space<vmem>>, vector<16x16xbf16>
    %c0_1 = arith.constant 0 : index
    %c0_2 = arith.constant 0 : index
    %1 = vector.load %arg2[%c0_1, %c0_2] : memref<16x512xbf16, #tpu.memory_space<vmem>>, vector<16x512xbf16>
    %cst = arith.constant dense<0.000000e+00> : vector<16x512xf32>
    %2 = tpu.matmul %0, %1, %cst {dimension_numbers = #tpu.dot_dimension_numbers<[1], [0], [0], [1], [0, 0, 1, 1], [], []>} : vector<16x16xbf16>, vector<16x512xbf16>, vector<16x512xf32> -> vector<16x512xf32>
    %3 = arith.truncf %2 : vector<16x512xf32> to vector<16x512xbf16>
    %c0_3 = arith.constant 0 : index
    %c0_4 = arith.constant 0 : index
    %4 = vector.load %arg3[%c0_3, %c0_4] : memref<1x512xbf16, #tpu.memory_space<vmem>>, vector<1x512xbf16>
    %5 = vector.broadcast %4 : vector<1x512xbf16> to vector<16x512xbf16>
    %6 = arith.addf %3, %5 : vector<16x512xbf16>
    %cst_5 = arith.constant 0.000000e+00 : bf16
    %7 = vector.broadcast %cst_5 : bf16 to vector<16x512xbf16>
    %8 = arith.maximumf %6, %7 : vector<16x512xbf16>
    %c0_6 = arith.constant 0 : index
    %c0_7 = arith.constant 0 : index
    %9 = vector.load %arg4[%c0_6, %c0_7] : memref<512x512xbf16, #tpu.memory_space<vmem>>, vector<512x512xbf16>
    %cst_8 = arith.constant dense<0.000000e+00> : vector<16x512xf32>
    %10 = tpu.matmul %8, %9, %cst_8 {dimension_numbers = #tpu.dot_dimension_numbers<[1], [0], [0], [1], [0, 0, 1, 1], [], []>} : vector<16x512xbf16>, vector<512x512xbf16>, vector<16x512xf32> -> vector<16x512xf32>
    %11 = arith.truncf %10 : vector<16x512xf32> to vector<16x512xbf16>
    %c0_9 = arith.constant 0 : index
    %c0_10 = arith.constant 0 : index
    %12 = vector.load %arg5[%c0_9, %c0_10] : memref<1x512xbf16, #tpu.memory_space<vmem>>, vector<1x512xbf16>
    %13 = vector.broadcast %12 : vector<1x512xbf16> to vector<16x512xbf16>
    %14 = arith.addf %11, %13 : vector<16x512xbf16>
    %cst_11 = arith.constant 0.000000e+00 : bf16
    %15 = vector.broadcast %cst_11 : bf16 to vector<16x512xbf16>
    %16 = arith.maximumf %14, %15 : vector<16x512xbf16>
    %c0_12 = arith.constant 0 : index
    %c0_13 = arith.constant 0 : index
    %17 = vector.load %arg6[%c0_12, %c0_13] : memref<512x512xbf16, #tpu.memory_space<vmem>>, vector<512x512xbf16>
    %cst_14 = arith.constant dense<0.000000e+00> : vector<16x512xf32>
    %18 = tpu.matmul %16, %17, %cst_14 {dimension_numbers = #tpu.dot_dimension_numbers<[1], [0], [0], [1], [0, 0, 1, 1], [], []>} : vector<16x512xbf16>, vector<512x512xbf16>, vector<16x512xf32> -> vector<16x512xf32>
    %19 = arith.truncf %18 : vector<16x512xf32> to vector<16x512xbf16>
    %c0_15 = arith.constant 0 : index
    %c0_16 = arith.constant 0 : index
    %20 = vector.load %arg7[%c0_15, %c0_16] : memref<1x512xbf16, #tpu.memory_space<vmem>>, vector<1x512xbf16>
    %21 = vector.broadcast %20 : vector<1x512xbf16> to vector<16x512xbf16>
    %22 = arith.addf %19, %21 : vector<16x512xbf16>
    %cst_17 = arith.constant 0.000000e+00 : bf16
    %23 = vector.broadcast %cst_17 : bf16 to vector<16x512xbf16>
    %24 = arith.maximumf %22, %23 : vector<16x512xbf16>
    %c0_18 = arith.constant 0 : index
    %c0_19 = arith.constant 0 : index
    %25 = vector.load %arg8[%c0_18, %c0_19] : memref<512x128xbf16, #tpu.memory_space<vmem>>, vector<512x128xbf16>
    %cst_20 = arith.constant dense<0.000000e+00> : vector<16x128xf32>
    %26 = tpu.matmul %24, %25, %cst_20 {dimension_numbers = #tpu.dot_dimension_numbers<[1], [0], [0], [1], [0, 0, 1, 1], [], []>} : vector<16x512xbf16>, vector<512x128xbf16>, vector<16x128xf32> -> vector<16x128xf32>
    %cst_21 = arith.constant dense<0.000000e+00> : vector<16xf32>
    %27 = vector.multi_reduction <add>, %26, %cst_21 [1] : vector<16x128xf32> to vector<16xf32>
    %c0_22 = arith.constant 0 : index
    %28 = memref.load %arg9[%c0_22] : memref<1xf32, #tpu.memory_space<smem>>
    %29 = vector.broadcast %28 : f32 to vector<16xf32>
    %30 = arith.addf %27, %29 : vector<16xf32>
    %cst_23 = arith.constant 0.000000e+00 : f32
    %31 = vector.broadcast %cst_23 : f32 to vector<16xf32>
    %32 = arith.subf %31, %30 : vector<16xf32>
    %33 = math.exp %32 : vector<16xf32>
    %cst_24 = arith.constant 1.000000e+00 : f32
    %34 = vector.broadcast %cst_24 : f32 to vector<16xf32>
    %35 = arith.addf %34, %33 : vector<16xf32>
    %cst_25 = arith.constant 1.000000e+00 : f32
    %36 = vector.broadcast %cst_25 : f32 to vector<16xf32>
    %37 = arith.divf %36, %35 : vector<16xf32>
    %38 = vector.shape_cast %37 : vector<16xf32> to vector<1x1x16xf32>
    %c0_26 = arith.constant 0 : index
    %c0_27 = arith.constant 0 : index
    %c0_28 = arith.constant 0 : index
    %39 = vector.load %arg10[%c0_26, %c0_27, %c0_28] : memref<1x1x16xf32, #tpu.memory_space<vmem>>, vector<1x1x16xf32>
    tpu.vector_store %arg10[%c0_26, %c0_27, %c0_28], %38 {strides = array<i32>} : memref<1x1x16xf32, #tpu.memory_space<vmem>>, vector<1x1x16xf32>,
    return
  }
  func.func @transform_0(%arg0: i32) -> (i32, i32) {
    %c0_i32 = arith.constant 0 : i32
    %c0_i32_0 = arith.constant 0 : i32
    return %arg0, %c0_i32 : i32, i32
  }
  func.func @transform_1(%arg0: i32) -> (i32, i32) {
    %c0_i32 = arith.constant 0 : i32
    %c0_i32_0 = arith.constant 0 : i32
    %c0_i32_1 = arith.constant 0 : i32
    return %c0_i32, %c0_i32_0 : i32, i32
  }
  func.func @transform_2(%arg0: i32) -> (i32, i32) {
    %c0_i32 = arith.constant 0 : i32
    %c0_i32_0 = arith.constant 0 : i32
    %c0_i32_1 = arith.constant 0 : i32
    return %c0_i32, %c0_i32_0 : i32, i32
  }
  func.func @transform_3(%arg0: i32) -> (i32, i32) {
    %c0_i32 = arith.constant 0 : i32
    %c0_i32_0 = arith.constant 0 : i32
    %c0_i32_1 = arith.constant 0 : i32
    return %c0_i32, %c0_i32_0 : i32, i32
  }
  func.func @transform_4(%arg0: i32) -> (i32, i32) {
    %c0_i32 = arith.constant 0 : i32
    %c0_i32_0 = arith.constant 0 : i32
    %c0_i32_1 = arith.constant 0 : i32
    return %c0_i32, %c0_i32_0 : i32, i32
  }
  func.func @transform_5(%arg0: i32) -> (i32, i32) {
    %c0_i32 = arith.constant 0 : i32
    %c0_i32_0 = arith.constant 0 : i32
    %c0_i32_1 = arith.constant 0 : i32
    return %c0_i32, %c0_i32_0 : i32, i32
  }
  func.func @transform_6(%arg0: i32) -> (i32, i32) {
    %c0_i32 = arith.constant 0 : i32
    %c0_i32_0 = arith.constant 0 : i32
    %c0_i32_1 = arith.constant 0 : i32
    return %c0_i32, %c0_i32_0 : i32, i32
  }
  func.func @transform_7(%arg0: i32) -> (i32, i32) {
    %c0_i32 = arith.constant 0 : i32
    %c0_i32_0 = arith.constant 0 : i32
    %c0_i32_1 = arith.constant 0 : i32
    return %c0_i32, %c0_i32_0 : i32, i32
  }
  func.func @transform_8(%arg0: i32) -> i32 {
    %c0_i32 = arith.constant 0 : i32
    %c0_i32_0 = arith.constant 0 : i32
    return %c0_i32 : i32
  }
  func.func @transform_9(%arg0: i32) -> (i32, i32, i32) {
    %c0_i32 = arith.constant 0 : i32
    %c0_i32_0 = arith.constant 0 : i32
    %c0_i32_1 = arith.constant 0 : i32
    return %arg0, %c0_i32, %c0_i32_0 : i32, i32, i32
  }
}

</mosaic_0001>

<bundles_post_ra>
// kernel: discriminator_forward.1
= control target key start
LH: loop header
LB: loop body
LE: loop exit
PB: predicated region body
PF: predicated region fallthrough
CT: control target
= control target key end

     0   :  { %15 = vsyncpa [#allocation4], 0  ;;  %s3778_s0 = inlined_call_operand.vmem [shape: bf16[16,16], index: 0, kind: input, shape index: {}]   ;;  %s3779_s1 = inlined_call_operand.vmem [shape: bf16[16,512], index: 1, kind: input, shape index: {}]   ;;  %s3780_s2 = inlined_call_operand.vmem [shape: bf16[1,512], index: 2, kind: input, shape index: {}]   ;;  %s3781_s3 = inlined_call_operand.hbm [shape: bf16[512,512], index: 3, kind: input, shape index: {}]   ;;  %s3782_s4 = inlined_call_operand.vmem [shape: bf16[1,512], index: 4, kind: input, shape index: {}]   ;;  %s3783_s5 = inlined_call_operand.hbm [shape: bf16[512,512], index: 5, kind: input, shape index: {}]   ;;  %s3784_s6 = inlined_call_operand.vmem [shape: bf16[1,512], index: 6, kind: input, shape index: {}]   ;;  %s3785_s7 = inlined_call_operand.hbm [shape: bf16[512,128], index: 7, kind: input, shape index: {}]   ;;  %s3786_s8 = inlined_call_operand.<no memory space> [shape: f32[1], index: 8, kind: input, shape index: {}]   ;;  %s3787_s9 = inlined_call_operand.hbm [shape: f32[1,1,16], index: 9, kind: output, shape index: {}]  }
   0x1   :  { %16 = vsyncpa [#allocation7], 0 }
   0x2   :  { %17 = vsyncpa [#allocation5], 0  ;;  %s3560_s30 = smov [#allocation6]   ;;  %s3561_s11 = smov [#allocation3]  }
   0x3   :  { %s43_s10 = sshll.u32 %s3560_s30, 4  ;;  %s29_s12 = sshll.u32 %s3561_s11, 4  ;;  %s44_s10 = int_to_ptr.vmem [resolvable:$true] %s43_s10  ;;  %s3620_s12 = int_to_ptr.vmem [resolvable:$true] %s29_s12 }
   0x4   :  { %s3466_s15 = scalar_lea.hbm %s3783_s5, 16384 }
   0x5   :  { %p3467_p0 = scmp.ne.s32.totalorder %s3783_s5, %s3466_s15  ;;  %p3470_p1 = scmp.lt.u32.totalorder %s3466_s15, %s3783_s5 }
   0x7   :  { %p3472_p2 = pnand %p3470_p1, %p3467_p0 }
   0x9   :  { %3475 = shalt.err (!%p3472_p2)
}
   0xa   :  { %s3476_s20 = scalar_lea.vmem %s44_s10, 16384  ;;  %p3481_p4 = scmp.lt.s32.totalorder %s44_s10, %s44_s10 }
   0xb   :  { %p3477_p3 = scmp.ne.s32.totalorder %s44_s10, %s3476_s20  ;;  %p3482_p5 = scmp.lt.s32.totalorder %s3476_s20, %s3476_s20 }
   0xd   :  { %p3483_p6 = por %p3482_p5, %p3481_p4 }
   0xf   :  { %p3484_p7 = pnand %p3483_p6, %p3477_p3 }
  0x11   :  { %3487 = shalt.err (!%p3484_p7)
}
  0x12   :  { %s3562_s21 = smov 256   ;;  %s3563_s22 = smov 16  }
  0x13   :  { %49 = dma.hbm_to_vmem [thread:$0]  %s3783_s5, 16384, %s44_s10, [#allocation7], %s3562_s21, %s3562_s21, %s3563_s22  }
  0x14   :  { %s3488_s27 = scalar_lea.hbm %s3781_s3, 16384 }
  0x15   :  { %p3489_p8 = scmp.ne.s32.totalorder %s3781_s3, %s3488_s27  ;;  %p3492_p9 = scmp.lt.u32.totalorder %s3488_s27, %s3781_s3 }
  0x17   :  { %p3494_p10 = pnand %p3492_p9, %p3489_p8 }
  0x19   :  { %3497 = shalt.err (!%p3494_p10)
}
  0x1a   :  { %s3498_s13 = scalar_lea.vmem %s3620_s12, 16384  ;;  %p3503_p12 = scmp.lt.s32.totalorder %s3620_s12, %s3620_s12 }
  0x1b   :  { %p3499_p11 = scmp.ne.s32.totalorder %s3620_s12, %s3498_s13  ;;  %p3504_p13 = scmp.lt.s32.totalorder %s3498_s13, %s3498_s13 }
  0x1d   :  { %p3505_p0 = por %p3504_p13, %p3503_p12 }
  0x1f   :  { %p3506_p1 = pnand %p3505_p0, %p3499_p11 }
  0x21   :  { %3509 = shalt.err (!%p3506_p1)
}
  0x22   :  { %35 = dma.hbm_to_vmem [thread:$0]  %s3781_s3, 16384, %s3620_s12, [#allocation4], %s3562_s21, %s3562_s21, %s3563_s22  }
  0x23   :  { %s3564_s14 = smov [#allocation8]   ;;  %s3510_s18 = scalar_lea.hbm %s3785_s7, 4096 }
  0x24   :  { %s57_s15 = sshll.u32 %s3564_s14, 4  ;;  %p3511_p2 = scmp.ne.s32.totalorder %s3785_s7, %s3510_s18  ;;  %s58_s15 = int_to_ptr.vmem [resolvable:$true] %s57_s15 }
  0x25   :  { %p3514_p3 = scmp.lt.u32.totalorder %s3510_s18, %s3785_s7 }
  0x27   :  { %p3516_p4 = pnand %p3514_p3, %p3511_p2 }
  0x29   :  { %3519 = shalt.err (!%p3516_p4)
}
  0x2a   :  { %s3520_s25 = scalar_lea.vmem %s58_s15, 4096  ;;  %p3525_p6 = scmp.lt.s32.totalorder %s58_s15, %s58_s15 }
  0x2b   :  { %p3521_p5 = scmp.ne.s32.totalorder %s58_s15, %s3520_s25  ;;  %p3526_p7 = scmp.lt.s32.totalorder %s3520_s25, %s3520_s25 }
  0x2d   :  { %p3527_p8 = por %p3526_p7, %p3525_p6 }
  0x2f   :  { %p3528_p9 = pnand %p3527_p8, %p3521_p5 }
  0x31   :  { %3531 = shalt.err (!%p3528_p9)
}
  0x32   :  { %s3565_s3 = smov 64   ;;  %s3566_s12 = smov 4  }
  0x33   :  { %63 = dma.hbm_to_vmem [thread:$0]  %s3785_s7, 4096, %s58_s15, [#allocation7], %s3565_s3, %s3565_s3, %s3566_s12  }
  0x34   :  { %3554 = dma.done.wait [#allocation4], 16384  }
  0x35   :  { %3555 = vsyncadd [#allocation4], 4294950912 }
  0x36   :  { %3556 = dma.done.wait [#allocation7], 20480  }
  0x37   :  { %3557 = vsyncadd [#allocation7], 4294946816  ;;  %v3567_v0 = vmov 0   ;;  %v3035_v1 = vld [vmem:[%s3779_s1 + $0x4] ss:$16 sps:$4 sm:$0xff]   ;;  %vm107_vm0 = vcmask 130048  }
  0x38   :  { %143 = vmatprep.mubr.bf16.mxu0 %v3567_v0  ;;  %186 = vmatprep.mubr.bf16.mxu1 %v3567_v0  ;;  %v3037_v2 = vld [vmem:[%s3779_s1] ss:$16 sps:$4 sm:$0xff]   ;;  %v3039_v4 = vld [vmem:[%s3779_s1 + $0xc] ss:$16 sps:$4 sm:$0xff]   ;;  %v3041_v5 = vld [vmem:[%s3779_s1 + $0x8] ss:$16 sps:$4 sm:$0xff]  }
  0x39   :  { %111 = vmatprep.subr.bf16.mxu0 %v3035_v1  ;;  %v3038_v3 = vld [vmem:[%s3778_s0] sm:$0xff]   ;;  %154 = vmatprep.subr.bf16.mxu1 %v3039_v4  ;;  %v3045_v8 = vld [vmem:[#allocation3 + $0x8] ss:$16 sps:$4 sm:$0xff]   ;;  %v3047_v9 = vld [vmem:[#allocation3 + $0xc] ss:$16 sps:$4 sm:$0xff]   ;;  %vm2646_vm1 = vcmask 130112  }
  0x3a   :  { %112 = vmatpush1.bf16.msra.mxu0 %v3037_v2  ;;  %v3042_v6 = vld [vmem:[#allocation3] ss:$16 sps:$4 sm:$0xff]   ;;  %v3044_v7 = vld [vmem:[#allocation3 + $0x4] ss:$16 sps:$4 sm:$0xff]   ;;  %155 = vmatpush1.bf16.msra.mxu1 %v3041_v5  ;;  %v3053_v12 = vld [vmem:[#allocation3 + $0x2c] ss:$16 sps:$4 sm:$0xff]  }
  0x3b   :  { %1031 = vmatprep.subr.bf16.mxu0 %v3044_v7  ;;  %v3050_v10 = vld [vmem:[#allocation3 + $0x24] ss:$16 sps:$4 sm:$0xff]   ;;  %1117 = vmatprep.subr.bf16.mxu1 %v3047_v9  ;;  %v3048_v11 = vld [vmem:[#allocation3 + $0x20] ss:$16 sps:$4 sm:$0xff]   ;;  %v3051_v13 = vld [vmem:[#allocation3 + $0x28] ss:$16 sps:$4 sm:$0xff]  }
  0x3c   :  { %v3056_v14 = vld [vmem:[#allocation3 + $0x44] ss:$16 sps:$4 sm:$0xff]   ;;  %v3059_v15 = vld [vmem:[#allocation3 + $0x4c] ss:$16 sps:$4 sm:$0xff]   ;;  %v3054_v16 = vld [vmem:[#allocation3 + $0x40] ss:$16 sps:$4 sm:$0xff]  }
  0x3d   :  { %2672 = vmatmul.mubr.msk.bf16.vlgmr.msra.gmra.mrb[0].mxu0 %vm107_vm0, %v3038_v3  ;;  %2673 = vmatmul.mubr.msk.bf16.vlgmr.msra.gmra.mrb[0].mxu1 %vm107_vm0, %v3038_v3  ;;  %v3062_v17 = vld [vmem:[#allocation3 + $0x64] ss:$16 sps:$4 sm:$0xff]   ;;  %v3057_v18 = vld [vmem:[#allocation3 + $0x48] ss:$16 sps:$4 sm:$0xff]   ;;  %v3065_v19 = vld [vmem:[#allocation3 + $0x6c] ss:$16 sps:$4 sm:$0xff]  }
  0x3e   :  { %1032 = vmatpush1.bf16.msra.mxu0 %v3042_v6  ;;  %1118 = vmatpush1.bf16.msra.mxu1 %v3045_v8  ;;  %v3060_v20 = vld [vmem:[#allocation3 + $0x60] ss:$16 sps:$4 sm:$0xff]   ;;  %v3068_v21 = vld [vmem:[#allocation3 + $0x84] ss:$16 sps:$4 sm:$0xff]   ;;  %v3063_v22 = vld [vmem:[#allocation3 + $0x68] ss:$16 sps:$4 sm:$0xff]  }
  0x3f   :  { %1033 = vmatprep.subr.bf16.mxu0 %v3050_v10  ;;  %1119 = vmatprep.subr.bf16.mxu1 %v3053_v12  ;;  %v3071_v23 = vld [vmem:[#allocation3 + $0x8c] ss:$16 sps:$4 sm:$0xff]   ;;  %v3066_v24 = vld [vmem:[#allocation3 + $0x80] ss:$16 sps:$4 sm:$0xff]   ;;  %v3074_v25 = vld [vmem:[#allocation3 + $0xa4] ss:$16 sps:$4 sm:$0xff]  }
  0x40   :  { %v3069_v26 = vld [vmem:[#allocation3 + $0x88] ss:$16 sps:$4 sm:$0xff]   ;;  %v3077_v27 = vld [vmem:[#allocation3 + $0xac] ss:$16 sps:$4 sm:$0xff]   ;;  %v3072_v28 = vld [vmem:[#allocation3 + $0xa0] ss:$16 sps:$4 sm:$0xff]  }
  0x41   :  { %v3080_v29 = vld [vmem:[#allocation3 + $0xc4] ss:$16 sps:$4 sm:$0xff]   ;;  %v3075_v30 = vld [vmem:[#allocation3 + $0xa8] ss:$16 sps:$4 sm:$0xff]   ;;  %v3083_v31 = vld [vmem:[#allocation3 + $0xcc] ss:$16 sps:$4 sm:$0xff]  }
  0x42   :  { %1034 = vmatpush1.bf16.msra.mxu0 %v3048_v11  ;;  %1120 = vmatpush1.bf16.msra.mxu1 %v3051_v13  ;;  %v3078_v32 = vld [vmem:[#allocation3 + $0xc0] ss:$16 sps:$4 sm:$0xff]   ;;  %v3086_v33 = vld [vmem:[#allocation3 + $0xe4] ss:$16 sps:$4 sm:$0xff]   ;;  %v3081_v34 = vld [vmem:[#allocation3 + $0xc8] ss:$16 sps:$4 sm:$0xff]   ;;  %v214_v11 = vlaneseq }
  0x43   :  { %1035 = vmatprep.subr.bf16.mxu0 %v3056_v14  ;;  %1121 = vmatprep.subr.bf16.mxu1 %v3059_v15  ;;  %v3089_v35 = vld [vmem:[#allocation3 + $0xec] ss:$16 sps:$4 sm:$0xff]   ;;  %v3084_v36 = vld [vmem:[#allocation3 + $0xe0] ss:$16 sps:$4 sm:$0xff]   ;;  %v3092_v37 = vld [vmem:[#allocation3 + $0x104] ss:$16 sps:$4 sm:$0xff]  }
  0x44   :  { %v3087_v38 = vld [vmem:[#allocation3 + $0xe8] ss:$16 sps:$4 sm:$0xff]   ;;  %v3095_v39 = vld [vmem:[#allocation3 + $0x10c] ss:$16 sps:$4 sm:$0xff]   ;;  %v3090_v40 = vld [vmem:[#allocation3 + $0x100] ss:$16 sps:$4 sm:$0xff]  }
  0x45   :  { %v3098_v41 = vld [vmem:[#allocation3 + $0x124] ss:$16 sps:$4 sm:$0xff]   ;;  %v3093_v42 = vld [vmem:[#allocation3 + $0x108] ss:$16 sps:$4 sm:$0xff]   ;;  %v3096_v43 = vld [vmem:[#allocation3 + $0x120] ss:$16 sps:$4 sm:$0xff]  }
  0x46   :  { %1036 = vmatpush1.bf16.msra.mxu0 %v3054_v16  ;;  %1122 = vmatpush1.bf16.msra.mxu1 %v3057_v18  ;;  %v3101_v44 = vld [vmem:[#allocation3 + $0x12c] ss:$16 sps:$4 sm:$0xff]   ;;  %v3099_v45 = vld [vmem:[#allocation3 + $0x128] ss:$16 sps:$4 sm:$0xff]   ;;  %v3104_v46 = vld [vmem:[#allocation3 + $0x144] ss:$16 sps:$4 sm:$0xff]  }
  0x47   :  { %1037 = vmatprep.subr.bf16.mxu0 %v3062_v17  ;;  %1123 = vmatprep.subr.bf16.mxu1 %v3065_v19  ;;  %v3107_v47 = vld [vmem:[#allocation3 + $0x14c] ss:$16 sps:$4 sm:$0xff]   ;;  %v3102_v48 = vld [vmem:[#allocation3 + $0x140] ss:$16 sps:$4 sm:$0xff]   ;;  %v3110_v49 = vld [vmem:[#allocation3 + $0x164] ss:$16 sps:$4 sm:$0xff]  }
  0x48   :  { %v3105_v50 = vld [vmem:[#allocation3 + $0x148] ss:$16 sps:$4 sm:$0xff]   ;;  %v3113_v51 = vld [vmem:[#allocation3 + $0x16c] ss:$16 sps:$4 sm:$0xff]   ;;  %v3108_v52 = vld [vmem:[#allocation3 + $0x160] ss:$16 sps:$4 sm:$0xff]  }
  0x49   :  { %v3116_v53 = vld [vmem:[#allocation3 + $0x184] ss:$16 sps:$4 sm:$0xff]   ;;  %v3111_v54 = vld [vmem:[#allocation3 + $0x168] ss:$16 sps:$4 sm:$0xff]   ;;  %v3119_v55 = vld [vmem:[#allocation3 + $0x18c] ss:$16 sps:$4 sm:$0xff]  }
  0x4a   :  { %1038 = vmatpush1.bf16.msra.mxu0 %v3060_v20  ;;  %1124 = vmatpush1.bf16.msra.mxu1 %v3063_v22  ;;  %v3114_v56 = vld [vmem:[#allocation3 + $0x180] ss:$16 sps:$4 sm:$0xff]   ;;  %v3122_v57 = vld [vmem:[#allocation3 + $0x1a4] ss:$16 sps:$4 sm:$0xff]   ;;  %v3117_v58 = vld [vmem:[#allocation3 + $0x188] ss:$16 sps:$4 sm:$0xff]  }
  0x4b   :  { %1039 = vmatprep.subr.bf16.mxu0 %v3068_v21  ;;  %1125 = vmatprep.subr.bf16.mxu1 %v3071_v23  ;;  %v3125_v59 = vld [vmem:[#allocation3 + $0x1ac] ss:$16 sps:$4 sm:$0xff]   ;;  %v3120_v60 = vld [vmem:[#allocation3 + $0x1a0] ss:$16 sps:$4 sm:$0xff]   ;;  %v3123_v61 = vld [vmem:[#allocation3 + $0x1a8] ss:$16 sps:$4 sm:$0xff]  }
  0x4c   :  { %v3128_v62 = vld [vmem:[#allocation3 + $0x1c4] ss:$16 sps:$4 sm:$0xff]   ;;  %v3131_v63 = vld [vmem:[#allocation3 + $0x1cc] ss:$16 sps:$4 sm:$0xff]   ;;  %v3126_v1 = vld [vmem:[#allocation3 + $0x1c0] ss:$16 sps:$4 sm:$0xff]  }
  0x4d   :  { %v3129_v2 = vld [vmem:[#allocation3 + $0x1c8] ss:$16 sps:$4 sm:$0xff]   ;;  %v3134_v3 = vld [vmem:[#allocation3 + $0x1e4] ss:$16 sps:$4 sm:$0xff]   ;;  %v3137_v4 = vld [vmem:[#allocation3 + $0x1ec] ss:$16 sps:$4 sm:$0xff]  }
  0x4e   :  { %1040 = vmatpush1.bf16.msra.mxu0 %v3066_v24  ;;  %1126 = vmatpush1.bf16.msra.mxu1 %v3069_v26  ;;  %v3132_v5 = vld [vmem:[#allocation3 + $0x1e0] ss:$16 sps:$4 sm:$0xff]   ;;  %v3135_v6 = vld [vmem:[#allocation3 + $0x1e8] ss:$16 sps:$4 sm:$0xff]   ;;  %v3140_v7 = vld [vmem:[#allocation3 + $0x204] ss:$16 sps:$4 sm:$0xff]  }
  0x4f   :  { %1041 = vmatprep.subr.bf16.mxu0 %v3074_v25  ;;  %1127 = vmatprep.subr.bf16.mxu1 %v3077_v27  ;;  %v3143_v8 = vld [vmem:[#allocation3 + $0x20c] ss:$16 sps:$4 sm:$0xff]   ;;  %v3568_v9 = vmov 1966171168   ;;  %v3683_v13 = vshrl.u32 %v214_v11, 7  ;;  %vm2649_vm2 = vcmask 122880  }
  0x50   :  { %v212_v10 = vunpack.c.l.s4 %v3568_v9  ;;  %v2674_v14 = vld.sshfl [vmem:[%s3780_s2] sm:$0x33 pattern:$0x75316420]  ;;  %v3185_v9 = vld [vmem:[#allocation3 + $0x2ec] ss:$16 sps:$4 sm:$0xff]  }
  0x51   :  { %v210_v16 = vcombine.high %v2674_v14, %v2674_v14  ;;  %v3698_v20 = vsub.s32 0, %v3683_v13 }
  0x52   :  { %1042 = vmatpush1.bf16.msra.mxu0 %v3072_v28  ;;  %1128 = vmatpush1.bf16.msra.mxu1 %v3075_v30  ;;  %v213_v12 = vunpack.c.0.s8 %v212_v10  ;;  %v3180_v10 = vld [vmem:[#allocation3 + $0x2e0] ss:$16 sps:$4 sm:$0xff]  }
  0x53   :  { %1043 = vmatprep.subr.bf16.mxu0 %v3080_v29  ;;  %1129 = vmatprep.subr.bf16.mxu1 %v3083_v31 }
  0x54   :  { %v3689_v15 = vsub.s32 %v213_v12, %v3683_v13  ;;  %v3183_v12 = vld [vmem:[#allocation3 + $0x2e8] ss:$16 sps:$4 sm:$0xff]  }
  0x56   :  { %1044 = vmatpush1.bf16.msra.mxu0 %v3078_v32  ;;  %1130 = vmatpush1.bf16.msra.mxu1 %v3081_v34  ;;  %v3692_v17 = vrot.slane %v2674_v14, %v3689_v15  ;;  %v224_v18 = vrot.slane %v210_v16, %v3689_v15  ;;  %v3188_v14 = vld [vmem:[#allocation3 + $0x304] ss:$16 sps:$4 sm:$0xff]   ;;  %v3191_v16 = vld [vmem:[#allocation3 + $0x30c] ss:$16 sps:$4 sm:$0xff]  }
  0x57   :  { %1045 = vmatprep.subr.bf16.mxu0 %v3086_v33  ;;  %1131 = vmatprep.subr.bf16.mxu1 %v3089_v35 }
  0x58   :  { %v228_v19 = vpack.i.b16 %v3692_v17, %v3692_v17  ;;  %v226_v21 = vcombine.high %v224_v18, %v224_v18  ;;  %v235_v22 = vpack.i.b16 %v224_v18, %v224_v18  ;;  %v3186_v18 = vld [vmem:[#allocation3 + $0x300] ss:$16 sps:$4 sm:$0xff]  }
  0x5a   :  { %1046 = vmatpush1.bf16.msra.mxu0 %v3084_v36  ;;  %1132 = vmatpush1.bf16.msra.mxu1 %v3087_v38  ;;  %v233_v25 = vrot.slane %v228_v19, %v3698_v20  ;;  %v249_v26 = vpack.i.b16 %v226_v21, %v226_v21  ;;  %v240_v28 = vrot.slane %v235_v22, %v3698_v20  ;;  %v3189_v19 = vld [vmem:[#allocation3 + $0x308] ss:$16 sps:$4 sm:$0xff]   ;;  %v3194_v21 = vld [vmem:[#allocation3 + $0x324] ss:$16 sps:$4 sm:$0xff]   ;;  %v3197_v22 = vld [vmem:[#allocation3 + $0x32c] ss:$16 sps:$4 sm:$0xff]  }
  0x5b   :  { %1047 = vmatprep.subr.bf16.mxu0 %v3092_v37  ;;  %1133 = vmatprep.subr.bf16.mxu1 %v3095_v39 }
  0x5c   :  { %v254_v36 = vrot.slane %v249_v26, %v3698_v20  ;;  %v3203_v26 = vld [vmem:[#allocation3 + $0x34c] ss:$16 sps:$4 sm:$0xff]  }
  0x5e   :  { %1048 = vmatpush1.bf16.msra.mxu0 %v3090_v40  ;;  %1134 = vmatpush1.bf16.msra.mxu1 %v3093_v42  ;;  %v3138_v42 = vld [vmem:[#allocation3 + $0x200] ss:$16 sps:$4 sm:$0xff]  }
  0x5f   :  { %1049 = vmatprep.subr.bf16.mxu0 %v3098_v41  ;;  %1135 = vmatprep.subr.bf16.mxu1 %v3101_v44 }
  0x62   :  { %1050 = vmatpush1.bf16.msra.mxu0 %v3096_v43  ;;  %1136 = vmatpush1.bf16.msra.mxu1 %v3099_v45  ;;  %v3141_v43 = vld [vmem:[#allocation3 + $0x208] ss:$16 sps:$4 sm:$0xff]   ;;  %v3146_v45 = vld [vmem:[#allocation3 + $0x224] ss:$16 sps:$4 sm:$0xff]  }
  0x63   :  { %1051 = vmatprep.subr.bf16.mxu0 %v3104_v46  ;;  %1137 = vmatprep.subr.bf16.mxu1 %v3107_v47  ;;  %v3149_v46 = vld [vmem:[#allocation3 + $0x22c] ss:$16 sps:$4 sm:$0xff]  }
  0x66   :  { %1052 = vmatpush1.bf16.msra.mxu0 %v3102_v48  ;;  %1138 = vmatpush1.bf16.msra.mxu1 %v3105_v50  ;;  %v3147_v50 = vld [vmem:[#allocation3 + $0x228] ss:$16 sps:$4 sm:$0xff]  }
  0x67   :  { %1053 = vmatprep.subr.bf16.mxu0 %v3110_v49  ;;  %1139 = vmatprep.subr.bf16.mxu1 %v3113_v51  ;;  %v3144_v49 = vld [vmem:[#allocation3 + $0x220] ss:$16 sps:$4 sm:$0xff]   ;;  %v3152_v51 = vld [vmem:[#allocation3 + $0x244] ss:$16 sps:$4 sm:$0xff]  }
  0x6a   :  { %1054 = vmatpush1.bf16.msra.mxu0 %v3108_v52  ;;  %1140 = vmatpush1.bf16.msra.mxu1 %v3111_v54  ;;  %v3155_v52 = vld [vmem:[#allocation3 + $0x24c] ss:$16 sps:$4 sm:$0xff]   ;;  %v3153_v54 = vld [vmem:[#allocation3 + $0x248] ss:$16 sps:$4 sm:$0xff]  }
  0x6b   :  { %1055 = vmatprep.subr.bf16.mxu0 %v3116_v53  ;;  %1141 = vmatprep.subr.bf16.mxu1 %v3119_v55  ;;  %v3150_v53 = vld [vmem:[#allocation3 + $0x240] ss:$16 sps:$4 sm:$0xff]   ;;  %v3158_v55 = vld [vmem:[#allocation3 + $0x264] ss:$16 sps:$4 sm:$0xff]  }
  0x6e   :  { %1056 = vmatpush1.bf16.msra.mxu0 %v3114_v56  ;;  %1142 = vmatpush1.bf16.msra.mxu1 %v3117_v58  ;;  %v3161_v56 = vld [vmem:[#allocation3 + $0x26c] ss:$16 sps:$4 sm:$0xff]   ;;  %v3159_v58 = vld [vmem:[#allocation3 + $0x268] ss:$16 sps:$4 sm:$0xff]  }
  0x6f   :  { %1057 = vmatprep.subr.bf16.mxu0 %v3122_v57  ;;  %1143 = vmatprep.subr.bf16.mxu1 %v3125_v59  ;;  %v3156_v57 = vld [vmem:[#allocation3 + $0x260] ss:$16 sps:$4 sm:$0xff]   ;;  %v3164_v59 = vld [vmem:[#allocation3 + $0x284] ss:$16 sps:$4 sm:$0xff]  }
  0x72   :  { %1058 = vmatpush1.bf16.msra.mxu0 %v3120_v60  ;;  %1144 = vmatpush1.bf16.msra.mxu1 %v3123_v61  ;;  %v3167_v60 = vld [vmem:[#allocation3 + $0x28c] ss:$16 sps:$4 sm:$0xff]   ;;  %v3162_v61 = vld [vmem:[#allocation3 + $0x280] ss:$16 sps:$4 sm:$0xff]  }
  0x73   :  { %1059 = vmatprep.subr.bf16.mxu0 %v3128_v62  ;;  %1145 = vmatprep.subr.bf16.mxu1 %v3131_v63  ;;  %v3165_v62 = vld [vmem:[#allocation3 + $0x288] ss:$16 sps:$4 sm:$0xff]   ;;  %v3170_v63 = vld [vmem:[#allocation3 + $0x2a4] ss:$16 sps:$4 sm:$0xff]  }
  0x76   :  { %1060 = vmatpush1.bf16.msra.mxu0 %v3126_v1  ;;  %1146 = vmatpush1.bf16.msra.mxu1 %v3129_v2  ;;  %v3173_v1 = vld [vmem:[#allocation3 + $0x2ac] ss:$16 sps:$4 sm:$0xff]   ;;  %v3168_v2 = vld [vmem:[#allocation3 + $0x2a0] ss:$16 sps:$4 sm:$0xff]  }
  0x77   :  { %1061 = vmatprep.subr.bf16.mxu0 %v3134_v3  ;;  %1147 = vmatprep.subr.bf16.mxu1 %v3137_v4  ;;  %v3171_v3 = vld [vmem:[#allocation3 + $0x2a8] ss:$16 sps:$4 sm:$0xff]   ;;  %v3176_v4 = vld [vmem:[#allocation3 + $0x2c4] ss:$16 sps:$4 sm:$0xff]  }
  0x7a   :  { %1062 = vmatpush1.bf16.msra.mxu0 %v3132_v5  ;;  %1148 = vmatpush1.bf16.msra.mxu1 %v3135_v6  ;;  %v3179_v5 = vld [vmem:[#allocation3 + $0x2cc] ss:$16 sps:$4 sm:$0xff]   ;;  %v3174_v6 = vld [vmem:[#allocation3 + $0x2c0] ss:$16 sps:$4 sm:$0xff]  }
  0x7b   :  { %1074 = vmatprep.subr.bf16.mxu0 %v3140_v7  ;;  %1160 = vmatprep.subr.bf16.mxu1 %v3143_v8  ;;  %v3177_v7 = vld [vmem:[#allocation3 + $0x2c8] ss:$16 sps:$4 sm:$0xff]   ;;  %v3182_v8 = vld [vmem:[#allocation3 + $0x2e4] ss:$16 sps:$4 sm:$0xff]  }
 0x110   :  { %v145_v23 = vpop.f32.mrb[0].mxu0  ;;  %v3702_v31 = vpop.f32.mrb[0].mxu1 }
 0x111   :  { %v147_v24 = vpop.f32.mrb[1].mxu0  ;;  %v190_v33 = vpop.f32.mrb[1].mxu1 }
 0x112   :  { %v149_v27 = vpop.f32.mrb[2].mxu0  ;;  %v3704_v35 = vpop.f32.mrb[2].mxu1 }
 0x113   :  { %v197_v29 = vpack.c.bf16 %v149_v27, %v145_v23  ;;  %v151_v30 = vpop.f32.mrb[3].mxu0  ;;  %v199_v38 = vpack.c.bf16 %v3704_v35, %v3702_v31  ;;  %v194_v39 = vpop.f32.mrb[3].mxu1  ;;  %v3192_v23 = vld [vmem:[#allocation3 + $0x320] ss:$16 sps:$4 sm:$0xff]   ;;  %v3243_v35 = vld [vmem:[#allocation6 + $0x28] ss:$16 sps:$4 sm:$0xff]  }
 0x114   :  { %v198_v32 = vpack.c.bf16 %v151_v30, %v147_v24  ;;  %v200_v40 = vpack.c.bf16 %v194_v39, %v190_v33  ;;  %v3195_v24 = vld [vmem:[#allocation3 + $0x328] ss:$16 sps:$4 sm:$0xff]   ;;  %v3198_v27 = vld [vmem:[#allocation3 + $0x340] ss:$16 sps:$4 sm:$0xff]   ;;  %v3209_v30 = vld [vmem:[#allocation3 + $0x36c] ss:$16 sps:$4 sm:$0xff]  }
 0x115   :  { %v255_v34 = vadd.bf16 %v233_v25, %v197_v29  ;;  %v3200_v25 = vld [vmem:[#allocation3 + $0x344] ss:$16 sps:$4 sm:$0xff]   ;;  %v3207_v33 = vld [vmem:[#allocation3 + $0x368] ss:$16 sps:$4 sm:$0xff]   ;;  %v3240_v31 = vld [vmem:[#allocation6 + $0x20] ss:$16 sps:$4 sm:$0xff]  }
 0x116   :  { %v256_v37 = vadd.bf16 %v240_v28, %v198_v32  ;;  %v258_v47 = vadd.bf16 %v254_v36, %v200_v40  ;;  %v3201_v28 = vld [vmem:[#allocation3 + $0x348] ss:$16 sps:$4 sm:$0xff]   ;;  %v3206_v29 = vld [vmem:[#allocation3 + $0x364] ss:$16 sps:$4 sm:$0xff]   ;;  %v3204_v32 = vld [vmem:[#allocation3 + $0x360] ss:$16 sps:$4 sm:$0xff]   ;;  %v225_v40 = vcombine.high %v3692_v17, %v3692_v17 }
 0x117   :  { %v259_v44 = vmax.bf16 %v3567_v0, %v255_v34  ;;  %v3212_v34 = vld [vmem:[#allocation3 + $0x384] ss:$16 sps:$4 sm:$0xff]   ;;  %v3215_v36 = vld [vmem:[#allocation3 + $0x38c] ss:$16 sps:$4 sm:$0xff]   ;;  %v3213_v39 = vld [vmem:[#allocation3 + $0x388] ss:$16 sps:$4 sm:$0xff]  }
 0x118   :  { %v260_v41 = vmax.bf16 %v3567_v0, %v256_v37  ;;  %v262_v48 = vmax.bf16 %v3567_v0, %v258_v47  ;;  %v3210_v37 = vld [vmem:[#allocation3 + $0x380] ss:$16 sps:$4 sm:$0xff]   ;;  %v3227_v47 = vld [vmem:[#allocation3 + $0x3cc] ss:$16 sps:$4 sm:$0xff]   ;;  %v3230_v17 = vld [vmem:[#allocation3 + $0x3e4] ss:$16 sps:$4 sm:$0xff]  }
 0x11a   :  { %1063 = vmatprep.mubr.bf16.mxu0 %v260_v41  ;;  %1149 = vmatprep.mubr.bf16.mxu1 %v260_v41  ;;  %v3218_v41 = vld [vmem:[#allocation3 + $0x3a4] ss:$16 sps:$4 sm:$0xff]  }
 0x11b   :  { %1064 = vmatmul.mubr.bf16.vlgmr.msra.gmra.mrb[4].mxu0 %v259_v44  ;;  %1150 = vmatmul.mubr.bf16.vlgmr.msra.gmra.mrb[4].mxu1 %v259_v44  ;;  %v3219_v44 = vld [vmem:[#allocation3 + $0x3a8] ss:$16 sps:$4 sm:$0xff]  }
 0x11c   :  { %1075 = vmatpush1.bf16.msra.mxu0 %v3138_v42  ;;  %1161 = vmatpush1.bf16.msra.mxu1 %v3141_v43  ;;  %v3221_v42 = vld [vmem:[#allocation3 + $0x3ac] ss:$16 sps:$4 sm:$0xff]   ;;  %v3216_v43 = vld [vmem:[#allocation3 + $0x3a0] ss:$16 sps:$4 sm:$0xff]  }
 0x11d   :  { %1076 = vmatprep.subr.bf16.mxu0 %v3146_v45  ;;  %1162 = vmatprep.subr.bf16.mxu1 %v3149_v46  ;;  %v242_v45 = vpack.i.b16 %v225_v40, %v225_v40  ;;  %v3224_v46 = vld [vmem:[#allocation3 + $0x3c4] ss:$16 sps:$4 sm:$0xff]   ;;  %v3294_v40 = vld [vmem:[#allocation6 + $0x140] ss:$16 sps:$4 sm:$0xff]  }
 0x11e   :  { %1106 = vmatprep.mubr.bf16.mxu0 %v262_v48  ;;  %1192 = vmatprep.mubr.bf16.mxu1 %v262_v48  ;;  %v3222_v48 = vld [vmem:[#allocation3 + $0x3c0] ss:$16 sps:$4 sm:$0xff]  }
 0x120   :  { %1077 = vmatpush1.bf16.msra.mxu0 %v3144_v49  ;;  %1163 = vmatpush1.bf16.msra.mxu1 %v3147_v50  ;;  %v3225_v49 = vld [vmem:[#allocation3 + $0x3c8] ss:$16 sps:$4 sm:$0xff]   ;;  %v247_v50 = vrot.slane %v242_v45, %v3698_v20 }
 0x121   :  { %1078 = vmatprep.subr.bf16.mxu0 %v3152_v51  ;;  %1164 = vmatprep.subr.bf16.mxu1 %v3155_v52  ;;  %v3233_v51 = vld [vmem:[#allocation3 + $0x3ec] ss:$16 sps:$4 sm:$0xff]   ;;  %v3228_v52 = vld [vmem:[#allocation3 + $0x3e0] ss:$16 sps:$4 sm:$0xff]   ;;  %v3303_v45 = vld [vmem:[#allocation6 + $0x168] ss:$16 sps:$4 sm:$0xff]  }
 0x124   :  { %1079 = vmatpush1.bf16.msra.mxu0 %v3150_v53  ;;  %1165 = vmatpush1.bf16.msra.mxu1 %v3153_v54  ;;  %v3231_v53 = vld [vmem:[#allocation3 + $0x3e8] ss:$16 sps:$4 sm:$0xff]   ;;  %v257_v54 = vadd.bf16 %v247_v50, %v199_v38  ;;  %v3248_v38 = vld [vmem:[#allocation6 + $0x44] ss:$16 sps:$4 sm:$0xff]  }
 0x125   :  { %1080 = vmatprep.subr.bf16.mxu0 %v3158_v55  ;;  %1166 = vmatprep.subr.bf16.mxu1 %v3161_v56  ;;  %v3236_v55 = vld [vmem:[#allocation6 + $0x4] ss:$16 sps:$4 sm:$0xff]   ;;  %v3239_v56 = vld [vmem:[#allocation6 + $0xc] ss:$16 sps:$4 sm:$0xff]  }
 0x126   :  { %v3314_v50 = vld [vmem:[#allocation6 + $0x1a4] ss:$16 sps:$4 sm:$0xff]  }
 0x128   :  { %1081 = vmatpush1.bf16.msra.mxu0 %v3156_v57  ;;  %1167 = vmatpush1.bf16.msra.mxu1 %v3159_v58  ;;  %v3234_v57 = vld [vmem:[#allocation6] ss:$16 sps:$4 sm:$0xff]   ;;  %v3237_v58 = vld [vmem:[#allocation6 + $0x8] ss:$16 sps:$4 sm:$0xff]  }
 0x129   :  { %1082 = vmatprep.subr.bf16.mxu0 %v3164_v59  ;;  %1168 = vmatprep.subr.bf16.mxu1 %v3167_v60  ;;  %v261_v59 = vmax.bf16 %v3567_v0, %v257_v54  ;;  %v3242_v60 = vld [vmem:[#allocation6 + $0x24] ss:$16 sps:$4 sm:$0xff]   ;;  %v3323_v54 = vld [vmem:[#allocation6 + $0x1cc] ss:$16 sps:$4 sm:$0xff]  }
 0x12c   :  { %1083 = vmatpush1.bf16.msra.mxu0 %v3162_v61  ;;  %1169 = vmatpush1.bf16.msra.mxu1 %v3165_v62  ;;  %v3245_v61 = vld [vmem:[#allocation6 + $0x2c] ss:$16 sps:$4 sm:$0xff]  }
 0x12d   :  { %1084 = vmatprep.subr.bf16.mxu0 %v3170_v63  ;;  %1170 = vmatprep.subr.bf16.mxu1 %v3173_v1  ;;  %v3251_v62 = vld [vmem:[#allocation6 + $0x4c] ss:$16 sps:$4 sm:$0xff]   ;;  %v3246_v63 = vld [vmem:[#allocation6 + $0x40] ss:$16 sps:$4 sm:$0xff]   ;;  %v3249_v1 = vld [vmem:[#allocation6 + $0x48] ss:$16 sps:$4 sm:$0xff]  }
 0x130   :  { %1085 = vmatpush1.bf16.msra.mxu0 %v3168_v2  ;;  %1171 = vmatpush1.bf16.msra.mxu1 %v3171_v3  ;;  %v3254_v2 = vld [vmem:[#allocation6 + $0x64] ss:$16 sps:$4 sm:$0xff]   ;;  %v3257_v3 = vld [vmem:[#allocation6 + $0x6c] ss:$16 sps:$4 sm:$0xff]  }
 0x131   :  { %1086 = vmatprep.subr.bf16.mxu0 %v3176_v4  ;;  %1172 = vmatprep.subr.bf16.mxu1 %v3179_v5  ;;  %v3252_v4 = vld [vmem:[#allocation6 + $0x60] ss:$16 sps:$4 sm:$0xff]   ;;  %v3255_v5 = vld [vmem:[#allocation6 + $0x68] ss:$16 sps:$4 sm:$0xff]  }
 0x134   :  { %1087 = vmatpush1.bf16.msra.mxu0 %v3174_v6  ;;  %1173 = vmatpush1.bf16.msra.mxu1 %v3177_v7  ;;  %v3260_v6 = vld [vmem:[#allocation6 + $0x84] ss:$16 sps:$4 sm:$0xff]   ;;  %v3263_v7 = vld [vmem:[#allocation6 + $0x8c] ss:$16 sps:$4 sm:$0xff]  }
 0x135   :  { %1088 = vmatprep.subr.bf16.mxu0 %v3182_v8  ;;  %1174 = vmatprep.subr.bf16.mxu1 %v3185_v9  ;;  %v3258_v8 = vld [vmem:[#allocation6 + $0x80] ss:$16 sps:$4 sm:$0xff]   ;;  %v3261_v9 = vld [vmem:[#allocation6 + $0x88] ss:$16 sps:$4 sm:$0xff]  }
 0x138   :  { %1089 = vmatpush1.bf16.msra.mxu0 %v3180_v10  ;;  %1175 = vmatpush1.bf16.msra.mxu1 %v3183_v12  ;;  %v3266_v10 = vld [vmem:[#allocation6 + $0xa4] ss:$16 sps:$4 sm:$0xff]   ;;  %v3269_v12 = vld [vmem:[#allocation6 + $0xac] ss:$16 sps:$4 sm:$0xff]  }
 0x139   :  { %1090 = vmatprep.subr.bf16.mxu0 %v3188_v14  ;;  %1176 = vmatprep.subr.bf16.mxu1 %v3191_v16  ;;  %v3264_v14 = vld [vmem:[#allocation6 + $0xa0] ss:$16 sps:$4 sm:$0xff]   ;;  %v3267_v16 = vld [vmem:[#allocation6 + $0xa8] ss:$16 sps:$4 sm:$0xff]  }
 0x13c   :  { %1091 = vmatpush1.bf16.msra.mxu0 %v3186_v18  ;;  %1177 = vmatpush1.bf16.msra.mxu1 %v3189_v19  ;;  %v3272_v18 = vld [vmem:[#allocation6 + $0xc4] ss:$16 sps:$4 sm:$0xff]   ;;  %v3275_v19 = vld [vmem:[#allocation6 + $0xcc] ss:$16 sps:$4 sm:$0xff]  }
 0x13d   :  { %1092 = vmatprep.subr.bf16.mxu0 %v3194_v21  ;;  %1178 = vmatprep.subr.bf16.mxu1 %v3197_v22  ;;  %v3270_v21 = vld [vmem:[#allocation6 + $0xc0] ss:$16 sps:$4 sm:$0xff]   ;;  %v3273_v22 = vld [vmem:[#allocation6 + $0xc8] ss:$16 sps:$4 sm:$0xff]  }
 0x140   :  { %1093 = vmatpush1.bf16.msra.mxu0 %v3192_v23  ;;  %1179 = vmatpush1.bf16.msra.mxu1 %v3195_v24  ;;  %v3278_v23 = vld [vmem:[#allocation6 + $0xe4] ss:$16 sps:$4 sm:$0xff]   ;;  %v3281_v24 = vld [vmem:[#allocation6 + $0xec] ss:$16 sps:$4 sm:$0xff]  }
 0x141   :  { %1094 = vmatprep.subr.bf16.mxu0 %v3200_v25  ;;  %1180 = vmatprep.subr.bf16.mxu1 %v3203_v26  ;;  %v3276_v25 = vld [vmem:[#allocation6 + $0xe0] ss:$16 sps:$4 sm:$0xff]   ;;  %v3279_v26 = vld [vmem:[#allocation6 + $0xe8] ss:$16 sps:$4 sm:$0xff]  }
 0x144   :  { %1095 = vmatpush1.bf16.msra.mxu0 %v3198_v27  ;;  %1181 = vmatpush1.bf16.msra.mxu1 %v3201_v28  ;;  %v3284_v27 = vld [vmem:[#allocation6 + $0x104] ss:$16 sps:$4 sm:$0xff]   ;;  %v3287_v28 = vld [vmem:[#allocation6 + $0x10c] ss:$16 sps:$4 sm:$0xff]  }
 0x145   :  { %1096 = vmatprep.subr.bf16.mxu0 %v3206_v29  ;;  %1182 = vmatprep.subr.bf16.mxu1 %v3209_v30  ;;  %v3282_v29 = vld [vmem:[#allocation6 + $0x100] ss:$16 sps:$4 sm:$0xff]   ;;  %v3285_v30 = vld [vmem:[#allocation6 + $0x108] ss:$16 sps:$4 sm:$0xff]  }
 0x148   :  { %1097 = vmatpush1.bf16.msra.mxu0 %v3204_v32  ;;  %1183 = vmatpush1.bf16.msra.mxu1 %v3207_v33  ;;  %v3290_v32 = vld [vmem:[#allocation6 + $0x124] ss:$16 sps:$4 sm:$0xff]   ;;  %v3293_v33 = vld [vmem:[#allocation6 + $0x12c] ss:$16 sps:$4 sm:$0xff]  }
 0x149   :  { %1098 = vmatprep.subr.bf16.mxu0 %v3212_v34  ;;  %1184 = vmatprep.subr.bf16.mxu1 %v3215_v36  ;;  %v3288_v34 = vld [vmem:[#allocation6 + $0x120] ss:$16 sps:$4 sm:$0xff]   ;;  %v3291_v36 = vld [vmem:[#allocation6 + $0x128] ss:$16 sps:$4 sm:$0xff]  }
 0x14c   :  { %1099 = vmatpush1.bf16.msra.mxu0 %v3210_v37  ;;  %1185 = vmatpush1.bf16.msra.mxu1 %v3213_v39  ;;  %v3296_v37 = vld [vmem:[#allocation6 + $0x144] ss:$16 sps:$4 sm:$0xff]   ;;  %v3299_v39 = vld [vmem:[#allocation6 + $0x14c] ss:$16 sps:$4 sm:$0xff]  }
 0x14d   :  { %1100 = vmatprep.subr.bf16.mxu0 %v3218_v41  ;;  %1186 = vmatprep.subr.bf16.mxu1 %v3221_v42  ;;  %v3297_v41 = vld [vmem:[#allocation6 + $0x148] ss:$16 sps:$4 sm:$0xff]   ;;  %v3302_v42 = vld [vmem:[#allocation6 + $0x164] ss:$16 sps:$4 sm:$0xff]  }
 0x150   :  { %1101 = vmatpush1.bf16.msra.mxu0 %v3216_v43  ;;  %1187 = vmatpush1.bf16.msra.mxu1 %v3219_v44  ;;  %v3305_v43 = vld [vmem:[#allocation6 + $0x16c] ss:$16 sps:$4 sm:$0xff]   ;;  %v3300_v44 = vld [vmem:[#allocation6 + $0x160] ss:$16 sps:$4 sm:$0xff]  }
 0x151   :  { %1102 = vmatprep.subr.bf16.mxu0 %v3224_v46  ;;  %1188 = vmatprep.subr.bf16.mxu1 %v3227_v47  ;;  %v3308_v46 = vld [vmem:[#allocation6 + $0x184] ss:$16 sps:$4 sm:$0xff]   ;;  %v3311_v47 = vld [vmem:[#allocation6 + $0x18c] ss:$16 sps:$4 sm:$0xff]  }
 0x154   :  { %1103 = vmatpush1.bf16.msra.mxu0 %v3222_v48  ;;  %1189 = vmatpush1.bf16.msra.mxu1 %v3225_v49  ;;  %v3306_v48 = vld [vmem:[#allocation6 + $0x180] ss:$16 sps:$4 sm:$0xff]   ;;  %v3309_v49 = vld [vmem:[#allocation6 + $0x188] ss:$16 sps:$4 sm:$0xff]  }
 0x155   :  { %1104 = vmatprep.subr.bf16.mxu0 %v3230_v17  ;;  %1190 = vmatprep.subr.bf16.mxu1 %v3233_v51  ;;  %v3317_v17 = vld [vmem:[#allocation6 + $0x1ac] ss:$16 sps:$4 sm:$0xff]   ;;  %v3312_v51 = vld [vmem:[#allocation6 + $0x1a0] ss:$16 sps:$4 sm:$0xff]  }
 0x158   :  { %1105 = vmatpush1.bf16.msra.mxu0 %v3228_v52  ;;  %1191 = vmatpush1.bf16.msra.mxu1 %v3231_v53  ;;  %v3315_v52 = vld [vmem:[#allocation6 + $0x1a8] ss:$16 sps:$4 sm:$0xff]   ;;  %v3320_v53 = vld [vmem:[#allocation6 + $0x1c4] ss:$16 sps:$4 sm:$0xff]  }
 0x159   :  { %2037 = vmatprep.subr.bf16.mxu0 %v3236_v55  ;;  %2123 = vmatprep.subr.bf16.mxu1 %v3239_v56  ;;  %v3318_v55 = vld [vmem:[#allocation6 + $0x1c0] ss:$16 sps:$4 sm:$0xff]   ;;  %v3321_v56 = vld [vmem:[#allocation6 + $0x1c8] ss:$16 sps:$4 sm:$0xff]  }
 0x15b   :  { %1107 = vmatmul.mubr.bf16.vlgmr.msra.gmra.mrb[4].mxu0 %v261_v59  ;;  %1193 = vmatmul.mubr.bf16.vlgmr.msra.gmra.mrb[4].mxu1 %v261_v59  ;;  %v3324_v59 = vld [vmem:[#allocation6 + $0x1e0] ss:$16 sps:$4 sm:$0xff]  }
 0x15c   :  { %2038 = vmatpush1.bf16.msra.mxu0 %v3234_v57  ;;  %2124 = vmatpush1.bf16.msra.mxu1 %v3237_v58  ;;  %v3326_v57 = vld [vmem:[#allocation6 + $0x1e4] ss:$16 sps:$4 sm:$0xff]   ;;  %v3329_v58 = vld [vmem:[#allocation6 + $0x1ec] ss:$16 sps:$4 sm:$0xff]  }
 0x15d   :  { %2039 = vmatprep.subr.bf16.mxu0 %v3242_v60  ;;  %2125 = vmatprep.subr.bf16.mxu1 %v3245_v61  ;;  %v3327_v60 = vld [vmem:[#allocation6 + $0x1e8] ss:$16 sps:$4 sm:$0xff]   ;;  %v3332_v61 = vld [vmem:[#allocation6 + $0x204] ss:$16 sps:$4 sm:$0xff]  }
 0x160   :  { %2040 = vmatpush1.bf16.msra.mxu0 %v3240_v31  ;;  %2126 = vmatpush1.bf16.msra.mxu1 %v3243_v35  ;;  %v3335_v31 = vld [vmem:[#allocation6 + $0x20c] ss:$16 sps:$4 sm:$0xff]   ;;  %v2803_v35 = vld.sshfl [vmem:[%s3782_s4] sm:$0x33 pattern:$0x75316420] }
 0x161   :  { %2041 = vmatprep.subr.bf16.mxu0 %v3248_v38  ;;  %2127 = vmatprep.subr.bf16.mxu1 %v3251_v62  ;;  %v1216_v38 = vcombine.high %v2803_v35, %v2803_v35 }
 0x163   :  { %v1230_v62 = vrot.slane %v1216_v38, %v3689_v15  ;;  %v3383_v38 = vld [vmem:[#allocation6 + $0x30c] ss:$16 sps:$4 sm:$0xff]  }
 0x164   :  { %2042 = vmatpush1.bf16.msra.mxu0 %v3246_v63  ;;  %2128 = vmatpush1.bf16.msra.mxu1 %v3249_v1  ;;  %v3724_v63 = vrot.slane %v2803_v35, %v3689_v15  ;;  %v3380_v35 = vld [vmem:[#allocation6 + $0x304] ss:$16 sps:$4 sm:$0xff]  }
 0x165   :  { %2043 = vmatprep.subr.bf16.mxu0 %v3254_v2  ;;  %2129 = vmatprep.subr.bf16.mxu1 %v3257_v3  ;;  %v1232_v1 = vcombine.high %v1230_v62, %v1230_v62  ;;  %v1241_v3 = vpack.i.b16 %v1230_v62, %v1230_v62  ;;  %v3378_v62 = vld [vmem:[#allocation6 + $0x300] ss:$16 sps:$4 sm:$0xff]  }
 0x166   :  { %v1234_v2 = vpack.i.b16 %v3724_v63, %v3724_v63 }
 0x168   :  { %2044 = vmatpush1.bf16.msra.mxu0 %v3252_v4  ;;  %2130 = vmatpush1.bf16.msra.mxu1 %v3255_v5  ;;  %v1255_v4 = vpack.i.b16 %v1232_v1, %v1232_v1  ;;  %v3381_v1 = vld [vmem:[#allocation6 + $0x308] ss:$16 sps:$4 sm:$0xff]  }
 0x169   :  { %2045 = vmatprep.subr.bf16.mxu0 %v3260_v6  ;;  %2131 = vmatprep.subr.bf16.mxu1 %v3263_v7 }
 0x16c   :  { %2046 = vmatpush1.bf16.msra.mxu0 %v3258_v8  ;;  %2132 = vmatpush1.bf16.msra.mxu1 %v3261_v9  ;;  %v1239_v9 = vrot.slane %v1234_v2, %v3698_v20  ;;  %v3386_v2 = vld [vmem:[#allocation6 + $0x324] ss:$16 sps:$4 sm:$0xff]  }
 0x16d   :  { %2047 = vmatprep.subr.bf16.mxu0 %v3266_v10  ;;  %2133 = vmatprep.subr.bf16.mxu1 %v3269_v12 }
 0x170   :  { %2048 = vmatpush1.bf16.msra.mxu0 %v3264_v14  ;;  %2134 = vmatpush1.bf16.msra.mxu1 %v3267_v16  ;;  %v1246_v14 = vrot.slane %v1241_v3, %v3698_v20  ;;  %v3389_v3 = vld [vmem:[#allocation6 + $0x32c] ss:$16 sps:$4 sm:$0xff]  }
 0x171   :  { %2049 = vmatprep.subr.bf16.mxu0 %v3272_v18  ;;  %2135 = vmatprep.subr.bf16.mxu1 %v3275_v19 }
 0x174   :  { %2050 = vmatpush1.bf16.msra.mxu0 %v3270_v21  ;;  %2136 = vmatpush1.bf16.msra.mxu1 %v3273_v22  ;;  %v1260_v22 = vrot.slane %v1255_v4, %v3698_v20  ;;  %v3384_v4 = vld [vmem:[#allocation6 + $0x320] ss:$16 sps:$4 sm:$0xff]  }
 0x175   :  { %2051 = vmatprep.subr.bf16.mxu0 %v3278_v23  ;;  %2137 = vmatprep.subr.bf16.mxu1 %v3281_v24 }
 0x178   :  { %2052 = vmatpush1.bf16.msra.mxu0 %v3276_v25  ;;  %2138 = vmatpush1.bf16.msra.mxu1 %v3279_v26 }
 0x179   :  { %2053 = vmatprep.subr.bf16.mxu0 %v3284_v27  ;;  %2139 = vmatprep.subr.bf16.mxu1 %v3287_v28 }
 0x17c   :  { %2054 = vmatpush1.bf16.msra.mxu0 %v3282_v29  ;;  %2140 = vmatpush1.bf16.msra.mxu1 %v3285_v30  ;;  %v3330_v29 = vld [vmem:[#allocation6 + $0x200] ss:$16 sps:$4 sm:$0xff]   ;;  %v3333_v30 = vld [vmem:[#allocation6 + $0x208] ss:$16 sps:$4 sm:$0xff]  }
 0x17d   :  { %2055 = vmatprep.subr.bf16.mxu0 %v3290_v32  ;;  %2141 = vmatprep.subr.bf16.mxu1 %v3293_v33  ;;  %v3338_v33 = vld [vmem:[#allocation6 + $0x224] ss:$16 sps:$4 sm:$0xff]  }
 0x180   :  { %2056 = vmatpush1.bf16.msra.mxu0 %v3288_v34  ;;  %2142 = vmatpush1.bf16.msra.mxu1 %v3291_v36  ;;  %v3341_v34 = vld [vmem:[#allocation6 + $0x22c] ss:$16 sps:$4 sm:$0xff]  }
 0x181   :  { %2057 = vmatprep.subr.bf16.mxu0 %v3296_v37  ;;  %2143 = vmatprep.subr.bf16.mxu1 %v3299_v39  ;;  %v3336_v37 = vld [vmem:[#allocation6 + $0x220] ss:$16 sps:$4 sm:$0xff]   ;;  %v3339_v39 = vld [vmem:[#allocation6 + $0x228] ss:$16 sps:$4 sm:$0xff]  }
 0x184   :  { %2058 = vmatpush1.bf16.msra.mxu0 %v3294_v40  ;;  %2144 = vmatpush1.bf16.msra.mxu1 %v3297_v41  ;;  %v3344_v40 = vld [vmem:[#allocation6 + $0x244] ss:$16 sps:$4 sm:$0xff]   ;;  %v3347_v41 = vld [vmem:[#allocation6 + $0x24c] ss:$16 sps:$4 sm:$0xff]  }
 0x185   :  { %2059 = vmatprep.subr.bf16.mxu0 %v3302_v42  ;;  %2145 = vmatprep.subr.bf16.mxu1 %v3305_v43  ;;  %v3342_v42 = vld [vmem:[#allocation6 + $0x240] ss:$16 sps:$4 sm:$0xff]   ;;  %v3345_v43 = vld [vmem:[#allocation6 + $0x248] ss:$16 sps:$4 sm:$0xff]  }
 0x188   :  { %2060 = vmatpush1.bf16.msra.mxu0 %v3300_v44  ;;  %2146 = vmatpush1.bf16.msra.mxu1 %v3303_v45  ;;  %v3350_v44 = vld [vmem:[#allocation6 + $0x264] ss:$16 sps:$4 sm:$0xff]   ;;  %v3353_v45 = vld [vmem:[#allocation6 + $0x26c] ss:$16 sps:$4 sm:$0xff]  }
 0x189   :  { %2061 = vmatprep.subr.bf16.mxu0 %v3308_v46  ;;  %2147 = vmatprep.subr.bf16.mxu1 %v3311_v47  ;;  %v3348_v46 = vld [vmem:[#allocation6 + $0x260] ss:$16 sps:$4 sm:$0xff]   ;;  %v3351_v47 = vld [vmem:[#allocation6 + $0x268] ss:$16 sps:$4 sm:$0xff]  }
 0x18c   :  { %2062 = vmatpush1.bf16.msra.mxu0 %v3306_v48  ;;  %2148 = vmatpush1.bf16.msra.mxu1 %v3309_v49  ;;  %v3356_v48 = vld [vmem:[#allocation6 + $0x284] ss:$16 sps:$4 sm:$0xff]   ;;  %v3359_v49 = vld [vmem:[#allocation6 + $0x28c] ss:$16 sps:$4 sm:$0xff]  }
 0x18d   :  { %2063 = vmatprep.subr.bf16.mxu0 %v3314_v50  ;;  %2149 = vmatprep.subr.bf16.mxu1 %v3317_v17  ;;  %v3354_v50 = vld [vmem:[#allocation6 + $0x280] ss:$16 sps:$4 sm:$0xff]   ;;  %v3357_v17 = vld [vmem:[#allocation6 + $0x288] ss:$16 sps:$4 sm:$0xff]  }
 0x190   :  { %2064 = vmatpush1.bf16.msra.mxu0 %v3312_v51  ;;  %2150 = vmatpush1.bf16.msra.mxu1 %v3315_v52  ;;  %v3362_v51 = vld [vmem:[#allocation6 + $0x2a4] ss:$16 sps:$4 sm:$0xff]   ;;  %v3365_v52 = vld [vmem:[#allocation6 + $0x2ac] ss:$16 sps:$4 sm:$0xff]  }
 0x191   :  { %2065 = vmatprep.subr.bf16.mxu0 %v3320_v53  ;;  %2151 = vmatprep.subr.bf16.mxu1 %v3323_v54  ;;  %v3360_v53 = vld [vmem:[#allocation6 + $0x2a0] ss:$16 sps:$4 sm:$0xff]   ;;  %v3363_v54 = vld [vmem:[#allocation6 + $0x2a8] ss:$16 sps:$4 sm:$0xff]  }
 0x194   :  { %2066 = vmatpush1.bf16.msra.mxu0 %v3318_v55  ;;  %2152 = vmatpush1.bf16.msra.mxu1 %v3321_v56  ;;  %v3368_v55 = vld [vmem:[#allocation6 + $0x2c4] ss:$16 sps:$4 sm:$0xff]   ;;  %v3371_v56 = vld [vmem:[#allocation6 + $0x2cc] ss:$16 sps:$4 sm:$0xff]  }
 0x195   :  { %2067 = vmatprep.subr.bf16.mxu0 %v3326_v57  ;;  %2153 = vmatprep.subr.bf16.mxu1 %v3329_v58  ;;  %v3366_v57 = vld [vmem:[#allocation6 + $0x2c0] ss:$16 sps:$4 sm:$0xff]   ;;  %v3369_v58 = vld [vmem:[#allocation6 + $0x2c8] ss:$16 sps:$4 sm:$0xff]  }
 0x198   :  { %2068 = vmatpush1.bf16.msra.mxu0 %v3324_v59  ;;  %2154 = vmatpush1.bf16.msra.mxu1 %v3327_v60  ;;  %v3374_v59 = vld [vmem:[#allocation6 + $0x2e4] ss:$16 sps:$4 sm:$0xff]   ;;  %v3377_v60 = vld [vmem:[#allocation6 + $0x2ec] ss:$16 sps:$4 sm:$0xff]  }
 0x199   :  { %2080 = vmatprep.subr.bf16.mxu0 %v3332_v61  ;;  %2166 = vmatprep.subr.bf16.mxu1 %v3335_v31  ;;  %v3372_v61 = vld [vmem:[#allocation6 + $0x2e0] ss:$16 sps:$4 sm:$0xff]   ;;  %v3375_v31 = vld [vmem:[#allocation6 + $0x2e8] ss:$16 sps:$4 sm:$0xff]  }
 0x22e   :  { %v1108_v5 = vpop.f32.mrb[4].mxu0  ;;  %v3728_v6 = vpop.f32.mrb[4].mxu1 }
 0x22f   :  { %v1110_v7 = vpop.f32.mrb[5].mxu0  ;;  %v1196_v8 = vpop.f32.mrb[5].mxu1 }
 0x230   :  { %v1112_v10 = vpop.f32.mrb[6].mxu0  ;;  %v3731_v12 = vpop.f32.mrb[6].mxu1 }
 0x231   :  { %v1203_v16 = vpack.c.bf16 %v1112_v10, %v1108_v5  ;;  %v1205_v18 = vpack.c.bf16 %v3731_v12, %v3728_v6  ;;  %v1114_v19 = vpop.f32.mrb[7].mxu0  ;;  %v1200_v21 = vpop.f32.mrb[7].mxu1  ;;  %v3387_v5 = vld [vmem:[#allocation6 + $0x328] ss:$16 sps:$4 sm:$0xff]  }
 0x232   :  { %v1204_v23 = vpack.c.bf16 %v1114_v19, %v1110_v7  ;;  %v1206_v24 = vpack.c.bf16 %v1200_v21, %v1196_v8  ;;  %v3392_v7 = vld [vmem:[#allocation6 + $0x344] ss:$16 sps:$4 sm:$0xff]   ;;  %v3395_v8 = vld [vmem:[#allocation6 + $0x34c] ss:$16 sps:$4 sm:$0xff]   ;;  %v3393_v10 = vld [vmem:[#allocation6 + $0x348] ss:$16 sps:$4 sm:$0xff]  }
 0x233   :  { %v1261_v25 = vadd.bf16 %v1239_v9, %v1203_v16  ;;  %v3390_v9 = vld [vmem:[#allocation6 + $0x340] ss:$16 sps:$4 sm:$0xff]   ;;  %v3401_v16 = vld [vmem:[#allocation6 + $0x36c] ss:$16 sps:$4 sm:$0xff]   ;;  %v3399_v21 = vld [vmem:[#allocation6 + $0x368] ss:$16 sps:$4 sm:$0xff]  }
 0x234   :  { %v1262_v26 = vadd.bf16 %v1246_v14, %v1204_v23  ;;  %v1264_v27 = vadd.bf16 %v1260_v22, %v1206_v24  ;;  %v3398_v14 = vld [vmem:[#allocation6 + $0x364] ss:$16 sps:$4 sm:$0xff]   ;;  %v3396_v19 = vld [vmem:[#allocation6 + $0x360] ss:$16 sps:$4 sm:$0xff]   ;;  %v3407_v23 = vld [vmem:[#allocation6 + $0x38c] ss:$16 sps:$4 sm:$0xff]  }
 0x235   :  { %v1265_v32 = vmax.bf16 %v3567_v0, %v1261_v25  ;;  %v3404_v22 = vld [vmem:[#allocation6 + $0x384] ss:$16 sps:$4 sm:$0xff]   ;;  %v3402_v24 = vld [vmem:[#allocation6 + $0x380] ss:$16 sps:$4 sm:$0xff]   ;;  %v3405_v25 = vld [vmem:[#allocation6 + $0x388] ss:$16 sps:$4 sm:$0xff]  }
 0x236   :  { %v1266_v28 = vmax.bf16 %v3567_v0, %v1262_v26  ;;  %v1268_v36 = vmax.bf16 %v3567_v0, %v1264_v27  ;;  %v1231_v26 = vcombine.high %v3724_v63, %v3724_v63  ;;  %v3410_v27 = vld [vmem:[#allocation6 + $0x3a4] ss:$16 sps:$4 sm:$0xff]   ;;  %v3432_v6 = vld [vmem:[#allocation8 + $0x8] sm:$0xff]  }
 0x237   :  { %v3422_v63 = vld [vmem:[#allocation6 + $0x3e4] ss:$16 sps:$4 sm:$0xff]   ;;  %v3433_v12 = vld [vmem:[#allocation8 + $0x88] sm:$0xff]  }
 0x238   :  { %2069 = vmatprep.mubr.bf16.mxu0 %v1266_v28  ;;  %2155 = vmatprep.mubr.bf16.mxu1 %v1266_v28  ;;  %v3413_v28 = vld [vmem:[#allocation6 + $0x3ac] ss:$16 sps:$4 sm:$0xff]  }
 0x239   :  { %2070 = vmatmul.mubr.bf16.vlgmr.msra.gmra.mrb[8].mxu0 %v1265_v32  ;;  %2156 = vmatmul.mubr.bf16.vlgmr.msra.gmra.mrb[8].mxu1 %v1265_v32  ;;  %v1248_v32 = vpack.i.b16 %v1231_v26, %v1231_v26 }
 0x23a   :  { %2081 = vmatpush1.bf16.msra.mxu0 %v3330_v29  ;;  %2167 = vmatpush1.bf16.msra.mxu1 %v3333_v30  ;;  %v3408_v29 = vld [vmem:[#allocation6 + $0x3a0] ss:$16 sps:$4 sm:$0xff]   ;;  %v3411_v30 = vld [vmem:[#allocation6 + $0x3a8] ss:$16 sps:$4 sm:$0xff]  }
 0x23b   :  { %2112 = vmatprep.mubr.bf16.mxu0 %v1268_v36  ;;  %2198 = vmatprep.mubr.bf16.mxu1 %v1268_v36  ;;  %v3414_v36 = vld [vmem:[#allocation6 + $0x3c0] ss:$16 sps:$4 sm:$0xff]  }
 0x23c   :  { %2082 = vmatprep.subr.bf16.mxu0 %v3338_v33  ;;  %2168 = vmatprep.subr.bf16.mxu1 %v3341_v34  ;;  %v3416_v33 = vld [vmem:[#allocation6 + $0x3c4] ss:$16 sps:$4 sm:$0xff]   ;;  %v3419_v34 = vld [vmem:[#allocation6 + $0x3cc] ss:$16 sps:$4 sm:$0xff]  }
 0x23e   :  { %2083 = vmatpush1.bf16.msra.mxu0 %v3336_v37  ;;  %2169 = vmatpush1.bf16.msra.mxu1 %v3339_v39  ;;  %v3417_v37 = vld [vmem:[#allocation6 + $0x3c8] ss:$16 sps:$4 sm:$0xff]   ;;  %v1253_v39 = vrot.slane %v1248_v32, %v3698_v20 }
 0x23f   :  { %2084 = vmatprep.subr.bf16.mxu0 %v3344_v40  ;;  %2170 = vmatprep.subr.bf16.mxu1 %v3347_v41  ;;  %v3425_v40 = vld [vmem:[#allocation6 + $0x3ec] ss:$16 sps:$4 sm:$0xff]   ;;  %v3420_v41 = vld [vmem:[#allocation6 + $0x3e0] ss:$16 sps:$4 sm:$0xff]  }
 0x242   :  { %2085 = vmatpush1.bf16.msra.mxu0 %v3342_v42  ;;  %2171 = vmatpush1.bf16.msra.mxu1 %v3345_v43  ;;  %v3423_v42 = vld [vmem:[#allocation6 + $0x3e8] ss:$16 sps:$4 sm:$0xff]   ;;  %v1263_v43 = vadd.bf16 %v1253_v39, %v1205_v18  ;;  %v3434_v18 = vld [vmem:[#allocation8 + $0x50] sm:$0xff]  }
 0x243   :  { %2086 = vmatprep.subr.bf16.mxu0 %v3350_v44  ;;  %2172 = vmatprep.subr.bf16.mxu1 %v3353_v45  ;;  %v3426_v44 = vld [vmem:[#allocation8 + $0x40] sm:$0xff]  }
 0x244   :  { %v3427_v45 = vld [vmem:[#allocation8 + $0xc0] sm:$0xff]  }
 0x246   :  { %2087 = vmatpush1.bf16.msra.mxu0 %v3348_v46  ;;  %2173 = vmatpush1.bf16.msra.mxu1 %v3351_v47  ;;  %v3428_v46 = vld [vmem:[#allocation8] sm:$0xff]  }
 0x247   :  { %2088 = vmatprep.subr.bf16.mxu0 %v3356_v48  ;;  %2174 = vmatprep.subr.bf16.mxu1 %v3359_v49  ;;  %v3429_v47 = vld [vmem:[#allocation8 + $0x80] sm:$0xff]   ;;  %v1267_v48 = vmax.bf16 %v3567_v0, %v1263_v43  ;;  %v3430_v49 = vld [vmem:[#allocation8 + $0x48] sm:$0xff]  }
 0x24a   :  { %2089 = vmatpush1.bf16.msra.mxu0 %v3354_v50  ;;  %2175 = vmatpush1.bf16.msra.mxu1 %v3357_v17  ;;  %v3431_v50 = vld [vmem:[#allocation8 + $0xc8] sm:$0xff]   ;;  %v3435_v17 = vld [vmem:[#allocation8 + $0xd0] sm:$0xff]  }
 0x24b   :  { %2090 = vmatprep.subr.bf16.mxu0 %v3362_v51  ;;  %2176 = vmatprep.subr.bf16.mxu1 %v3365_v52  ;;  %v3436_v51 = vld [vmem:[#allocation8 + $0x10] sm:$0xff]  }
 0x24c   :  { %v3437_v52 = vld [vmem:[#allocation8 + $0x90] sm:$0xff]  }
 0x24e   :  { %2091 = vmatpush1.bf16.msra.mxu0 %v3360_v53  ;;  %2177 = vmatpush1.bf16.msra.mxu1 %v3363_v54  ;;  %v3438_v53 = vld [vmem:[#allocation8 + $0x58] sm:$0xff]  }
 0x24f   :  { %2092 = vmatprep.subr.bf16.mxu0 %v3368_v55  ;;  %2178 = vmatprep.subr.bf16.mxu1 %v3371_v56  ;;  %v3439_v54 = vld [vmem:[#allocation8 + $0xd8] sm:$0xff]  }
 0x250   :  { %v3440_v55 = vld [vmem:[#allocation8 + $0x18] sm:$0xff]  }
 0x251   :  { %v3441_v56 = vld [vmem:[#allocation8 + $0x98] sm:$0xff]  }
 0x252   :  { %2093 = vmatpush1.bf16.msra.mxu0 %v3366_v57  ;;  %2179 = vmatpush1.bf16.msra.mxu1 %v3369_v58  ;;  %v3442_v57 = vld [vmem:[#allocation8 + $0x60] sm:$0xff]  }
 0x253   :  { %2094 = vmatprep.subr.bf16.mxu0 %v3374_v59  ;;  %2180 = vmatprep.subr.bf16.mxu1 %v3377_v60  ;;  %v3443_v58 = vld [vmem:[#allocation8 + $0xe0] sm:$0xff]  }
 0x254   :  { %v3444_v59 = vld [vmem:[#allocation8 + $0x20] sm:$0xff]  }
 0x255   :  { %v3445_v60 = vld [vmem:[#allocation8 + $0xa0] sm:$0xff]  }
 0x256   :  { %2095 = vmatpush1.bf16.msra.mxu0 %v3372_v61  ;;  %2181 = vmatpush1.bf16.msra.mxu1 %v3375_v31  ;;  %v3446_v61 = vld [vmem:[#allocation8 + $0x68] sm:$0xff]  }
 0x257   :  { %2096 = vmatprep.subr.bf16.mxu0 %v3380_v35  ;;  %2182 = vmatprep.subr.bf16.mxu1 %v3383_v38  ;;  %v3447_v31 = vld [vmem:[#allocation8 + $0xe8] sm:$0xff]  }
 0x258   :  { %v3448_v35 = vld [vmem:[#allocation8 + $0x28] sm:$0xff]  }
 0x259   :  { %v3449_v38 = vld [vmem:[#allocation8 + $0xa8] sm:$0xff]  }
 0x25a   :  { %2097 = vmatpush1.bf16.msra.mxu0 %v3378_v62  ;;  %2183 = vmatpush1.bf16.msra.mxu1 %v3381_v1  ;;  %v3450_v62 = vld [vmem:[#allocation8 + $0x70] sm:$0xff]  }
 0x25b   :  { %2098 = vmatprep.subr.bf16.mxu0 %v3386_v2  ;;  %2184 = vmatprep.subr.bf16.mxu1 %v3389_v3  ;;  %v3451_v1 = vld [vmem:[#allocation8 + $0xf0] sm:$0xff]  }
 0x25c   :  { %v3452_v2 = vld [vmem:[#allocation8 + $0x30] sm:$0xff]  }
 0x25d   :  { %v3453_v3 = vld [vmem:[#allocation8 + $0xb0] sm:$0xff]  }
 0x25e   :  { %2099 = vmatpush1.bf16.msra.mxu0 %v3384_v4  ;;  %2185 = vmatpush1.bf16.msra.mxu1 %v3387_v5  ;;  %v3454_v4 = vld [vmem:[#allocation8 + $0x78] sm:$0xff]  }
 0x25f   :  { %2100 = vmatprep.subr.bf16.mxu0 %v3392_v7  ;;  %2186 = vmatprep.subr.bf16.mxu1 %v3395_v8  ;;  %v3455_v5 = vld [vmem:[#allocation8 + $0xf8] sm:$0xff]  }
 0x260   :  { %v3456_v7 = vld [vmem:[#allocation8 + $0x38] sm:$0xff]  }
 0x261   :  { %v3457_v8 = vld [vmem:[#allocation8 + $0xb8] sm:$0xff]  }
 0x262   :  { %2101 = vmatpush1.bf16.msra.mxu0 %v3390_v9  ;;  %2187 = vmatpush1.bf16.msra.mxu1 %v3393_v10  ;;  %v2932_v9 = vld.sshfl [vmem:[%s3784_s6] sm:$0x33 pattern:$0x75316420] }
 0x263   :  { %2102 = vmatprep.subr.bf16.mxu0 %v3398_v14  ;;  %2188 = vmatprep.subr.bf16.mxu1 %v3401_v16  ;;  %v2222_v10 = vcombine.high %v2932_v9, %v2932_v9  ;;  %v2229_v14 = vrot.slane %v2932_v9, %v3689_v15 }
 0x265   :  { %v2236_v16 = vrot.slane %v2222_v10, %v3689_v15 }
 0x266   :  { %2103 = vmatpush1.bf16.msra.mxu0 %v3396_v19  ;;  %2189 = vmatpush1.bf16.msra.mxu1 %v3399_v21  ;;  %v2237_v19 = vcombine.high %v2229_v14, %v2229_v14 }
 0x267   :  { %2104 = vmatprep.subr.bf16.mxu0 %v3404_v22  ;;  %2190 = vmatprep.subr.bf16.mxu1 %v3407_v23  ;;  %v2238_v21 = vcombine.high %v2236_v16, %v2236_v16  ;;  %v2240_v22 = vpack.i.b16 %v2229_v14, %v2229_v14 }
 0x268   :  { %v2254_v23 = vpack.i.b16 %v2237_v19, %v2237_v19 }
 0x26a   :  { %2105 = vmatpush1.bf16.msra.mxu0 %v3402_v24  ;;  %2191 = vmatpush1.bf16.msra.mxu1 %v3405_v25  ;;  %v2247_v24 = vpack.i.b16 %v2236_v16, %v2236_v16  ;;  %v2261_v25 = vpack.i.b16 %v2238_v21, %v2238_v21  ;;  %v2259_v32 = vrot.slane %v2254_v23, %v3698_v20 }
 0x26b   :  { %2106 = vmatprep.subr.bf16.mxu0 %v3410_v27  ;;  %2192 = vmatprep.subr.bf16.mxu1 %v3413_v28 }
 0x26c   :  { %v2266_v15 = vrot.slane %v2261_v25, %v3698_v20 }
 0x26e   :  { %2107 = vmatpush1.bf16.msra.mxu0 %v3408_v29  ;;  %2193 = vmatpush1.bf16.msra.mxu1 %v3411_v30  ;;  %v2245_v30 = vrot.slane %v2240_v22, %v3698_v20 }
 0x26f   :  { %2108 = vmatprep.subr.bf16.mxu0 %v3416_v33  ;;  %2194 = vmatprep.subr.bf16.mxu1 %v3419_v34 }
 0x272   :  { %2109 = vmatpush1.bf16.msra.mxu0 %v3414_v36  ;;  %2195 = vmatpush1.bf16.msra.mxu1 %v3417_v37  ;;  %v2252_v36 = vrot.slane %v2247_v24, %v3698_v20 }
 0x273   :  { %2110 = vmatprep.subr.bf16.mxu0 %v3422_v63  ;;  %2196 = vmatprep.subr.bf16.mxu1 %v3425_v40 }
 0x276   :  { %2111 = vmatpush1.bf16.msra.mxu0 %v3420_v41  ;;  %2197 = vmatpush1.bf16.msra.mxu1 %v3423_v42 }
 0x277   :  { %2965 = vmatprep.subr.bf16.mxu0 %v3426_v44  ;;  %2987 = vmatprep.subr.bf16.mxu1 %v3427_v45 }
 0x279   :  { %2113 = vmatmul.mubr.bf16.vlgmr.msra.gmra.mrb[8].mxu0 %v1267_v48  ;;  %2199 = vmatmul.mubr.bf16.vlgmr.msra.gmra.mrb[8].mxu1 %v1267_v48 }
 0x27a   :  { %2966 = vmatpush3.bf16.msra.mxu0 %v3428_v46  ;;  %2988 = vmatpush3.bf16.msra.mxu1 %v3429_v47 }
 0x27b   :  { %2967 = vmatprep.subr.bf16.mxu0 %v3430_v49  ;;  %2989 = vmatprep.subr.bf16.mxu1 %v3431_v50 }
 0x27e   :  { %2968 = vmatpush3.bf16.msra.mxu0 %v3432_v6  ;;  %2990 = vmatpush3.bf16.msra.mxu1 %v3433_v12 }
 0x27f   :  { %2969 = vmatprep.subr.bf16.mxu0 %v3434_v18  ;;  %2991 = vmatprep.subr.bf16.mxu1 %v3435_v17 }
 0x282   :  { %2970 = vmatpush3.bf16.msra.mxu0 %v3436_v51  ;;  %2992 = vmatpush3.bf16.msra.mxu1 %v3437_v52 }
 0x283   :  { %2971 = vmatprep.subr.bf16.mxu0 %v3438_v53  ;;  %2993 = vmatprep.subr.bf16.mxu1 %v3439_v54 }
 0x286   :  { %2972 = vmatpush3.bf16.msra.mxu0 %v3440_v55  ;;  %2994 = vmatpush3.bf16.msra.mxu1 %v3441_v56 }
 0x287   :  { %2973 = vmatprep.subr.bf16.mxu0 %v3442_v57  ;;  %2995 = vmatprep.subr.bf16.mxu1 %v3443_v58 }
 0x28a   :  { %2974 = vmatpush3.bf16.msra.mxu0 %v3444_v59  ;;  %2996 = vmatpush3.bf16.msra.mxu1 %v3445_v60 }
 0x28b   :  { %2975 = vmatprep.subr.bf16.mxu0 %v3446_v61  ;;  %2997 = vmatprep.subr.bf16.mxu1 %v3447_v31 }
 0x28e   :  { %2976 = vmatpush3.bf16.msra.mxu0 %v3448_v35  ;;  %2998 = vmatpush3.bf16.msra.mxu1 %v3449_v38 }
 0x28f   :  { %2977 = vmatprep.subr.bf16.mxu0 %v3450_v62  ;;  %2999 = vmatprep.subr.bf16.mxu1 %v3451_v1 }
 0x292   :  { %2978 = vmatpush3.bf16.msra.mxu0 %v3452_v2  ;;  %3000 = vmatpush3.bf16.msra.mxu1 %v3453_v3 }
 0x293   :  { %2979 = vmatprep.subr.bf16.mxu0 %v3454_v4  ;;  %3001 = vmatprep.subr.bf16.mxu1 %v3455_v5 }
 0x296   :  { %2980 = vmatpush3.bf16.msra.mxu0 %v3456_v7  ;;  %3002 = vmatpush3.bf16.msra.mxu1 %v3457_v8  ;;  %v2636_v8 = vand.u32 127, %v214_v11 }
 0x298   :  { %v2641_v9 = vadd.s32 4294967288, %v2636_v8  ;;  %v2639_v10 = vsub.s32 %v2636_v8, %v3683_v13 }
 0x29a   :  { %v2644_v14 = vsub.s32 %v2641_v9, %v3683_v13 }
 0x34c   :  { %v2114_v26 = vpop.f32.mrb[8].mxu0  ;;  %v2200_v27 = vpop.f32.mrb[8].mxu1 }
 0x34d   :  { %v2116_v28 = vpop.f32.mrb[9].mxu0  ;;  %v2202_v29 = vpop.f32.mrb[9].mxu1 }
 0x34e   :  { %v2118_v33 = vpop.f32.mrb[10].mxu0  ;;  %v2204_v34 = vpop.f32.mrb[10].mxu1 }
 0x34f   :  { %v2209_v37 = vpack.c.bf16 %v2118_v33, %v2114_v26  ;;  %v2211_v39 = vpack.c.bf16 %v2204_v34, %v2200_v27  ;;  %v2120_v63 = vpop.f32.mrb[11].mxu0  ;;  %v2206_v40 = vpop.f32.mrb[11].mxu1 }
 0x350   :  { %v2210_v41 = vpack.c.bf16 %v2120_v63, %v2116_v28  ;;  %v2212_v42 = vpack.c.bf16 %v2206_v40, %v2202_v29 }
 0x351   :  { %v2267_v43 = vadd.bf16 %v2245_v30, %v2209_v37  ;;  %v2269_v44 = vadd.bf16 %v2259_v32, %v2211_v39 }
 0x352   :  { %v2268_v45 = vadd.bf16 %v2252_v36, %v2210_v41  ;;  %v2270_v46 = vadd.bf16 %v2266_v15, %v2212_v42 }
 0x353   :  { %v2271_v49 = vmax.bf16 %v3567_v0, %v2267_v43  ;;  %v2273_v50 = vmax.bf16 %v3567_v0, %v2269_v44 }
 0x354   :  { %v2272_v47 = vmax.bf16 %v3567_v0, %v2268_v45  ;;  %v2274_v48 = vmax.bf16 %v3567_v0, %v2270_v46  ;;  %v2618_v0 = vstv %s3786_s8  ;;  %s3569_s8 = smov [#allocation9]  }
 0x355   :  { %s2657_s17 = sshll.u32 %s3569_s8, 4  ;;  %s2658_s17 = int_to_ptr.vmem [resolvable:$true] %s2657_s17 }
 0x356   :  { %2563 = vmatprep.mubr.bf16.mxu0 %v2272_v47  ;;  %2604 = vmatprep.mubr.bf16.mxu1 %v2274_v48  ;;  %s3532_s18 = scalar_lea.vmem %s2658_s17, 16  ;;  %s3536_s19 = scalar_lea.vmem %s2658_s17, 32 }
 0x357   :  { %2564 = vmatmul.mubr.bf16.vlgmr.msra.gmra.mrb[12].mxu0 %v2271_v49  ;;  %2605 = vmatmul.mubr.bf16.vlgmr.msra.gmra.mrb[12].mxu1 %v2273_v50  ;;  %p3533_p10 = scmp.ne.s32.totalorder %s2658_s17, %s3532_s18  ;;  %p3537_p11 = scmp.lt.s32.totalorder %s2658_s17, %s2658_s17 }
 0x358   :  { %p3538_p12 = scmp.lt.s32.totalorder %s3536_s19, %s3532_s18 }
 0x35a   :  { %p3539_p13 = por %p3538_p12, %p3537_p11 }
 0x35c   :  { %p3540_p0 = pnand %p3539_p13, %p3533_p10 }
 0x42a   :  { %v2981_v20 = vpop.f32.mrb[12].mxu0  ;;  %v3003_v6 = vpop.f32.mrb[12].mxu1 }
 0x42b   :  { %v2982_v12 = vpop.f32.mrb[13].mxu0  ;;  %v3004_v18 = vpop.f32.mrb[13].mxu1 }
 0x42c   :  { %v2983_v17 = vadd.f32 %v2982_v12, %v2981_v20  ;;  %v3005_v51 = vadd.f32 %v3004_v18, %v3003_v6  ;;  %v2984_v52 = vpop.f32.mrb[14].mxu0  ;;  %v3006_v53 = vpop.f32.mrb[14].mxu1 }
 0x42d   :  { %v2985_v54 = vpop.f32.mrb[15].mxu0  ;;  %v3007_v55 = vpop.f32.mrb[15].mxu1 }
 0x42e   :  { %v2986_v56 = vadd.f32 %v2985_v54, %v2984_v52  ;;  %v3008_v57 = vadd.f32 %v3007_v55, %v3006_v53  ;;  %v2607_v58 = vadd.f32 %v3005_v51, %v2983_v17 }
 0x430   :  { %2613 = vadd.xlane.f32.xlu0 %v2607_v58  ;;  %v2610_v59 = vadd.f32 %v3008_v57, %v2986_v56 }
 0x434   :  { %2615 = vadd.xlane.f32.xlu0 %v2610_v59 }
 0x4bd   :  { %v2614_v60 = vpop.xlane.xlu0 %2613 }
 0x4be   :  { %v2619_v61 = vadd.f32 %v2618_v0, %v2614_v60 }
 0x4c0   :  { %v2621_v31 = vsub.f32 0.0, %v2619_v61 }
 0x4c1   :  { %v2616_v35 = vpop.xlane.xlu0 %2615 }
 0x4c2   :  { %v2623_v38 = vmul.f32 1.442695, %v2621_v31  ;;  %v2620_v62 = vadd.f32 %v2618_v0, %v2616_v35 }
 0x4c4   :  { %3458 = vpow2.f32 %v2623_v38  ;;  %v2622_v1 = vsub.f32 0.0, %v2620_v62 }
 0x4c6   :  { %v2625_v2 = vmul.f32 1.442695, %v2622_v1 }
 0x4c8   :  { %3460 = vpow2.f32 %v2625_v2 }
 0x4ce   :  { %v3459_v3 = vpop.eup %3458 }
 0x4cf   :  { %v2627_v4 = vadd.f32 1.0, %v3459_v3 }
 0x4d1   :  { %3462 = vrcp.f32 %v2627_v4 }
 0x4d2   :  { %v3461_v5 = vpop.eup %3460 }
 0x4d3   :  { %v2628_v7 = vadd.f32 1.0, %v3461_v5 }
 0x4d5   :  { %3464 = vrcp.f32 %v2628_v7 }
 0x4db   :  { %v3463_v16 = vpop.eup %3462 }
 0x4dc   :  { %v2640_v21 = vrot.slane %v3463_v16, %v2639_v10 }
 0x4df   :  { %v3465_v19 = vpop.eup %3464 }
 0x4e0   :  { %v2645_v22 = vrot.slane %v3465_v19, %v2644_v14 }
 0x4e2   :  { %v2647_v23 = vsel %vm2646_vm1, %v2645_v22, %v2640_v21 }
 0x4e3   :  { %2650 = vst.msk [vmem:[#allocation9] sm:$0x1] %vm2649_vm2, %v2647_v23 }
 0x4e4   :  { %3543 = shalt.err (!%p3540_p0)
}
 0x4e5   :  { %s3544_s24 = scalar_lea.hbm %s3787_s9, 16 }
 0x4e6   :  { %p3545_p1 = scmp.ne.s32.totalorder %s3787_s9, %s3544_s24  ;;  %p3548_p2 = scmp.lt.u32.totalorder %s3544_s24, %s3787_s9 }
 0x4e8   :  { %p3550_p3 = pnand %p3548_p2, %p3545_p1 }
 0x4ea   :  { %3553 = shalt.err (!%p3550_p3)
}
 0x4eb   :  { %2660 = dma.vmem_to_hbm [thread:$0]  %s2658_s17, 16, %s3787_s9, [#allocation5]  }
 0x4ec   :  { %3558 = dma.done.wait [#allocation5], 16  }
 0x4ed   :  { %3559 = vsyncadd [#allocation5], 4294967280 }
 0x4ee   :  { %2664 = vsyncpa [#allocation4], 1 }
 0x4ef   :  { %2665 = vsyncpa [#allocation7], 1 }
 0x4f0   :  { %2666 = vsyncpa [#allocation5], 1 }

// kernel: discriminator_forward.1
= control target key start
LH: loop header
LB: loop body
LE: loop exit
PB: predicated region body
PF: predicated region fallthrough
CT: control target
= control target key end

     0   :  { %15 = vsyncpa [#allocation4], 0  ;;  %s3778_s0 = inlined_call_operand.vmem [shape: bf16[16,16], index: 0, kind: input, shape index: {}]   ;;  %s3779_s1 = inlined_call_operand.vmem [shape: bf16[16,512], index: 1, kind: input, shape index: {}]   ;;  %s3780_s2 = inlined_call_operand.vmem [shape: bf16[1,512], index: 2, kind: input, shape index: {}]   ;;  %s3781_s3 = inlined_call_operand.hbm [shape: bf16[512,512], index: 3, kind: input, shape index: {}]   ;;  %s3782_s4 = inlined_call_operand.vmem [shape: bf16[1,512], index: 4, kind: input, shape index: {}]   ;;  %s3783_s5 = inlined_call_operand.hbm [shape: bf16[512,512], index: 5, kind: input, shape index: {}]   ;;  %s3784_s6 = inlined_call_operand.vmem [shape: bf16[1,512], index: 6, kind: input, shape index: {}]   ;;  %s3785_s7 = inlined_call_operand.hbm [shape: bf16[512,128], index: 7, kind: input, shape index: {}]   ;;  %s3786_s8 = inlined_call_operand.<no memory space> [shape: f32[1], index: 8, kind: input, shape index: {}]   ;;  %s3787_s9 = inlined_call_operand.hbm [shape: f32[1,1,16], index: 9, kind: output, shape index: {}]  }
   0x1   :  { %16 = vsyncpa [#allocation7], 0 }
   0x2   :  { %17 = vsyncpa [#allocation5], 0  ;;  %s3560_s30 = smov [#allocation6]   ;;  %s3561_s11 = smov [#allocation3]  }
   0x3   :  { %s43_s10 = sshll.u32 %s3560_s30, 4  ;;  %s29_s12 = sshll.u32 %s3561_s11, 4  ;;  %s44_s10 = int_to_ptr.vmem [resolvable:$true] %s43_s10  ;;  %s3620_s12 = int_to_ptr.vmem [resolvable:$true] %s29_s12 }
   0x4   :  { %s3466_s15 = scalar_lea.hbm %s3783_s5, 16384 }
   0x5   :  { %p3467_p0 = scmp.ne.s32.totalorder %s3783_s5, %s3466_s15  ;;  %p3470_p1 = scmp.lt.u32.totalorder %s3466_s15, %s3783_s5 }
   0x7   :  { %p3472_p2 = pnand %p3470_p1, %p3467_p0 }
   0x9   :  { %3475 = shalt.err (!%p3472_p2)
}
   0xa   :  { %s3476_s20 = scalar_lea.vmem %s44_s10, 16384  ;;  %p3481_p4 = scmp.lt.s32.totalorder %s44_s10, %s44_s10 }
   0xb   :  { %p3477_p3 = scmp.ne.s32.totalorder %s44_s10, %s3476_s20  ;;  %p3482_p5 = scmp.lt.s32.totalorder %s3476_s20, %s3476_s20 }
   0xd   :  { %p3483_p6 = por %p3482_p5, %p3481_p4 }
   0xf   :  { %p3484_p7 = pnand %p3483_p6, %p3477_p3 }
  0x11   :  { %3487 = shalt.err (!%p3484_p7)
}
  0x12   :  { %s3562_s21 = smov 256   ;;  %s3563_s22 = smov 16  }
  0x13   :  { %49 = dma.hbm_to_vmem [thread:$0]  %s3783_s5, 16384, %s44_s10, [#allocation7], %s3562_s21, %s3562_s21, %s3563_s22  }
  0x14   :  { %s3488_s27 = scalar_lea.hbm %s3781_s3, 16384 }
  0x15   :  { %p3489_p8 = scmp.ne.s32.totalorder %s3781_s3, %s3488_s27  ;;  %p3492_p9 = scmp.lt.u32.totalorder %s3488_s27, %s3781_s3 }
  0x17   :  { %p3494_p10 = pnand %p3492_p9, %p3489_p8 }
  0x19   :  { %3497 = shalt.err (!%p3494_p10)
}
  0x1a   :  { %s3498_s13 = scalar_lea.vmem %s3620_s12, 16384  ;;  %p3503_p12 = scmp.lt.s32.totalorder %s3620_s12, %s3620_s12 }
  0x1b   :  { %p3499_p11 = scmp.ne.s32.totalorder %s3620_s12, %s3498_s13  ;;  %p3504_p13 = scmp.lt.s32.totalorder %s3498_s13, %s3498_s13 }
  0x1d   :  { %p3505_p0 = por %p3504_p13, %p3503_p12 }
  0x1f   :  { %p3506_p1 = pnand %p3505_p0, %p3499_p11 }
  0x21   :  { %3509 = shalt.err (!%p3506_p1)
}
  0x22   :  { %35 = dma.hbm_to_vmem [thread:$0]  %s3781_s3, 16384, %s3620_s12, [#allocation4], %s3562_s21, %s3562_s21, %s3563_s22  }
  0x23   :  { %s3564_s14 = smov [#allocation8]   ;;  %s3510_s18 = scalar_lea.hbm %s3785_s7, 4096 }
  0x24   :  { %s57_s15 = sshll.u32 %s3564_s14, 4  ;;  %p3511_p2 = scmp.ne.s32.totalorder %s3785_s7, %s3510_s18  ;;  %s58_s15 = int_to_ptr.vmem [resolvable:$true] %s57_s15 }
  0x25   :  { %p3514_p3 = scmp.lt.u32.totalorder %s3510_s18, %s3785_s7 }
  0x27   :  { %p3516_p4 = pnand %p3514_p3, %p3511_p2 }
  0x29   :  { %3519 = shalt.err (!%p3516_p4)
}
  0x2a   :  { %s3520_s25 = scalar_lea.vmem %s58_s15, 4096  ;;  %p3525_p6 = scmp.lt.s32.totalorder %s58_s15, %s58_s15 }
  0x2b   :  { %p3521_p5 = scmp.ne.s32.totalorder %s58_s15, %s3520_s25  ;;  %p3526_p7 = scmp.lt.s32.totalorder %s3520_s25, %s3520_s25 }
  0x2d   :  { %p3527_p8 = por %p3526_p7, %p3525_p6 }
  0x2f   :  { %p3528_p9 = pnand %p3527_p8, %p3521_p5 }
  0x31   :  { %3531 = shalt.err (!%p3528_p9)
}
  0x32   :  { %s3565_s3 = smov 64   ;;  %s3566_s12 = smov 4  }
  0x33   :  { %63 = dma.hbm_to_vmem [thread:$0]  %s3785_s7, 4096, %s58_s15, [#allocation7], %s3565_s3, %s3565_s3, %s3566_s12  }
  0x34   :  { %3554 = dma.done.wait [#allocation4], 16384  }
  0x35   :  { %3555 = vsyncadd [#allocation4], 4294950912 }
  0x36   :  { %3556 = dma.done.wait [#allocation7], 20480  }
  0x37   :  { %3557 = vsyncadd [#allocation7], 4294946816  ;;  %v3567_v0 = vmov 0   ;;  %v3035_v1 = vld [vmem:[%s3779_s1 + $0x4] ss:$16 sps:$4 sm:$0xff]   ;;  %vm107_vm0 = vcmask 130048  }
  0x38   :  { %143 = vmatprep.mubr.bf16.mxu0 %v3567_v0  ;;  %186 = vmatprep.mubr.bf16.mxu1 %v3567_v0  ;;  %v3037_v2 = vld [vmem:[%s3779_s1] ss:$16 sps:$4 sm:$0xff]   ;;  %v3039_v4 = vld [vmem:[%s3779_s1 + $0xc] ss:$16 sps:$4 sm:$0xff]   ;;  %v3041_v5 = vld [vmem:[%s3779_s1 + $0x8] ss:$16 sps:$4 sm:$0xff]  }
  0x39   :  { %111 = vmatprep.subr.bf16.mxu0 %v3035_v1  ;;  %v3038_v3 = vld [vmem:[%s3778_s0] sm:$0xff]   ;;  %154 = vmatprep.subr.bf16.mxu1 %v3039_v4  ;;  %v3045_v8 = vld [vmem:[#allocation3 + $0x8] ss:$16 sps:$4 sm:$0xff]   ;;  %v3047_v9 = vld [vmem:[#allocation3 + $0xc] ss:$16 sps:$4 sm:$0xff]   ;;  %vm2646_vm1 = vcmask 130112  }
  0x3a   :  { %112 = vmatpush1.bf16.msra.mxu0 %v3037_v2  ;;  %v3042_v6 = vld [vmem:[#allocation3] ss:$16 sps:$4 sm:$0xff]   ;;  %v3044_v7 = vld [vmem:[#allocation3 + $0x4] ss:$16 sps:$4 sm:$0xff]   ;;  %155 = vmatpush1.bf16.msra.mxu1 %v3041_v5  ;;  %v3053_v12 = vld [vmem:[#allocation3 + $0x2c] ss:$16 sps:$4 sm:$0xff]  }
  0x3b   :  { %1031 = vmatprep.subr.bf16.mxu0 %v3044_v7  ;;  %v3050_v10 = vld [vmem:[#allocation3 + $0x24] ss:$16 sps:$4 sm:$0xff]   ;;  %1117 = vmatprep.subr.bf16.mxu1 %v3047_v9  ;;  %v3048_v11 = vld [vmem:[#allocation3 + $0x20] ss:$16 sps:$4 sm:$0xff]   ;;  %v3051_v13 = vld [vmem:[#allocation3 + $0x28] ss:$16 sps:$4 sm:$0xff]  }
  0x3c   :  { %v3056_v14 = vld [vmem:[#allocation3 + $0x44] ss:$16 sps:$4 sm:$0xff]   ;;  %v3059_v15 = vld [vmem:[#allocation3 + $0x4c] ss:$16 sps:$4 sm:$0xff]   ;;  %v3054_v16 = vld [vmem:[#allocation3 + $0x40] ss:$16 sps:$4 sm:$0xff]  }
  0x3d   :  { %2672 = vmatmul.mubr.msk.bf16.vlgmr.msra.gmra.mrb[0].mxu0 %vm107_vm0, %v3038_v3  ;;  %2673 = vmatmul.mubr.msk.bf16.vlgmr.msra.gmra.mrb[0].mxu1 %vm107_vm0, %v3038_v3  ;;  %v3062_v17 = vld [vmem:[#allocation3 + $0x64] ss:$16 sps:$4 sm:$0xff]   ;;  %v3057_v18 = vld [vmem:[#allocation3 + $0x48] ss:$16 sps:$4 sm:$0xff]   ;;  %v3065_v19 = vld [vmem:[#allocation3 + $0x6c] ss:$16 sps:$4 sm:$0xff]  }
  0x3e   :  { %1032 = vmatpush1.bf16.msra.mxu0 %v3042_v6  ;;  %1118 = vmatpush1.bf16.msra.mxu1 %v3045_v8  ;;  %v3060_v20 = vld [vmem:[#allocation3 + $0x60] ss:$16 sps:$4 sm:$0xff]   ;;  %v3068_v21 = vld [vmem:[#allocation3 + $0x84] ss:$16 sps:$4 sm:$0xff]   ;;  %v3063_v22 = vld [vmem:[#allocation3 + $0x68] ss:$16 sps:$4 sm:$0xff]  }
  0x3f   :  { %1033 = vmatprep.subr.bf16.mxu0 %v3050_v10  ;;  %1119 = vmatprep.subr.bf16.mxu1 %v3053_v12  ;;  %v3071_v23 = vld [vmem:[#allocation3 + $0x8c] ss:$16 sps:$4 sm:$0xff]   ;;  %v3066_v24 = vld [vmem:[#allocation3 + $0x80] ss:$16 sps:$4 sm:$0xff]   ;;  %v3074_v25 = vld [vmem:[#allocation3 + $0xa4] ss:$16 sps:$4 sm:$0xff]  }
  0x40   :  { %v3069_v26 = vld [vmem:[#allocation3 + $0x88] ss:$16 sps:$4 sm:$0xff]   ;;  %v3077_v27 = vld [vmem:[#allocation3 + $0xac] ss:$16 sps:$4 sm:$0xff]   ;;  %v3072_v28 = vld [vmem:[#allocation3 + $0xa0] ss:$16 sps:$4 sm:$0xff]  }
  0x41   :  { %v3080_v29 = vld [vmem:[#allocation3 + $0xc4] ss:$16 sps:$4 sm:$0xff]   ;;  %v3075_v30 = vld [vmem:[#allocation3 + $0xa8] ss:$16 sps:$4 sm:$0xff]   ;;  %v3083_v31 = vld [vmem:[#allocation3 + $0xcc] ss:$16 sps:$4 sm:$0xff]  }
  0x42   :  { %1034 = vmatpush1.bf16.msra.mxu0 %v3048_v11  ;;  %1120 = vmatpush1.bf16.msra.mxu1 %v3051_v13  ;;  %v3078_v32 = vld [vmem:[#allocation3 + $0xc0] ss:$16 sps:$4 sm:$0xff]   ;;  %v3086_v33 = vld [vmem:[#allocation3 + $0xe4] ss:$16 sps:$4 sm:$0xff]   ;;  %v3081_v34 = vld [vmem:[#allocation3 + $0xc8] ss:$16 sps:$4 sm:$0xff]   ;;  %v214_v11 = vlaneseq }
  0x43   :  { %1035 = vmatprep.subr.bf16.mxu0 %v3056_v14  ;;  %1121 = vmatprep.subr.bf16.mxu1 %v3059_v15  ;;  %v3089_v35 = vld [vmem:[#allocation3 + $0xec] ss:$16 sps:$4 sm:$0xff]   ;;  %v3084_v36 = vld [vmem:[#allocation3 + $0xe0] ss:$16 sps:$4 sm:$0xff]   ;;  %v3092_v37 = vld [vmem:[#allocation3 + $0x104] ss:$16 sps:$4 sm:$0xff]  }
  0x44   :  { %v3087_v38 = vld [vmem:[#allocation3 + $0xe8] ss:$16 sps:$4 sm:$0xff]   ;;  %v3095_v39 = vld [vmem:[#allocation3 + $0x10c] ss:$16 sps:$4 sm:$0xff]   ;;  %v3090_v40 = vld [vmem:[#allocation3 + $0x100] ss:$16 sps:$4 sm:$0xff]  }
  0x45   :  { %v3098_v41 = vld [vmem:[#allocation3 + $0x124] ss:$16 sps:$4 sm:$0xff]   ;;  %v3093_v42 = vld [vmem:[#allocation3 + $0x108] ss:$16 sps:$4 sm:$0xff]   ;;  %v3096_v43 = vld [vmem:[#allocation3 + $0x120] ss:$16 sps:$4 sm:$0xff]  }
  0x46   :  { %1036 = vmatpush1.bf16.msra.mxu0 %v3054_v16  ;;  %1122 = vmatpush1.bf16.msra.mxu1 %v3057_v18  ;;  %v3101_v44 = vld [vmem:[#allocation3 + $0x12c] ss:$16 sps:$4 sm:$0xff]   ;;  %v3099_v45 = vld [vmem:[#allocation3 + $0x128] ss:$16 sps:$4 sm:$0xff]   ;;  %v3104_v46 = vld [vmem:[#allocation3 + $0x144] ss:$16 sps:$4 sm:$0xff]  }
  0x47   :  { %1037 = vmatprep.subr.bf16.mxu0 %v3062_v17  ;;  %1123 = vmatprep.subr.bf16.mxu1 %v3065_v19  ;;  %v3107_v47 = vld [vmem:[#allocation3 + $0x14c] ss:$16 sps:$4 sm:$0xff]   ;;  %v3102_v48 = vld [vmem:[#allocation3 + $0x140] ss:$16 sps:$4 sm:$0xff]   ;;  %v3110_v49 = vld [vmem:[#allocation3 + $0x164] ss:$16 sps:$4 sm:$0xff]  }
  0x48   :  { %v3105_v50 = vld [vmem:[#allocation3 + $0x148] ss:$16 sps:$4 sm:$0xff]   ;;  %v3113_v51 = vld [vmem:[#allocation3 + $0x16c] ss:$16 sps:$4 sm:$0xff]   ;;  %v3108_v52 = vld [vmem:[#allocation3 + $0x160] ss:$16 sps:$4 sm:$0xff]  }
  0x49   :  { %v3116_v53 = vld [vmem:[#allocation3 + $0x184] ss:$16 sps:$4 sm:$0xff]   ;;  %v3111_v54 = vld [vmem:[#allocation3 + $0x168] ss:$16 sps:$4 sm:$0xff]   ;;  %v3119_v55 = vld [vmem:[#allocation3 + $0x18c] ss:$16 sps:$4 sm:$0xff]  }
  0x4a   :  { %1038 = vmatpush1.bf16.msra.mxu0 %v3060_v20  ;;  %1124 = vmatpush1.bf16.msra.mxu1 %v3063_v22  ;;  %v3114_v56 = vld [vmem:[#allocation3 + $0x180] ss:$16 sps:$4 sm:$0xff]   ;;  %v3122_v57 = vld [vmem:[#allocation3 + $0x1a4] ss:$16 sps:$4 sm:$0xff]   ;;  %v3117_v58 = vld [vmem:[#allocation3 + $0x188] ss:$16 sps:$4 sm:$0xff]  }
  0x4b   :  { %1039 = vmatprep.subr.bf16.mxu0 %v3068_v21  ;;  %1125 = vmatprep.subr.bf16.mxu1 %v3071_v23  ;;  %v3125_v59 = vld [vmem:[#allocation3 + $0x1ac] ss:$16 sps:$4 sm:$0xff]   ;;  %v3120_v60 = vld [vmem:[#allocation3 + $0x1a0] ss:$16 sps:$4 sm:$0xff]   ;;  %v3123_v61 = vld [vmem:[#allocation3 + $0x1a8] ss:$16 sps:$4 sm:$0xff]  }
  0x4c   :  { %v3128_v62 = vld [vmem:[#allocation3 + $0x1c4] ss:$16 sps:$4 sm:$0xff]   ;;  %v3131_v63 = vld [vmem:[#allocation3 + $0x1cc] ss:$16 sps:$4 sm:$0xff]   ;;  %v3126_v1 = vld [vmem:[#allocation3 + $0x1c0] ss:$16 sps:$4 sm:$0xff]  }
  0x4d   :  { %v3129_v2 = vld [vmem:[#allocation3 + $0x1c8] ss:$16 sps:$4 sm:$0xff]   ;;  %v3134_v3 = vld [vmem:[#allocation3 + $0x1e4] ss:$16 sps:$4 sm:$0xff]   ;;  %v3137_v4 = vld [vmem:[#allocation3 + $0x1ec] ss:$16 sps:$4 sm:$0xff]  }
  0x4e   :  { %1040 = vmatpush1.bf16.msra.mxu0 %v3066_v24  ;;  %1126 = vmatpush1.bf16.msra.mxu1 %v3069_v26  ;;  %v3132_v5 = vld [vmem:[#allocation3 + $0x1e0] ss:$16 sps:$4 sm:$0xff]   ;;  %v3135_v6 = vld [vmem:[#allocation3 + $0x1e8] ss:$16 sps:$4 sm:$0xff]   ;;  %v3140_v7 = vld [vmem:[#allocation3 + $0x204] ss:$16 sps:$4 sm:$0xff]  }
  0x4f   :  { %1041 = vmatprep.subr.bf16.mxu0 %v3074_v25  ;;  %1127 = vmatprep.subr.bf16.mxu1 %v3077_v27  ;;  %v3143_v8 = vld [vmem:[#allocation3 + $0x20c] ss:$16 sps:$4 sm:$0xff]   ;;  %v3568_v9 = vmov 1966171168   ;;  %v3683_v13 = vshrl.u32 %v214_v11, 7  ;;  %vm2649_vm2 = vcmask 122880  }
  0x50   :  { %v212_v10 = vunpack.c.l.s4 %v3568_v9  ;;  %v2674_v14 = vld.sshfl [vmem:[%s3780_s2] sm:$0x33 pattern:$0x75316420]  ;;  %v3185_v9 = vld [vmem:[#allocation3 + $0x2ec] ss:$16 sps:$4 sm:$0xff]  }
  0x51   :  { %v210_v16 = vcombine.high %v2674_v14, %v2674_v14  ;;  %v3698_v20 = vsub.s32 0, %v3683_v13 }
  0x52   :  { %1042 = vmatpush1.bf16.msra.mxu0 %v3072_v28  ;;  %1128 = vmatpush1.bf16.msra.mxu1 %v3075_v30  ;;  %v213_v12 = vunpack.c.0.s8 %v212_v10  ;;  %v3180_v10 = vld [vmem:[#allocation3 + $0x2e0] ss:$16 sps:$4 sm:$0xff]  }
  0x53   :  { %1043 = vmatprep.subr.bf16.mxu0 %v3080_v29  ;;  %1129 = vmatprep.subr.bf16.mxu1 %v3083_v31 }
  0x54   :  { %v3689_v15 = vsub.s32 %v213_v12, %v3683_v13  ;;  %v3183_v12 = vld [vmem:[#allocation3 + $0x2e8] ss:$16 sps:$4 sm:$0xff]  }
  0x56   :  { %1044 = vmatpush1.bf16.msra.mxu0 %v3078_v32  ;;  %1130 = vmatpush1.bf16.msra.mxu1 %v3081_v34  ;;  %v3692_v17 = vrot.slane %v2674_v14, %v3689_v15  ;;  %v224_v18 = vrot.slane %v210_v16, %v3689_v15  ;;  %v3188_v14 = vld [vmem:[#allocation3 + $0x304] ss:$16 sps:$4 sm:$0xff]   ;;  %v3191_v16 = vld [vmem:[#allocation3 + $0x30c] ss:$16 sps:$4 sm:$0xff]  }
  0x57   :  { %1045 = vmatprep.subr.bf16.mxu0 %v3086_v33  ;;  %1131 = vmatprep.subr.bf16.mxu1 %v3089_v35 }
  0x58   :  { %v228_v19 = vpack.i.b16 %v3692_v17, %v3692_v17  ;;  %v226_v21 = vcombine.high %v224_v18, %v224_v18  ;;  %v235_v22 = vpack.i.b16 %v224_v18, %v224_v18  ;;  %v3186_v18 = vld [vmem:[#allocation3 + $0x300] ss:$16 sps:$4 sm:$0xff]  }
  0x5a   :  { %1046 = vmatpush1.bf16.msra.mxu0 %v3084_v36  ;;  %1132 = vmatpush1.bf16.msra.mxu1 %v3087_v38  ;;  %v233_v25 = vrot.slane %v228_v19, %v3698_v20  ;;  %v249_v26 = vpack.i.b16 %v226_v21, %v226_v21  ;;  %v240_v28 = vrot.slane %v235_v22, %v3698_v20  ;;  %v3189_v19 = vld [vmem:[#allocation3 + $0x308] ss:$16 sps:$4 sm:$0xff]   ;;  %v3194_v21 = vld [vmem:[#allocation3 + $0x324] ss:$16 sps:$4 sm:$0xff]   ;;  %v3197_v22 = vld [vmem:[#allocation3 + $0x32c] ss:$16 sps:$4 sm:$0xff]  }
  0x5b   :  { %1047 = vmatprep.subr.bf16.mxu0 %v3092_v37  ;;  %1133 = vmatprep.subr.bf16.mxu1 %v3095_v39 }
  0x5c   :  { %v254_v36 = vrot.slane %v249_v26, %v3698_v20  ;;  %v3203_v26 = vld [vmem:[#allocation3 + $0x34c] ss:$16 sps:$4 sm:$0xff]  }
  0x5e   :  { %1048 = vmatpush1.bf16.msra.mxu0 %v3090_v40  ;;  %1134 = vmatpush1.bf16.msra.mxu1 %v3093_v42  ;;  %v3138_v42 = vld [vmem:[#allocation3 + $0x200] ss:$16 sps:$4 sm:$0xff]  }
  0x5f   :  { %1049 = vmatprep.subr.bf16.mxu0 %v3098_v41  ;;  %1135 = vmatprep.subr.bf16.mxu1 %v3101_v44 }
  0x62   :  { %1050 = vmatpush1.bf16.msra.mxu0 %v3096_v43  ;;  %1136 = vmatpush1.bf16.msra.mxu1 %v3099_v45  ;;  %v3141_v43 = vld [vmem:[#allocation3 + $0x208] ss:$16 sps:$4 sm:$0xff]   ;;  %v3146_v45 = vld [vmem:[#allocation3 + $0x224] ss:$16 sps:$4 sm:$0xff]  }
  0x63   :  { %1051 = vmatprep.subr.bf16.mxu0 %v3104_v46  ;;  %1137 = vmatprep.subr.bf16.mxu1 %v3107_v47  ;;  %v3149_v46 = vld [vmem:[#allocation3 + $0x22c] ss:$16 sps:$4 sm:$0xff]  }
  0x66   :  { %1052 = vmatpush1.bf16.msra.mxu0 %v3102_v48  ;;  %1138 = vmatpush1.bf16.msra.mxu1 %v3105_v50  ;;  %v3147_v50 = vld [vmem:[#allocation3 + $0x228] ss:$16 sps:$4 sm:$0xff]  }
  0x67   :  { %1053 = vmatprep.subr.bf16.mxu0 %v3110_v49  ;;  %1139 = vmatprep.subr.bf16.mxu1 %v3113_v51  ;;  %v3144_v49 = vld [vmem:[#allocation3 + $0x220] ss:$16 sps:$4 sm:$0xff]   ;;  %v3152_v51 = vld [vmem:[#allocation3 + $0x244] ss:$16 sps:$4 sm:$0xff]  }
  0x6a   :  { %1054 = vmatpush1.bf16.msra.mxu0 %v3108_v52  ;;  %1140 = vmatpush1.bf16.msra.mxu1 %v3111_v54  ;;  %v3155_v52 = vld [vmem:[#allocation3 + $0x24c] ss:$16 sps:$4 sm:$0xff]   ;;  %v3153_v54 = vld [vmem:[#allocation3 + $0x248] ss:$16 sps:$4 sm:$0xff]  }
  0x6b   :  { %1055 = vmatprep.subr.bf16.mxu0 %v3116_v53  ;;  %1141 = vmatprep.subr.bf16.mxu1 %v3119_v55  ;;  %v3150_v53 = vld [vmem:[#allocation3 + $0x240] ss:$16 sps:$4 sm:$0xff]   ;;  %v3158_v55 = vld [vmem:[#allocation3 + $0x264] ss:$16 sps:$4 sm:$0xff]  }
  0x6e   :  { %1056 = vmatpush1.bf16.msra.mxu0 %v3114_v56  ;;  %1142 = vmatpush1.bf16.msra.mxu1 %v3117_v58  ;;  %v3161_v56 = vld [vmem:[#allocation3 + $0x26c] ss:$16 sps:$4 sm:$0xff]   ;;  %v3159_v58 = vld [vmem:[#allocation3 + $0x268] ss:$16 sps:$4 sm:$0xff]  }
  0x6f   :  { %1057 = vmatprep.subr.bf16.mxu0 %v3122_v57  ;;  %1143 = vmatprep.subr.bf16.mxu1 %v3125_v59  ;;  %v3156_v57 = vld [vmem:[#allocation3 + $0x260] ss:$16 sps:$4 sm:$0xff]   ;;  %v3164_v59 = vld [vmem:[#allocation3 + $0x284] ss:$16 sps:$4 sm:$0xff]  }
  0x72   :  { %1058 = vmatpush1.bf16.msra.mxu0 %v3120_v60  ;;  %1144 = vmatpush1.bf16.msra.mxu1 %v3123_v61  ;;  %v3167_v60 = vld [vmem:[#allocation3 + $0x28c] ss:$16 sps:$4 sm:$0xff]   ;;  %v3162_v61 = vld [vmem:[#allocation3 + $0x280] ss:$16 sps:$4 sm:$0xff]  }
  0x73   :  { %1059 = vmatprep.subr.bf16.mxu0 %v3128_v62  ;;  %1145 = vmatprep.subr.bf16.mxu1 %v3131_v63  ;;  %v3165_v62 = vld [vmem:[#allocation3 + $0x288] ss:$16 sps:$4 sm:$0xff]   ;;  %v3170_v63 = vld [vmem:[#allocation3 + $0x2a4] ss:$16 sps:$4 sm:$0xff]  }
  0x76   :  { %1060 = vmatpush1.bf16.msra.mxu0 %v3126_v1  ;;  %1146 = vmatpush1.bf16.msra.mxu1 %v3129_v2  ;;  %v3173_v1 = vld [vmem:[#allocation3 + $0x2ac] ss:$16 sps:$4 sm:$0xff]   ;;  %v3168_v2 = vld [vmem:[#allocation3 + $0x2a0] ss:$16 sps:$4 sm:$0xff]  }
  0x77   :  { %1061 = vmatprep.subr.bf16.mxu0 %v3134_v3  ;;  %1147 = vmatprep.subr.bf16.mxu1 %v3137_v4  ;;  %v3171_v3 = vld [vmem:[#allocation3 + $0x2a8] ss:$16 sps:$4 sm:$0xff]   ;;  %v3176_v4 = vld [vmem:[#allocation3 + $0x2c4] ss:$16 sps:$4 sm:$0xff]  }
  0x7a   :  { %1062 = vmatpush1.bf16.msra.mxu0 %v3132_v5  ;;  %1148 = vmatpush1.bf16.msra.mxu1 %v3135_v6  ;;  %v3179_v5 = vld [vmem:[#allocation3 + $0x2cc] ss:$16 sps:$4 sm:$0xff]   ;;  %v3174_v6 = vld [vmem:[#allocation3 + $0x2c0] ss:$16 sps:$4 sm:$0xff]  }
  0x7b   :  { %1074 = vmatprep.subr.bf16.mxu0 %v3140_v7  ;;  %1160 = vmatprep.subr.bf16.mxu1 %v3143_v8  ;;  %v3177_v7 = vld [vmem:[#allocation3 + $0x2c8] ss:$16 sps:$4 sm:$0xff]   ;;  %v3182_v8 = vld [vmem:[#allocation3 + $0x2e4] ss:$16 sps:$4 sm:$0xff]  }
 0x110   :  { %v145_v23 = vpop.f32.mrb[0].mxu0  ;;  %v3702_v31 = vpop.f32.mrb[0].mxu1 }
 0x111   :  { %v147_v24 = vpop.f32.mrb[1].mxu0  ;;  %v190_v33 = vpop.f32.mrb[1].mxu1 }
 0x112   :  { %v149_v27 = vpop.f32.mrb[2].mxu0  ;;  %v3704_v35 = vpop.f32.mrb[2].mxu1 }
 0x113   :  { %v197_v29 = vpack.c.bf16 %v149_v27, %v145_v23  ;;  %v151_v30 = vpop.f32.mrb[3].mxu0  ;;  %v199_v38 = vpack.c.bf16 %v3704_v35, %v3702_v31  ;;  %v194_v39 = vpop.f32.mrb[3].mxu1  ;;  %v3192_v23 = vld [vmem:[#allocation3 + $0x320] ss:$16 sps:$4 sm:$0xff]   ;;  %v3243_v35 = vld [vmem:[#allocation6 + $0x28] ss:$16 sps:$4 sm:$0xff]  }
 0x114   :  { %v198_v32 = vpack.c.bf16 %v151_v30, %v147_v24  ;;  %v200_v40 = vpack.c.bf16 %v194_v39, %v190_v33  ;;  %v3195_v24 = vld [vmem:[#allocation3 + $0x328] ss:$16 sps:$4 sm:$0xff]   ;;  %v3198_v27 = vld [vmem:[#allocation3 + $0x340] ss:$16 sps:$4 sm:$0xff]   ;;  %v3209_v30 = vld [vmem:[#allocation3 + $0x36c] ss:$16 sps:$4 sm:$0xff]  }
 0x115   :  { %v255_v34 = vadd.bf16 %v233_v25, %v197_v29  ;;  %v3200_v25 = vld [vmem:[#allocation3 + $0x344] ss:$16 sps:$4 sm:$0xff]   ;;  %v3207_v33 = vld [vmem:[#allocation3 + $0x368] ss:$16 sps:$4 sm:$0xff]   ;;  %v3240_v31 = vld [vmem:[#allocation6 + $0x20] ss:$16 sps:$4 sm:$0xff]  }
 0x116   :  { %v256_v37 = vadd.bf16 %v240_v28, %v198_v32  ;;  %v258_v47 = vadd.bf16 %v254_v36, %v200_v40  ;;  %v3201_v28 = vld [vmem:[#allocation3 + $0x348] ss:$16 sps:$4 sm:$0xff]   ;;  %v3206_v29 = vld [vmem:[#allocation3 + $0x364] ss:$16 sps:$4 sm:$0xff]   ;;  %v3204_v32 = vld [vmem:[#allocation3 + $0x360] ss:$16 sps:$4 sm:$0xff]   ;;  %v225_v40 = vcombine.high %v3692_v17, %v3692_v17 }
 0x117   :  { %v259_v44 = vmax.bf16 %v3567_v0, %v255_v34  ;;  %v3212_v34 = vld [vmem:[#allocation3 + $0x384] ss:$16 sps:$4 sm:$0xff]   ;;  %v3215_v36 = vld [vmem:[#allocation3 + $0x38c] ss:$16 sps:$4 sm:$0xff]   ;;  %v3213_v39 = vld [vmem:[#allocation3 + $0x388] ss:$16 sps:$4 sm:$0xff]  }
 0x118   :  { %v260_v41 = vmax.bf16 %v3567_v0, %v256_v37  ;;  %v262_v48 = vmax.bf16 %v3567_v0, %v258_v47  ;;  %v3210_v37 = vld [vmem:[#allocation3 + $0x380] ss:$16 sps:$4 sm:$0xff]   ;;  %v3227_v47 = vld [vmem:[#allocation3 + $0x3cc] ss:$16 sps:$4 sm:$0xff]   ;;  %v3230_v17 = vld [vmem:[#allocation3 + $0x3e4] ss:$16 sps:$4 sm:$0xff]  }
 0x11a   :  { %1063 = vmatprep.mubr.bf16.mxu0 %v260_v41  ;;  %1149 = vmatprep.mubr.bf16.mxu1 %v260_v41  ;;  %v3218_v41 = vld [vmem:[#allocation3 + $0x3a4] ss:$16 sps:$4 sm:$0xff]  }
 0x11b   :  { %1064 = vmatmul.mubr.bf16.vlgmr.msra.gmra.mrb[4].mxu0 %v259_v44  ;;  %1150 = vmatmul.mubr.bf16.vlgmr.msra.gmra.mrb[4].mxu1 %v259_v44  ;;  %v3219_v44 = vld [vmem:[#allocation3 + $0x3a8] ss:$16 sps:$4 sm:$0xff]  }
 0x11c   :  { %1075 = vmatpush1.bf16.msra.mxu0 %v3138_v42  ;;  %1161 = vmatpush1.bf16.msra.mxu1 %v3141_v43  ;;  %v3221_v42 = vld [vmem:[#allocation3 + $0x3ac] ss:$16 sps:$4 sm:$0xff]   ;;  %v3216_v43 = vld [vmem:[#allocation3 + $0x3a0] ss:$16 sps:$4 sm:$0xff]  }
 0x11d   :  { %1076 = vmatprep.subr.bf16.mxu0 %v3146_v45  ;;  %1162 = vmatprep.subr.bf16.mxu1 %v3149_v46  ;;  %v242_v45 = vpack.i.b16 %v225_v40, %v225_v40  ;;  %v3224_v46 = vld [vmem:[#allocation3 + $0x3c4] ss:$16 sps:$4 sm:$0xff]   ;;  %v3294_v40 = vld [vmem:[#allocation6 + $0x140] ss:$16 sps:$4 sm:$0xff]  }
 0x11e   :  { %1106 = vmatprep.mubr.bf16.mxu0 %v262_v48  ;;  %1192 = vmatprep.mubr.bf16.mxu1 %v262_v48  ;;  %v3222_v48 = vld [vmem:[#allocation3 + $0x3c0] ss:$16 sps:$4 sm:$0xff]  }
 0x120   :  { %1077 = vmatpush1.bf16.msra.mxu0 %v3144_v49  ;;  %1163 = vmatpush1.bf16.msra.mxu1 %v3147_v50  ;;  %v3225_v49 = vld [vmem:[#allocation3 + $0x3c8] ss:$16 sps:$4 sm:$0xff]   ;;  %v247_v50 = vrot.slane %v242_v45, %v3698_v20 }
 0x121   :  { %1078 = vmatprep.subr.bf16.mxu0 %v3152_v51  ;;  %1164 = vmatprep.subr.bf16.mxu1 %v3155_v52  ;;  %v3233_v51 = vld [vmem:[#allocation3 + $0x3ec] ss:$16 sps:$4 sm:$0xff]   ;;  %v3228_v52 = vld [vmem:[#allocation3 + $0x3e0] ss:$16 sps:$4 sm:$0xff]   ;;  %v3303_v45 = vld [vmem:[#allocation6 + $0x168] ss:$16 sps:$4 sm:$0xff]  }
 0x124   :  { %1079 = vmatpush1.bf16.msra.mxu0 %v3150_v53  ;;  %1165 = vmatpush1.bf16.msra.mxu1 %v3153_v54  ;;  %v3231_v53 = vld [vmem:[#allocation3 + $0x3e8] ss:$16 sps:$4 sm:$0xff]   ;;  %v257_v54 = vadd.bf16 %v247_v50, %v199_v38  ;;  %v3248_v38 = vld [vmem:[#allocation6 + $0x44] ss:$16 sps:$4 sm:$0xff]  }
 0x125   :  { %1080 = vmatprep.subr.bf16.mxu0 %v3158_v55  ;;  %1166 = vmatprep.subr.bf16.mxu1 %v3161_v56  ;;  %v3236_v55 = vld [vmem:[#allocation6 + $0x4] ss:$16 sps:$4 sm:$0xff]   ;;  %v3239_v56 = vld [vmem:[#allocation6 + $0xc] ss:$16 sps:$4 sm:$0xff]  }
 0x126   :  { %v3314_v50 = vld [vmem:[#allocation6 + $0x1a4] ss:$16 sps:$4 sm:$0xff]  }
 0x128   :  { %1081 = vmatpush1.bf16.msra.mxu0 %v3156_v57  ;;  %1167 = vmatpush1.bf16.msra.mxu1 %v3159_v58  ;;  %v3234_v57 = vld [vmem:[#allocation6] ss:$16 sps:$4 sm:$0xff]   ;;  %v3237_v58 = vld [vmem:[#allocation6 + $0x8] ss:$16 sps:$4 sm:$0xff]  }
 0x129   :  { %1082 = vmatprep.subr.bf16.mxu0 %v3164_v59  ;;  %1168 = vmatprep.subr.bf16.mxu1 %v3167_v60  ;;  %v261_v59 = vmax.bf16 %v3567_v0, %v257_v54  ;;  %v3242_v60 = vld [vmem:[#allocation6 + $0x24] ss:$16 sps:$4 sm:$0xff]   ;;  %v3323_v54 = vld [vmem:[#allocation6 + $0x1cc] ss:$16 sps:$4 sm:$0xff]  }
 0x12c   :  { %1083 = vmatpush1.bf16.msra.mxu0 %v3162_v61  ;;  %1169 = vmatpush1.bf16.msra.mxu1 %v3165_v62  ;;  %v3245_v61 = vld [vmem:[#allocation6 + $0x2c] ss:$16 sps:$4 sm:$0xff]  }
 0x12d   :  { %1084 = vmatprep.subr.bf16.mxu0 %v3170_v63  ;;  %1170 = vmatprep.subr.bf16.mxu1 %v3173_v1  ;;  %v3251_v62 = vld [vmem:[#allocation6 + $0x4c] ss:$16 sps:$4 sm:$0xff]   ;;  %v3246_v63 = vld [vmem:[#allocation6 + $0x40] ss:$16 sps:$4 sm:$0xff]   ;;  %v3249_v1 = vld [vmem:[#allocation6 + $0x48] ss:$16 sps:$4 sm:$0xff]  }
 0x130   :  { %1085 = vmatpush1.bf16.msra.mxu0 %v3168_v2  ;;  %1171 = vmatpush1.bf16.msra.mxu1 %v3171_v3  ;;  %v3254_v2 = vld [vmem:[#allocation6 + $0x64] ss:$16 sps:$4 sm:$0xff]   ;;  %v3257_v3 = vld [vmem:[#allocation6 + $0x6c] ss:$16 sps:$4 sm:$0xff]  }
 0x131   :  { %1086 = vmatprep.subr.bf16.mxu0 %v3176_v4  ;;  %1172 = vmatprep.subr.bf16.mxu1 %v3179_v5  ;;  %v3252_v4 = vld [vmem:[#allocation6 + $0x60] ss:$16 sps:$4 sm:$0xff]   ;;  %v3255_v5 = vld [vmem:[#allocation6 + $0x68] ss:$16 sps:$4 sm:$0xff]  }
 0x134   :  { %1087 = vmatpush1.bf16.msra.mxu0 %v3174_v6  ;;  %1173 = vmatpush1.bf16.msra.mxu1 %v3177_v7  ;;  %v3260_v6 = vld [vmem:[#allocation6 + $0x84] ss:$16 sps:$4 sm:$0xff]   ;;  %v3263_v7 = vld [vmem:[#allocation6 + $0x8c] ss:$16 sps:$4 sm:$0xff]  }
 0x135   :  { %1088 = vmatprep.subr.bf16.mxu0 %v3182_v8  ;;  %1174 = vmatprep.subr.bf16.mxu1 %v3185_v9  ;;  %v3258_v8 = vld [vmem:[#allocation6 + $0x80] ss:$16 sps:$4 sm:$0xff]   ;;  %v3261_v9 = vld [vmem:[#allocation6 + $0x88] ss:$16 sps:$4 sm:$0xff]  }
 0x138   :  { %1089 = vmatpush1.bf16.msra.mxu0 %v3180_v10  ;;  %1175 = vmatpush1.bf16.msra.mxu1 %v3183_v12  ;;  %v3266_v10 = vld [vmem:[#allocation6 + $0xa4] ss:$16 sps:$4 sm:$0xff]   ;;  %v3269_v12 = vld [vmem:[#allocation6 + $0xac] ss:$16 sps:$4 sm:$0xff]  }
 0x139   :  { %1090 = vmatprep.subr.bf16.mxu0 %v3188_v14  ;;  %1176 = vmatprep.subr.bf16.mxu1 %v3191_v16  ;;  %v3264_v14 = vld [vmem:[#allocation6 + $0xa0] ss:$16 sps:$4 sm:$0xff]   ;;  %v3267_v16 = vld [vmem:[#allocation6 + $0xa8] ss:$16 sps:$4 sm:$0xff]  }
 0x13c   :  { %1091 = vmatpush1.bf16.msra.mxu0 %v3186_v18  ;;  %1177 = vmatpush1.bf16.msra.mxu1 %v3189_v19  ;;  %v3272_v18 = vld [vmem:[#allocation6 + $0xc4] ss:$16 sps:$4 sm:$0xff]   ;;  %v3275_v19 = vld [vmem:[#allocation6 + $0xcc] ss:$16 sps:$4 sm:$0xff]  }
 0x13d   :  { %1092 = vmatprep.subr.bf16.mxu0 %v3194_v21  ;;  %1178 = vmatprep.subr.bf16.mxu1 %v3197_v22  ;;  %v3270_v21 = vld [vmem:[#allocation6 + $0xc0] ss:$16 sps:$4 sm:$0xff]   ;;  %v3273_v22 = vld [vmem:[#allocation6 + $0xc8] ss:$16 sps:$4 sm:$0xff]  }
 0x140   :  { %1093 = vmatpush1.bf16.msra.mxu0 %v3192_v23  ;;  %1179 = vmatpush1.bf16.msra.mxu1 %v3195_v24  ;;  %v3278_v23 = vld [vmem:[#allocation6 + $0xe4] ss:$16 sps:$4 sm:$0xff]   ;;  %v3281_v24 = vld [vmem:[#allocation6 + $0xec] ss:$16 sps:$4 sm:$0xff]  }
 0x141   :  { %1094 = vmatprep.subr.bf16.mxu0 %v3200_v25  ;;  %1180 = vmatprep.subr.bf16.mxu1 %v3203_v26  ;;  %v3276_v25 = vld [vmem:[#allocation6 + $0xe0] ss:$16 sps:$4 sm:$0xff]   ;;  %v3279_v26 = vld [vmem:[#allocation6 + $0xe8] ss:$16 sps:$4 sm:$0xff]  }
 0x144   :  { %1095 = vmatpush1.bf16.msra.mxu0 %v3198_v27  ;;  %1181 = vmatpush1.bf16.msra.mxu1 %v3201_v28  ;;  %v3284_v27 = vld [vmem:[#allocation6 + $0x104] ss:$16 sps:$4 sm:$0xff]   ;;  %v3287_v28 = vld [vmem:[#allocation6 + $0x10c] ss:$16 sps:$4 sm:$0xff]  }
 0x145   :  { %1096 = vmatprep.subr.bf16.mxu0 %v3206_v29  ;;  %1182 = vmatprep.subr.bf16.mxu1 %v3209_v30  ;;  %v3282_v29 = vld [vmem:[#allocation6 + $0x100] ss:$16 sps:$4 sm:$0xff]   ;;  %v3285_v30 = vld [vmem:[#allocation6 + $0x108] ss:$16 sps:$4 sm:$0xff]  }
 0x148   :  { %1097 = vmatpush1.bf16.msra.mxu0 %v3204_v32  ;;  %1183 = vmatpush1.bf16.msra.mxu1 %v3207_v33  ;;  %v3290_v32 = vld [vmem:[#allocation6 + $0x124] ss:$16 sps:$4 sm:$0xff]   ;;  %v3293_v33 = vld [vmem:[#allocation6 + $0x12c] ss:$16 sps:$4 sm:$0xff]  }
 0x149   :  { %1098 = vmatprep.subr.bf16.mxu0 %v3212_v34  ;;  %1184 = vmatprep.subr.bf16.mxu1 %v3215_v36  ;;  %v3288_v34 = vld [vmem:[#allocation6 + $0x120] ss:$16 sps:$4 sm:$0xff]   ;;  %v3291_v36 = vld [vmem:[#allocation6 + $0x128] ss:$16 sps:$4 sm:$0xff]  }
 0x14c   :  { %1099 = vmatpush1.bf16.msra.mxu0 %v3210_v37  ;;  %1185 = vmatpush1.bf16.msra.mxu1 %v3213_v39  ;;  %v3296_v37 = vld [vmem:[#allocation6 + $0x144] ss:$16 sps:$4 sm:$0xff]   ;;  %v3299_v39 = vld [vmem:[#allocation6 + $0x14c] ss:$16 sps:$4 sm:$0xff]  }
 0x14d   :  { %1100 = vmatprep.subr.bf16.mxu0 %v3218_v41  ;;  %1186 = vmatprep.subr.bf16.mxu1 %v3221_v42  ;;  %v3297_v41 = vld [vmem:[#allocation6 + $0x148] ss:$16 sps:$4 sm:$0xff]   ;;  %v3302_v42 = vld [vmem:[#allocation6 + $0x164] ss:$16 sps:$4 sm:$0xff]  }
 0x150   :  { %1101 = vmatpush1.bf16.msra.mxu0 %v3216_v43  ;;  %1187 = vmatpush1.bf16.msra.mxu1 %v3219_v44  ;;  %v3305_v43 = vld [vmem:[#allocation6 + $0x16c] ss:$16 sps:$4 sm:$0xff]   ;;  %v3300_v44 = vld [vmem:[#allocation6 + $0x160] ss:$16 sps:$4 sm:$0xff]  }
 0x151   :  { %1102 = vmatprep.subr.bf16.mxu0 %v3224_v46  ;;  %1188 = vmatprep.subr.bf16.mxu1 %v3227_v47  ;;  %v3308_v46 = vld [vmem:[#allocation6 + $0x184] ss:$16 sps:$4 sm:$0xff]   ;;  %v3311_v47 = vld [vmem:[#allocation6 + $0x18c] ss:$16 sps:$4 sm:$0xff]  }
 0x154   :  { %1103 = vmatpush1.bf16.msra.mxu0 %v3222_v48  ;;  %1189 = vmatpush1.bf16.msra.mxu1 %v3225_v49  ;;  %v3306_v48 = vld [vmem:[#allocation6 + $0x180] ss:$16 sps:$4 sm:$0xff]   ;;  %v3309_v49 = vld [vmem:[#allocation6 + $0x188] ss:$16 sps:$4 sm:$0xff]  }
 0x155   :  { %1104 = vmatprep.subr.bf16.mxu0 %v3230_v17  ;;  %1190 = vmatprep.subr.bf16.mxu1 %v3233_v51  ;;  %v3317_v17 = vld [vmem:[#allocation6 + $0x1ac] ss:$16 sps:$4 sm:$0xff]   ;;  %v3312_v51 = vld [vmem:[#allocation6 + $0x1a0] ss:$16 sps:$4 sm:$0xff]  }
 0x158   :  { %1105 = vmatpush1.bf16.msra.mxu0 %v3228_v52  ;;  %1191 = vmatpush1.bf16.msra.mxu1 %v3231_v53  ;;  %v3315_v52 = vld [vmem:[#allocation6 + $0x1a8] ss:$16 sps:$4 sm:$0xff]   ;;  %v3320_v53 = vld [vmem:[#allocation6 + $0x1c4] ss:$16 sps:$4 sm:$0xff]  }
 0x159   :  { %2037 = vmatprep.subr.bf16.mxu0 %v3236_v55  ;;  %2123 = vmatprep.subr.bf16.mxu1 %v3239_v56  ;;  %v3318_v55 = vld [vmem:[#allocation6 + $0x1c0] ss:$16 sps:$4 sm:$0xff]   ;;  %v3321_v56 = vld [vmem:[#allocation6 + $0x1c8] ss:$16 sps:$4 sm:$0xff]  }
 0x15b   :  { %1107 = vmatmul.mubr.bf16.vlgmr.msra.gmra.mrb[4].mxu0 %v261_v59  ;;  %1193 = vmatmul.mubr.bf16.vlgmr.msra.gmra.mrb[4].mxu1 %v261_v59  ;;  %v3324_v59 = vld [vmem:[#allocation6 + $0x1e0] ss:$16 sps:$4 sm:$0xff]  }
 0x15c   :  { %2038 = vmatpush1.bf16.msra.mxu0 %v3234_v57  ;;  %2124 = vmatpush1.bf16.msra.mxu1 %v3237_v58  ;;  %v3326_v57 = vld [vmem:[#allocation6 + $0x1e4] ss:$16 sps:$4 sm:$0xff]   ;;  %v3329_v58 = vld [vmem:[#allocation6 + $0x1ec] ss:$16 sps:$4 sm:$0xff]  }
 0x15d   :  { %2039 = vmatprep.subr.bf16.mxu0 %v3242_v60  ;;  %2125 = vmatprep.subr.bf16.mxu1 %v3245_v61  ;;  %v3327_v60 = vld [vmem:[#allocation6 + $0x1e8] ss:$16 sps:$4 sm:$0xff]   ;;  %v3332_v61 = vld [vmem:[#allocation6 + $0x204] ss:$16 sps:$4 sm:$0xff]  }
 0x160   :  { %2040 = vmatpush1.bf16.msra.mxu0 %v3240_v31  ;;  %2126 = vmatpush1.bf16.msra.mxu1 %v3243_v35  ;;  %v3335_v31 = vld [vmem:[#allocation6 + $0x20c] ss:$16 sps:$4 sm:$0xff]   ;;  %v2803_v35 = vld.sshfl [vmem:[%s3782_s4] sm:$0x33 pattern:$0x75316420] }
 0x161   :  { %2041 = vmatprep.subr.bf16.mxu0 %v3248_v38  ;;  %2127 = vmatprep.subr.bf16.mxu1 %v3251_v62  ;;  %v1216_v38 = vcombine.high %v2803_v35, %v2803_v35 }
 0x163   :  { %v1230_v62 = vrot.slane %v1216_v38, %v3689_v15  ;;  %v3383_v38 = vld [vmem:[#allocation6 + $0x30c] ss:$16 sps:$4 sm:$0xff]  }
 0x164   :  { %2042 = vmatpush1.bf16.msra.mxu0 %v3246_v63  ;;  %2128 = vmatpush1.bf16.msra.mxu1 %v3249_v1  ;;  %v3724_v63 = vrot.slane %v2803_v35, %v3689_v15  ;;  %v3380_v35 = vld [vmem:[#allocation6 + $0x304] ss:$16 sps:$4 sm:$0xff]  }
 0x165   :  { %2043 = vmatprep.subr.bf16.mxu0 %v3254_v2  ;;  %2129 = vmatprep.subr.bf16.mxu1 %v3257_v3  ;;  %v1232_v1 = vcombine.high %v1230_v62, %v1230_v62  ;;  %v1241_v3 = vpack.i.b16 %v1230_v62, %v1230_v62  ;;  %v3378_v62 = vld [vmem:[#allocation6 + $0x300] ss:$16 sps:$4 sm:$0xff]  }
 0x166   :  { %v1234_v2 = vpack.i.b16 %v3724_v63, %v3724_v63 }
 0x168   :  { %2044 = vmatpush1.bf16.msra.mxu0 %v3252_v4  ;;  %2130 = vmatpush1.bf16.msra.mxu1 %v3255_v5  ;;  %v1255_v4 = vpack.i.b16 %v1232_v1, %v1232_v1  ;;  %v3381_v1 = vld [vmem:[#allocation6 + $0x308] ss:$16 sps:$4 sm:$0xff]  }
 0x169   :  { %2045 = vmatprep.subr.bf16.mxu0 %v3260_v6  ;;  %2131 = vmatprep.subr.bf16.mxu1 %v3263_v7 }
 0x16c   :  { %2046 = vmatpush1.bf16.msra.mxu0 %v3258_v8  ;;  %2132 = vmatpush1.bf16.msra.mxu1 %v3261_v9  ;;  %v1239_v9 = vrot.slane %v1234_v2, %v3698_v20  ;;  %v3386_v2 = vld [vmem:[#allocation6 + $0x324] ss:$16 sps:$4 sm:$0xff]  }
 0x16d   :  { %2047 = vmatprep.subr.bf16.mxu0 %v3266_v10  ;;  %2133 = vmatprep.subr.bf16.mxu1 %v3269_v12 }
 0x170   :  { %2048 = vmatpush1.bf16.msra.mxu0 %v3264_v14  ;;  %2134 = vmatpush1.bf16.msra.mxu1 %v3267_v16  ;;  %v1246_v14 = vrot.slane %v1241_v3, %v3698_v20  ;;  %v3389_v3 = vld [vmem:[#allocation6 + $0x32c] ss:$16 sps:$4 sm:$0xff]  }
 0x171   :  { %2049 = vmatprep.subr.bf16.mxu0 %v3272_v18  ;;  %2135 = vmatprep.subr.bf16.mxu1 %v3275_v19 }
 0x174   :  { %2050 = vmatpush1.bf16.msra.mxu0 %v3270_v21  ;;  %2136 = vmatpush1.bf16.msra.mxu1 %v3273_v22  ;;  %v1260_v22 = vrot.slane %v1255_v4, %v3698_v20  ;;  %v3384_v4 = vld [vmem:[#allocation6 + $0x320] ss:$16 sps:$4 sm:$0xff]  }
 0x175   :  { %2051 = vmatprep.subr.bf16.mxu0 %v3278_v23  ;;  %2137 = vmatprep.subr.bf16.mxu1 %v3281_v24 }
 0x178   :  { %2052 = vmatpush1.bf16.msra.mxu0 %v3276_v25  ;;  %2138 = vmatpush1.bf16.msra.mxu1 %v3279_v26 }
 0x179   :  { %2053 = vmatprep.subr.bf16.mxu0 %v3284_v27  ;;  %2139 = vmatprep.subr.bf16.mxu1 %v3287_v28 }
 0x17c   :  { %2054 = vmatpush1.bf16.msra.mxu0 %v3282_v29  ;;  %2140 = vmatpush1.bf16.msra.mxu1 %v3285_v30  ;;  %v3330_v29 = vld [vmem:[#allocation6 + $0x200] ss:$16 sps:$4 sm:$0xff]   ;;  %v3333_v30 = vld [vmem:[#allocation6 + $0x208] ss:$16 sps:$4 sm:$0xff]  }
 0x17d   :  { %2055 = vmatprep.subr.bf16.mxu0 %v3290_v32  ;;  %2141 = vmatprep.subr.bf16.mxu1 %v3293_v33  ;;  %v3338_v33 = vld [vmem:[#allocation6 + $0x224] ss:$16 sps:$4 sm:$0xff]  }
 0x180   :  { %2056 = vmatpush1.bf16.msra.mxu0 %v3288_v34  ;;  %2142 = vmatpush1.bf16.msra.mxu1 %v3291_v36  ;;  %v3341_v34 = vld [vmem:[#allocation6 + $0x22c] ss:$16 sps:$4 sm:$0xff]  }
 0x181   :  { %2057 = vmatprep.subr.bf16.mxu0 %v3296_v37  ;;  %2143 = vmatprep.subr.bf16.mxu1 %v3299_v39  ;;  %v3336_v37 = vld [vmem:[#allocation6 + $0x220] ss:$16 sps:$4 sm:$0xff]   ;;  %v3339_v39 = vld [vmem:[#allocation6 + $0x228] ss:$16 sps:$4 sm:$0xff]  }
 0x184   :  { %2058 = vmatpush1.bf16.msra.mxu0 %v3294_v40  ;;  %2144 = vmatpush1.bf16.msra.mxu1 %v3297_v41  ;;  %v3344_v40 = vld [vmem:[#allocation6 + $0x244] ss:$16 sps:$4 sm:$0xff]   ;;  %v3347_v41 = vld [vmem:[#allocation6 + $0x24c] ss:$16 sps:$4 sm:$0xff]  }
 0x185   :  { %2059 = vmatprep.subr.bf16.mxu0 %v3302_v42  ;;  %2145 = vmatprep.subr.bf16.mxu1 %v3305_v43  ;;  %v3342_v42 = vld [vmem:[#allocation6 + $0x240] ss:$16 sps:$4 sm:$0xff]   ;;  %v3345_v43 = vld [vmem:[#allocation6 + $0x248] ss:$16 sps:$4 sm:$0xff]  }
 0x188   :  { %2060 = vmatpush1.bf16.msra.mxu0 %v3300_v44  ;;  %2146 = vmatpush1.bf16.msra.mxu1 %v3303_v45  ;;  %v3350_v44 = vld [vmem:[#allocation6 + $0x264] ss:$16 sps:$4 sm:$0xff]   ;;  %v3353_v45 = vld [vmem:[#allocation6 + $0x26c] ss:$16 sps:$4 sm:$0xff]  }
 0x189   :  { %2061 = vmatprep.subr.bf16.mxu0 %v3308_v46  ;;  %2147 = vmatprep.subr.bf16.mxu1 %v3311_v47  ;;  %v3348_v46 = vld [vmem:[#allocation6 + $0x260] ss:$16 sps:$4 sm:$0xff]   ;;  %v3351_v47 = vld [vmem:[#allocation6 + $0x268] ss:$16 sps:$4 sm:$0xff]  }
 0x18c   :  { %2062 = vmatpush1.bf16.msra.mxu0 %v3306_v48  ;;  %2148 = vmatpush1.bf16.msra.mxu1 %v3309_v49  ;;  %v3356_v48 = vld [vmem:[#allocation6 + $0x284] ss:$16 sps:$4 sm:$0xff]   ;;  %v3359_v49 = vld [vmem:[#allocation6 + $0x28c] ss:$16 sps:$4 sm:$0xff]  }
 0x18d   :  { %2063 = vmatprep.subr.bf16.mxu0 %v3314_v50  ;;  %2149 = vmatprep.subr.bf16.mxu1 %v3317_v17  ;;  %v3354_v50 = vld [vmem:[#allocation6 + $0x280] ss:$16 sps:$4 sm:$0xff]   ;;  %v3357_v17 = vld [vmem:[#allocation6 + $0x288] ss:$16 sps:$4 sm:$0xff]  }
 0x190   :  { %2064 = vmatpush1.bf16.msra.mxu0 %v3312_v51  ;;  %2150 = vmatpush1.bf16.msra.mxu1 %v3315_v52  ;;  %v3362_v51 = vld [vmem:[#allocation6 + $0x2a4] ss:$16 sps:$4 sm:$0xff]   ;;  %v3365_v52 = vld [vmem:[#allocation6 + $0x2ac] ss:$16 sps:$4 sm:$0xff]  }
 0x191   :  { %2065 = vmatprep.subr.bf16.mxu0 %v3320_v53  ;;  %2151 = vmatprep.subr.bf16.mxu1 %v3323_v54  ;;  %v3360_v53 = vld [vmem:[#allocation6 + $0x2a0] ss:$16 sps:$4 sm:$0xff]   ;;  %v3363_v54 = vld [vmem:[#allocation6 + $0x2a8] ss:$16 sps:$4 sm:$0xff]  }
 0x194   :  { %2066 = vmatpush1.bf16.msra.mxu0 %v3318_v55  ;;  %2152 = vmatpush1.bf16.msra.mxu1 %v3321_v56  ;;  %v3368_v55 = vld [vmem:[#allocation6 + $0x2c4] ss:$16 sps:$4 sm:$0xff]   ;;  %v3371_v56 = vld [vmem:[#allocation6 + $0x2cc] ss:$16 sps:$4 sm:$0xff]  }
 0x195   :  { %2067 = vmatprep.subr.bf16.mxu0 %v3326_v57  ;;  %2153 = vmatprep.subr.bf16.mxu1 %v3329_v58  ;;  %v3366_v57 = vld [vmem:[#allocation6 + $0x2c0] ss:$16 sps:$4 sm:$0xff]   ;;  %v3369_v58 = vld [vmem:[#allocation6 + $0x2c8] ss:$16 sps:$4 sm:$0xff]  }
 0x198   :  { %2068 = vmatpush1.bf16.msra.mxu0 %v3324_v59  ;;  %2154 = vmatpush1.bf16.msra.mxu1 %v3327_v60  ;;  %v3374_v59 = vld [vmem:[#allocation6 + $0x2e4] ss:$16 sps:$4 sm:$0xff]   ;;  %v3377_v60 = vld [vmem:[#allocation6 + $0x2ec] ss:$16 sps:$4 sm:$0xff]  }
 0x199   :  { %2080 = vmatprep.subr.bf16.mxu0 %v3332_v61  ;;  %2166 = vmatprep.subr.bf16.mxu1 %v3335_v31  ;;  %v3372_v61 = vld [vmem:[#allocation6 + $0x2e0] ss:$16 sps:$4 sm:$0xff]   ;;  %v3375_v31 = vld [vmem:[#allocation6 + $0x2e8] ss:$16 sps:$4 sm:$0xff]  }
 0x22e   :  { %v1108_v5 = vpop.f32.mrb[4].mxu0  ;;  %v3728_v6 = vpop.f32.mrb[4].mxu1 }
 0x22f   :  { %v1110_v7 = vpop.f32.mrb[5].mxu0  ;;  %v1196_v8 = vpop.f32.mrb[5].mxu1 }
 0x230   :  { %v1112_v10 = vpop.f32.mrb[6].mxu0  ;;  %v3731_v12 = vpop.f32.mrb[6].mxu1 }
 0x231   :  { %v1203_v16 = vpack.c.bf16 %v1112_v10, %v1108_v5  ;;  %v1205_v18 = vpack.c.bf16 %v3731_v12, %v3728_v6  ;;  %v1114_v19 = vpop.f32.mrb[7].mxu0  ;;  %v1200_v21 = vpop.f32.mrb[7].mxu1  ;;  %v3387_v5 = vld [vmem:[#allocation6 + $0x328] ss:$16 sps:$4 sm:$0xff]  }
 0x232   :  { %v1204_v23 = vpack.c.bf16 %v1114_v19, %v1110_v7  ;;  %v1206_v24 = vpack.c.bf16 %v1200_v21, %v1196_v8  ;;  %v3392_v7 = vld [vmem:[#allocation6 + $0x344] ss:$16 sps:$4 sm:$0xff]   ;;  %v3395_v8 = vld [vmem:[#allocation6 + $0x34c] ss:$16 sps:$4 sm:$0xff]   ;;  %v3393_v10 = vld [vmem:[#allocation6 + $0x348] ss:$16 sps:$4 sm:$0xff]  }
 0x233   :  { %v1261_v25 = vadd.bf16 %v1239_v9, %v1203_v16  ;;  %v3390_v9 = vld [vmem:[#allocation6 + $0x340] ss:$16 sps:$4 sm:$0xff]   ;;  %v3401_v16 = vld [vmem:[#allocation6 + $0x36c] ss:$16 sps:$4 sm:$0xff]   ;;  %v3399_v21 = vld [vmem:[#allocation6 + $0x368] ss:$16 sps:$4 sm:$0xff]  }
 0x234   :  { %v1262_v26 = vadd.bf16 %v1246_v14, %v1204_v23  ;;  %v1264_v27 = vadd.bf16 %v1260_v22, %v1206_v24  ;;  %v3398_v14 = vld [vmem:[#allocation6 + $0x364] ss:$16 sps:$4 sm:$0xff]   ;;  %v3396_v19 = vld [vmem:[#allocation6 + $0x360] ss:$16 sps:$4 sm:$0xff]   ;;  %v3407_v23 = vld [vmem:[#allocation6 + $0x38c] ss:$16 sps:$4 sm:$0xff]  }
 0x235   :  { %v1265_v32 = vmax.bf16 %v3567_v0, %v1261_v25  ;;  %v3404_v22 = vld [vmem:[#allocation6 + $0x384] ss:$16 sps:$4 sm:$0xff]   ;;  %v3402_v24 = vld [vmem:[#allocation6 + $0x380] ss:$16 sps:$4 sm:$0xff]   ;;  %v3405_v25 = vld [vmem:[#allocation6 + $0x388] ss:$16 sps:$4 sm:$0xff]  }
 0x236   :  { %v1266_v28 = vmax.bf16 %v3567_v0, %v1262_v26  ;;  %v1268_v36 = vmax.bf16 %v3567_v0, %v1264_v27  ;;  %v1231_v26 = vcombine.high %v3724_v63, %v3724_v63  ;;  %v3410_v27 = vld [vmem:[#allocation6 + $0x3a4] ss:$16 sps:$4 sm:$0xff]   ;;  %v3432_v6 = vld [vmem:[#allocation8 + $0x8] sm:$0xff]  }
 0x237   :  { %v3422_v63 = vld [vmem:[#allocation6 + $0x3e4] ss:$16 sps:$4 sm:$0xff]   ;;  %v3433_v12 = vld [vmem:[#allocation8 + $0x88] sm:$0xff]  }
 0x238   :  { %2069 = vmatprep.mubr.bf16.mxu0 %v1266_v28  ;;  %2155 = vmatprep.mubr.bf16.mxu1 %v1266_v28  ;;  %v3413_v28 = vld [vmem:[#allocation6 + $0x3ac] ss:$16 sps:$4 sm:$0xff]  }
 0x239   :  { %2070 = vmatmul.mubr.bf16.vlgmr.msra.gmra.mrb[8].mxu0 %v1265_v32  ;;  %2156 = vmatmul.mubr.bf16.vlgmr.msra.gmra.mrb[8].mxu1 %v1265_v32  ;;  %v1248_v32 = vpack.i.b16 %v1231_v26, %v1231_v26 }
 0x23a   :  { %2081 = vmatpush1.bf16.msra.mxu0 %v3330_v29  ;;  %2167 = vmatpush1.bf16.msra.mxu1 %v3333_v30  ;;  %v3408_v29 = vld [vmem:[#allocation6 + $0x3a0] ss:$16 sps:$4 sm:$0xff]   ;;  %v3411_v30 = vld [vmem:[#allocation6 + $0x3a8] ss:$16 sps:$4 sm:$0xff]  }
 0x23b   :  { %2112 = vmatprep.mubr.bf16.mxu0 %v1268_v36  ;;  %2198 = vmatprep.mubr.bf16.mxu1 %v1268_v36  ;;  %v3414_v36 = vld [vmem:[#allocation6 + $0x3c0] ss:$16 sps:$4 sm:$0xff]  }
 0x23c   :  { %2082 = vmatprep.subr.bf16.mxu0 %v3338_v33  ;;  %2168 = vmatprep.subr.bf16.mxu1 %v3341_v34  ;;  %v3416_v33 = vld [vmem:[#allocation6 + $0x3c4] ss:$16 sps:$4 sm:$0xff]   ;;  %v3419_v34 = vld [vmem:[#allocation6 + $0x3cc] ss:$16 sps:$4 sm:$0xff]  }
 0x23e   :  { %2083 = vmatpush1.bf16.msra.mxu0 %v3336_v37  ;;  %2169 = vmatpush1.bf16.msra.mxu1 %v3339_v39  ;;  %v3417_v37 = vld [vmem:[#allocation6 + $0x3c8] ss:$16 sps:$4 sm:$0xff]   ;;  %v1253_v39 = vrot.slane %v1248_v32, %v3698_v20 }
 0x23f   :  { %2084 = vmatprep.subr.bf16.mxu0 %v3344_v40  ;;  %2170 = vmatprep.subr.bf16.mxu1 %v3347_v41  ;;  %v3425_v40 = vld [vmem:[#allocation6 + $0x3ec] ss:$16 sps:$4 sm:$0xff]   ;;  %v3420_v41 = vld [vmem:[#allocation6 + $0x3e0] ss:$16 sps:$4 sm:$0xff]  }
 0x242   :  { %2085 = vmatpush1.bf16.msra.mxu0 %v3342_v42  ;;  %2171 = vmatpush1.bf16.msra.mxu1 %v3345_v43  ;;  %v3423_v42 = vld [vmem:[#allocation6 + $0x3e8] ss:$16 sps:$4 sm:$0xff]   ;;  %v1263_v43 = vadd.bf16 %v1253_v39, %v1205_v18  ;;  %v3434_v18 = vld [vmem:[#allocation8 + $0x50] sm:$0xff]  }
 0x243   :  { %2086 = vmatprep.subr.bf16.mxu0 %v3350_v44  ;;  %2172 = vmatprep.subr.bf16.mxu1 %v3353_v45  ;;  %v3426_v44 = vld [vmem:[#allocation8 + $0x40] sm:$0xff]  }
 0x244   :  { %v3427_v45 = vld [vmem:[#allocation8 + $0xc0] sm:$0xff]  }
 0x246   :  { %2087 = vmatpush1.bf16.msra.mxu0 %v3348_v46  ;;  %2173 = vmatpush1.bf16.msra.mxu1 %v3351_v47  ;;  %v3428_v46 = vld [vmem:[#allocation8] sm:$0xff]  }
 0x247   :  { %2088 = vmatprep.subr.bf16.mxu0 %v3356_v48  ;;  %2174 = vmatprep.subr.bf16.mxu1 %v3359_v49  ;;  %v3429_v47 = vld [vmem:[#allocation8 + $0x80] sm:$0xff]   ;;  %v1267_v48 = vmax.bf16 %v3567_v0, %v1263_v43  ;;  %v3430_v49 = vld [vmem:[#allocation8 + $0x48] sm:$0xff]  }
 0x24a   :  { %2089 = vmatpush1.bf16.msra.mxu0 %v3354_v50  ;;  %2175 = vmatpush1.bf16.msra.mxu1 %v3357_v17  ;;  %v3431_v50 = vld [vmem:[#allocation8 + $0xc8] sm:$0xff]   ;;  %v3435_v17 = vld [vmem:[#allocation8 + $0xd0] sm:$0xff]  }
 0x24b   :  { %2090 = vmatprep.subr.bf16.mxu0 %v3362_v51  ;;  %2176 = vmatprep.subr.bf16.mxu1 %v3365_v52  ;;  %v3436_v51 = vld [vmem:[#allocation8 + $0x10] sm:$0xff]  }
 0x24c   :  { %v3437_v52 = vld [vmem:[#allocation8 + $0x90] sm:$0xff]  }
 0x24e   :  { %2091 = vmatpush1.bf16.msra.mxu0 %v3360_v53  ;;  %2177 = vmatpush1.bf16.msra.mxu1 %v3363_v54  ;;  %v3438_v53 = vld [vmem:[#allocation8 + $0x58] sm:$0xff]  }
 0x24f   :  { %2092 = vmatprep.subr.bf16.mxu0 %v3368_v55  ;;  %2178 = vmatprep.subr.bf16.mxu1 %v3371_v56  ;;  %v3439_v54 = vld [vmem:[#allocation8 + $0xd8] sm:$0xff]  }
 0x250   :  { %v3440_v55 = vld [vmem:[#allocation8 + $0x18] sm:$0xff]  }
 0x251   :  { %v3441_v56 = vld [vmem:[#allocation8 + $0x98] sm:$0xff]  }
 0x252   :  { %2093 = vmatpush1.bf16.msra.mxu0 %v3366_v57  ;;  %2179 = vmatpush1.bf16.msra.mxu1 %v3369_v58  ;;  %v3442_v57 = vld [vmem:[#allocation8 + $0x60] sm:$0xff]  }
 0x253   :  { %2094 = vmatprep.subr.bf16.mxu0 %v3374_v59  ;;  %2180 = vmatprep.subr.bf16.mxu1 %v3377_v60  ;;  %v3443_v58 = vld [vmem:[#allocation8 + $0xe0] sm:$0xff]  }
 0x254   :  { %v3444_v59 = vld [vmem:[#allocation8 + $0x20] sm:$0xff]  }
 0x255   :  { %v3445_v60 = vld [vmem:[#allocation8 + $0xa0] sm:$0xff]  }
 0x256   :  { %2095 = vmatpush1.bf16.msra.mxu0 %v3372_v61  ;;  %2181 = vmatpush1.bf16.msra.mxu1 %v3375_v31  ;;  %v3446_v61 = vld [vmem:[#allocation8 + $0x68] sm:$0xff]  }
 0x257   :  { %2096 = vmatprep.subr.bf16.mxu0 %v3380_v35  ;;  %2182 = vmatprep.subr.bf16.mxu1 %v3383_v38  ;;  %v3447_v31 = vld [vmem:[#allocation8 + $0xe8] sm:$0xff]  }
 0x258   :  { %v3448_v35 = vld [vmem:[#allocation8 + $0x28] sm:$0xff]  }
 0x259   :  { %v3449_v38 = vld [vmem:[#allocation8 + $0xa8] sm:$0xff]  }
 0x25a   :  { %2097 = vmatpush1.bf16.msra.mxu0 %v3378_v62  ;;  %2183 = vmatpush1.bf16.msra.mxu1 %v3381_v1  ;;  %v3450_v62 = vld [vmem:[#allocation8 + $0x70] sm:$0xff]  }
 0x25b   :  { %2098 = vmatprep.subr.bf16.mxu0 %v3386_v2  ;;  %2184 = vmatprep.subr.bf16.mxu1 %v3389_v3  ;;  %v3451_v1 = vld [vmem:[#allocation8 + $0xf0] sm:$0xff]  }
 0x25c   :  { %v3452_v2 = vld [vmem:[#allocation8 + $0x30] sm:$0xff]  }
 0x25d   :  { %v3453_v3 = vld [vmem:[#allocation8 + $0xb0] sm:$0xff]  }
 0x25e   :  { %2099 = vmatpush1.bf16.msra.mxu0 %v3384_v4  ;;  %2185 = vmatpush1.bf16.msra.mxu1 %v3387_v5  ;;  %v3454_v4 = vld [vmem:[#allocation8 + $0x78] sm:$0xff]  }
 0x25f   :  { %2100 = vmatprep.subr.bf16.mxu0 %v3392_v7  ;;  %2186 = vmatprep.subr.bf16.mxu1 %v3395_v8  ;;  %v3455_v5 = vld [vmem:[#allocation8 + $0xf8] sm:$0xff]  }
 0x260   :  { %v3456_v7 = vld [vmem:[#allocation8 + $0x38] sm:$0xff]  }
 0x261   :  { %v3457_v8 = vld [vmem:[#allocation8 + $0xb8] sm:$0xff]  }
 0x262   :  { %2101 = vmatpush1.bf16.msra.mxu0 %v3390_v9  ;;  %2187 = vmatpush1.bf16.msra.mxu1 %v3393_v10  ;;  %v2932_v9 = vld.sshfl [vmem:[%s3784_s6] sm:$0x33 pattern:$0x75316420] }
 0x263   :  { %2102 = vmatprep.subr.bf16.mxu0 %v3398_v14  ;;  %2188 = vmatprep.subr.bf16.mxu1 %v3401_v16  ;;  %v2222_v10 = vcombine.high %v2932_v9, %v2932_v9  ;;  %v2229_v14 = vrot.slane %v2932_v9, %v3689_v15 }
 0x265   :  { %v2236_v16 = vrot.slane %v2222_v10, %v3689_v15 }
 0x266   :  { %2103 = vmatpush1.bf16.msra.mxu0 %v3396_v19  ;;  %2189 = vmatpush1.bf16.msra.mxu1 %v3399_v21  ;;  %v2237_v19 = vcombine.high %v2229_v14, %v2229_v14 }
 0x267   :  { %2104 = vmatprep.subr.bf16.mxu0 %v3404_v22  ;;  %2190 = vmatprep.subr.bf16.mxu1 %v3407_v23  ;;  %v2238_v21 = vcombine.high %v2236_v16, %v2236_v16  ;;  %v2240_v22 = vpack.i.b16 %v2229_v14, %v2229_v14 }
 0x268   :  { %v2254_v23 = vpack.i.b16 %v2237_v19, %v2237_v19 }
 0x26a   :  { %2105 = vmatpush1.bf16.msra.mxu0 %v3402_v24  ;;  %2191 = vmatpush1.bf16.msra.mxu1 %v3405_v25  ;;  %v2247_v24 = vpack.i.b16 %v2236_v16, %v2236_v16  ;;  %v2261_v25 = vpack.i.b16 %v2238_v21, %v2238_v21  ;;  %v2259_v32 = vrot.slane %v2254_v23, %v3698_v20 }
 0x26b   :  { %2106 = vmatprep.subr.bf16.mxu0 %v3410_v27  ;;  %2192 = vmatprep.subr.bf16.mxu1 %v3413_v28 }
 0x26c   :  { %v2266_v15 = vrot.slane %v2261_v25, %v3698_v20 }
 0x26e   :  { %2107 = vmatpush1.bf16.msra.mxu0 %v3408_v29  ;;  %2193 = vmatpush1.bf16.msra.mxu1 %v3411_v30  ;;  %v2245_v30 = vrot.slane %v2240_v22, %v3698_v20 }
 0x26f   :  { %2108 = vmatprep.subr.bf16.mxu0 %v3416_v33  ;;  %2194 = vmatprep.subr.bf16.mxu1 %v3419_v34 }
 0x272   :  { %2109 = vmatpush1.bf16.msra.mxu0 %v3414_v36  ;;  %2195 = vmatpush1.bf16.msra.mxu1 %v3417_v37  ;;  %v2252_v36 = vrot.slane %v2247_v24, %v3698_v20 }
 0x273   :  { %2110 = vmatprep.subr.bf16.mxu0 %v3422_v63  ;;  %2196 = vmatprep.subr.bf16.mxu1 %v3425_v40 }
 0x276   :  { %2111 = vmatpush1.bf16.msra.mxu0 %v3420_v41  ;;  %2197 = vmatpush1.bf16.msra.mxu1 %v3423_v42 }
 0x277   :  { %2965 = vmatprep.subr.bf16.mxu0 %v3426_v44  ;;  %2987 = vmatprep.subr.bf16.mxu1 %v3427_v45 }
 0x279   :  { %2113 = vmatmul.mubr.bf16.vlgmr.msra.gmra.mrb[8].mxu0 %v1267_v48  ;;  %2199 = vmatmul.mubr.bf16.vlgmr.msra.gmra.mrb[8].mxu1 %v1267_v48 }
 0x27a   :  { %2966 = vmatpush3.bf16.msra.mxu0 %v3428_v46  ;;  %2988 = vmatpush3.bf16.msra.mxu1 %v3429_v47 }
 0x27b   :  { %2967 = vmatprep.subr.bf16.mxu0 %v3430_v49  ;;  %2989 = vmatprep.subr.bf16.mxu1 %v3431_v50 }
 0x27e   :  { %2968 = vmatpush3.bf16.msra.mxu0 %v3432_v6  ;;  %2990 = vmatpush3.bf16.msra.mxu1 %v3433_v12 }
 0x27f   :  { %2969 = vmatprep.subr.bf16.mxu0 %v3434_v18  ;;  %2991 = vmatprep.subr.bf16.mxu1 %v3435_v17 }
 0x282   :  { %2970 = vmatpush3.bf16.msra.mxu0 %v3436_v51  ;;  %2992 = vmatpush3.bf16.msra.mxu1 %v3437_v52 }
 0x283   :  { %2971 = vmatprep.subr.bf16.mxu0 %v3438_v53  ;;  %2993 = vmatprep.subr.bf16.mxu1 %v3439_v54 }
 0x286   :  { %2972 = vmatpush3.bf16.msra.mxu0 %v3440_v55  ;;  %2994 = vmatpush3.bf16.msra.mxu1 %v3441_v56 }
 0x287   :  { %2973 = vmatprep.subr.bf16.mxu0 %v3442_v57  ;;  %2995 = vmatprep.subr.bf16.mxu1 %v3443_v58 }
 0x28a   :  { %2974 = vmatpush3.bf16.msra.mxu0 %v3444_v59  ;;  %2996 = vmatpush3.bf16.msra.mxu1 %v3445_v60 }
 0x28b   :  { %2975 = vmatprep.subr.bf16.mxu0 %v3446_v61  ;;  %2997 = vmatprep.subr.bf16.mxu1 %v3447_v31 }
 0x28e   :  { %2976 = vmatpush3.bf16.msra.mxu0 %v3448_v35  ;;  %2998 = vmatpush3.bf16.msra.mxu1 %v3449_v38 }
 0x28f   :  { %2977 = vmatprep.subr.bf16.mxu0 %v3450_v62  ;;  %2999 = vmatprep.subr.bf16.mxu1 %v3451_v1 }
 0x292   :  { %2978 = vmatpush3.bf16.msra.mxu0 %v3452_v2  ;;  %3000 = vmatpush3.bf16.msra.mxu1 %v3453_v3 }
 0x293   :  { %2979 = vmatprep.subr.bf16.mxu0 %v3454_v4  ;;  %3001 = vmatprep.subr.bf16.mxu1 %v3455_v5 }
 0x296   :  { %2980 = vmatpush3.bf16.msra.mxu0 %v3456_v7  ;;  %3002 = vmatpush3.bf16.msra.mxu1 %v3457_v8  ;;  %v2636_v8 = vand.u32 127, %v214_v11 }
 0x298   :  { %v2641_v9 = vadd.s32 4294967288, %v2636_v8  ;;  %v2639_v10 = vsub.s32 %v2636_v8, %v3683_v13 }
 0x29a   :  { %v2644_v14 = vsub.s32 %v2641_v9, %v3683_v13 }
 0x34c   :  { %v2114_v26 = vpop.f32.mrb[8].mxu0  ;;  %v2200_v27 = vpop.f32.mrb[8].mxu1 }
 0x34d   :  { %v2116_v28 = vpop.f32.mrb[9].mxu0  ;;  %v2202_v29 = vpop.f32.mrb[9].mxu1 }
 0x34e   :  { %v2118_v33 = vpop.f32.mrb[10].mxu0  ;;  %v2204_v34 = vpop.f32.mrb[10].mxu1 }
 0x34f   :  { %v2209_v37 = vpack.c.bf16 %v2118_v33, %v2114_v26  ;;  %v2211_v39 = vpack.c.bf16 %v2204_v34, %v2200_v27  ;;  %v2120_v63 = vpop.f32.mrb[11].mxu0  ;;  %v2206_v40 = vpop.f32.mrb[11].mxu1 }
 0x350   :  { %v2210_v41 = vpack.c.bf16 %v2120_v63, %v2116_v28  ;;  %v2212_v42 = vpack.c.bf16 %v2206_v40, %v2202_v29 }
 0x351   :  { %v2267_v43 = vadd.bf16 %v2245_v30, %v2209_v37  ;;  %v2269_v44 = vadd.bf16 %v2259_v32, %v2211_v39 }
 0x352   :  { %v2268_v45 = vadd.bf16 %v2252_v36, %v2210_v41  ;;  %v2270_v46 = vadd.bf16 %v2266_v15, %v2212_v42 }
 0x353   :  { %v2271_v49 = vmax.bf16 %v3567_v0, %v2267_v43  ;;  %v2273_v50 = vmax.bf16 %v3567_v0, %v2269_v44 }
 0x354   :  { %v2272_v47 = vmax.bf16 %v3567_v0, %v2268_v45  ;;  %v2274_v48 = vmax.bf16 %v3567_v0, %v2270_v46  ;;  %v2618_v0 = vstv %s3786_s8  ;;  %s3569_s8 = smov [#allocation9]  }
 0x355   :  { %s2657_s17 = sshll.u32 %s3569_s8, 4  ;;  %s2658_s17 = int_to_ptr.vmem [resolvable:$true] %s2657_s17 }
 0x356   :  { %2563 = vmatprep.mubr.bf16.mxu0 %v2272_v47  ;;  %2604 = vmatprep.mubr.bf16.mxu1 %v2274_v48  ;;  %s3532_s18 = scalar_lea.vmem %s2658_s17, 16  ;;  %s3536_s19 = scalar_lea.vmem %s2658_s17, 32 }
 0x357   :  { %2564 = vmatmul.mubr.bf16.vlgmr.msra.gmra.mrb[12].mxu0 %v2271_v49  ;;  %2605 = vmatmul.mubr.bf16.vlgmr.msra.gmra.mrb[12].mxu1 %v2273_v50  ;;  %p3533_p10 = scmp.ne.s32.totalorder %s2658_s17, %s3532_s18  ;;  %p3537_p11 = scmp.lt.s32.totalorder %s2658_s17, %s2658_s17 }
 0x358   :  { %p3538_p12 = scmp.lt.s32.totalorder %s3536_s19, %s3532_s18 }
 0x35a   :  { %p3539_p13 = por %p3538_p12, %p3537_p11 }
 0x35c   :  { %p3540_p0 = pnand %p3539_p13, %p3533_p10 }
 0x42a   :  { %v2981_v20 = vpop.f32.mrb[12].mxu0  ;;  %v3003_v6 = vpop.f32.mrb[12].mxu1 }
 0x42b   :  { %v2982_v12 = vpop.f32.mrb[13].mxu0  ;;  %v3004_v18 = vpop.f32.mrb[13].mxu1 }
 0x42c   :  { %v2983_v17 = vadd.f32 %v2982_v12, %v2981_v20  ;;  %v3005_v51 = vadd.f32 %v3004_v18, %v3003_v6  ;;  %v2984_v52 = vpop.f32.mrb[14].mxu0  ;;  %v3006_v53 = vpop.f32.mrb[14].mxu1 }
 0x42d   :  { %v2985_v54 = vpop.f32.mrb[15].mxu0  ;;  %v3007_v55 = vpop.f32.mrb[15].mxu1 }
 0x42e   :  { %v2986_v56 = vadd.f32 %v2985_v54, %v2984_v52  ;;  %v3008_v57 = vadd.f32 %v3007_v55, %v3006_v53  ;;  %v2607_v58 = vadd.f32 %v3005_v51, %v2983_v17 }
 0x430   :  { %2613 = vadd.xlane.f32.xlu0 %v2607_v58  ;;  %v2610_v59 = vadd.f32 %v3008_v57, %v2986_v56 }
 0x434   :  { %2615 = vadd.xlane.f32.xlu0 %v2610_v59 }
 0x4bd   :  { %v2614_v60 = vpop.xlane.xlu0 %2613 }
 0x4be   :  { %v2619_v61 = vadd.f32 %v2618_v0, %v2614_v60 }
 0x4c0   :  { %v2621_v31 = vsub.f32 0.0, %v2619_v61 }
 0x4c1   :  { %v2616_v35 = vpop.xlane.xlu0 %2615 }
 0x4c2   :  { %v2623_v38 = vmul.f32 1.442695, %v2621_v31  ;;  %v2620_v62 = vadd.f32 %v2618_v0, %v2616_v35 }
 0x4c4   :  { %3458 = vpow2.f32 %v2623_v38  ;;  %v2622_v1 = vsub.f32 0.0, %v2620_v62 }
 0x4c6   :  { %v2625_v2 = vmul.f32 1.442695, %v2622_v1 }
 0x4c8   :  { %3460 = vpow2.f32 %v2625_v2 }
 0x4ce   :  { %v3459_v3 = vpop.eup %3458 }
 0x4cf   :  { %v2627_v4 = vadd.f32 1.0, %v3459_v3 }
 0x4d1   :  { %3462 = vrcp.f32 %v2627_v4 }
 0x4d2   :  { %v3461_v5 = vpop.eup %3460 }
 0x4d3   :  { %v2628_v7 = vadd.f32 1.0, %v3461_v5 }
 0x4d5   :  { %3464 = vrcp.f32 %v2628_v7 }
 0x4db   :  { %v3463_v16 = vpop.eup %3462 }
 0x4dc   :  { %v2640_v21 = vrot.slane %v3463_v16, %v2639_v10 }
 0x4df   :  { %v3465_v19 = vpop.eup %3464 }
 0x4e0   :  { %v2645_v22 = vrot.slane %v3465_v19, %v2644_v14 }
 0x4e2   :  { %v2647_v23 = vsel %vm2646_vm1, %v2645_v22, %v2640_v21 }
 0x4e3   :  { %2650 = vst.msk [vmem:[#allocation9] sm:$0x1] %vm2649_vm2, %v2647_v23 }
 0x4e4   :  { %3543 = shalt.err (!%p3540_p0)
}
 0x4e5   :  { %s3544_s24 = scalar_lea.hbm %s3787_s9, 16 }
 0x4e6   :  { %p3545_p1 = scmp.ne.s32.totalorder %s3787_s9, %s3544_s24  ;;  %p3548_p2 = scmp.lt.u32.totalorder %s3544_s24, %s3787_s9 }
 0x4e8   :  { %p3550_p3 = pnand %p3548_p2, %p3545_p1 }
 0x4ea   :  { %3553 = shalt.err (!%p3550_p3)
}
 0x4eb   :  { %2660 = dma.vmem_to_hbm [thread:$0]  %s2658_s17, 16, %s3787_s9, [#allocation5]  }
 0x4ec   :  { %3558 = dma.done.wait [#allocation5], 16  }
 0x4ed   :  { %3559 = vsyncadd [#allocation5], 4294967280 }
 0x4ee   :  { %2664 = vsyncpa [#allocation4], 1 }
 0x4ef   :  { %2665 = vsyncpa [#allocation7], 1 }
 0x4f0   :  { %2666 = vsyncpa [#allocation5], 1 }

</bundles_post_ra>
